<compile_context>
chip_gen: v7x
topology: tpu7x:2x2x1
jax: 0.10.0
libtpu: 0.0.40
codegen_flags: <defaults>
</compile_context>

<pallas_src>
from functools import partial

import numpy as np
import jax
import jax.numpy as jnp
from jax import lax
from jax.experimental import pallas as pl
from jax.experimental.pallas import tpu as pltpu

SIZES = (1, 2, 3, 6)
_PP = 64          # per-branch padded pooled length: >= 6*6 = 36; nb*_PP = 256


# ----------------------------- operator builders -----------------------------

def _adaptive_pool_matrix(P, H):
    """(P, H) row-averaging matrix reproducing nn.AdaptiveAvgPool2d bins."""
    A = np.zeros((P, H), dtype=np.float32)
    for i in range(P):
        s = (i * H) // P
        e = -((-(i + 1) * H) // P)          # ceil((i+1)*H/P)
        A[i, s:e] = 1.0 / (e - s)
    return A


def _bilinear_up_matrix(H, P):
    """(H, P) matrix reproducing F.interpolate(bilinear, align_corners=True)."""
    U = np.zeros((H, P), dtype=np.float32)
    if P == 1:
        U[:, 0] = 1.0
        return U
    if H == 1:                               # single output row -> source 0
        U[0, 0] = 1.0
        return U
    scale = (P - 1) / (H - 1)
    for h in range(H):
        src = h * scale
        h0 = int(np.floor(src))
        h1 = min(h0 + 1, P - 1)
        f = src - h0
        U[h, h0] += 1.0 - f
        U[h, h1] += f
    return U


def _build_operators(sizes, H, W):
    """pool (HW, nb*_PP) with pooled = x(C,HW) @ pool, and up (nb, HW, _PP).

    Per branch, pool columns / up columns in [P*P, _PP) are zero: the pooled
    values there are zero, the conv+ReLU turns them into ReLU(shift), and the
    matching zero columns of the upsample operator cancel them, so the padding
    never leaks into the output.
    """
    nb = len(sizes)
    HW = H * W
    pool = np.zeros((HW, nb * _PP), np.float32)
    up = np.zeros((nb, HW, _PP), np.float32)
    for b, P in enumerate(sizes):
        assert P * P <= _PP
        Ah = _adaptive_pool_matrix(P, H)
        Aw = _adaptive_pool_matrix(P, W)
        Uh = _bilinear_up_matrix(H, P)
        Uw = _bilinear_up_matrix(W, P)
        pool[:, b * _PP:b * _PP + P * P] = np.kron(Ah, Aw).T     # (HW, P*P)
        up[b, :, :P * P] = np.kron(Uh, Uw)                       # (HW, P*P)
    return pool, up


# --------------------------------- kernels ------------------------------------

def _pool_conv_kernel(pool_ref, w_ref, shift_ref, x_ref, z_ref, acc_ref,
                      *, nb, pp, hw_tile, pool_resident):
    """grid = (N, HW_tiles).

    Adaptive-average-pools ALL pyramid branches from a single x stream in its
    native (C, HW) layout (x read from HBM exactly once per batch element),
    accumulating the tiny pooled tensor (C, nb*pp) in VMEM scratch, then
    applies the per-branch 1x1 conv (+folded BN) + ReLU at the last HW tile.
    """
    t = pl.program_id(1)

    @pl.when(t == 0)
    def _():
        acc_ref[...] = jnp.zeros_like(acc_ref)

    if pool_resident:
        start = t * hw_tile
        if hw_tile % 128 == 0:
            start = pl.multiple_of(start, 128)
        p = pool_ref[pl.ds(start, hw_tile), :]
    else:
        p = pool_ref[...]

    # (C, hw_tile) @ (hw_tile, nb*pp) -> (C, nb*pp); no in-kernel transposes.
    acc_ref[...] += jnp.dot(x_ref[0], p, preferred_element_type=jnp.float32)

    @pl.when(t == pl.num_programs(1) - 1)
    def _():
        for b in range(nb):                            # static unroll, 4 branches
            pooled = acc_ref[:, b * pp:(b + 1) * pp]                 # (C, pp)
            z = jnp.dot(w_ref[b].astype(jnp.float32), pooled,
                        preferred_element_type=jnp.float32)          # (Cout, pp)
            z = jnp.maximum(z + shift_ref[b], 0.0)     # BN scale folded into w
            z_ref[0, b] = z.astype(z_ref.dtype)


def _upsample_concat_kernel(up_ref, z_ref, x_ref, o_ref):
    """grid = (N, branch, HW_tiles).

    Bilinear upsample as a dot_general on the tiny resident z block, emitting
    lane-dense (Cout, hw_tile) tiles directly in NCHW channel order, and the
    torch.cat pass-through copy of x written into the second output plane of
    the same block (so no separate XLA concatenate pass is needed).
    """
    z = z_ref[0, 0]                                            # (Cout, pp) f32
    u = up_ref[0].astype(jnp.float32)                          # (hw_tile, pp)
    y = lax.dot_general(z, u, dimension_numbers=(((1,), (1,)), ((), ())),
                        preferred_element_type=jnp.float32)    # (Cout, hw_tile)
    o_ref[0, 0] = y.astype(o_ref.dtype)
    o_ref[0, 1] = x_ref[0].astype(o_ref.dtype)                 # x pass-through


# --------------------------------- helpers ------------------------------------

def _vmem_capacity_bytes():
    try:
        return int(pltpu.get_tpu_info().vmem_capacity_bytes)
    except Exception:
        return 64 << 20            # conservative default (v7x: 64 MiB per TC)


def _vmem_limit(nbytes, cap):
    hi = (cap * 7) // 8            # headroom below physical VMEM capacity
    return int(min(max(nbytes + (2 << 20), 16 << 20), hi))


def _pick_tile(hw, bytes_per_pos, budget):
    """Largest multiple-of-128 divisor of hw whose footprint fits the budget;
    falls back to the smallest valid divisor, or full hw if none exists
    (block lane dim must be a multiple of 128 or the full extent)."""
    divs = [d for d in range(128, hw + 1, 128) if hw % d == 0]
    if not divs:
        return hw
    ok = [d for d in divs if d * bytes_per_pos <= budget]
    return ok[-1] if ok else divs[0]


def _check_tile(hw, t):
    assert hw % t == 0, (hw, t)
    assert t % 128 == 0 or t == hw, (hw, t)


# --------------------------------- wrapper ------------------------------------

def psp_module_forward(x_nchw, params, sizes=SIZES, hw_tile_pool=None,
                       hw_tile_up=None, compute_dtype=None, pool_resident=None):
    """PSPModule forward. Returns NCHW (N, 2*C, H, W), matching PyTorch.

    compute_dtype: optional (e.g. jnp.bfloat16) cast for the streamed operands
    (x / pool / up / conv weight); accumulation stays float32 and the
    concatenated x pass-through always keeps the original dtype/values.
    """
    N, C, H, W = x_nchw.shape
    nb = len(sizes)
    assert C % nb == 0
    Cout = C // nb
    assert Cout % 8 == 0, "Cout must be a multiple of 8 for TPU sublane tiling"
    HW = H * W
    nbpp = nb * _PP

    cap = _vmem_capacity_bytes()
    x_dt = jnp.dtype(x_nchw.dtype)
    stream_dt = jnp.dtype(compute_dtype) if compute_dtype is not None else x_dt
    s_isz = stream_dt.itemsize
    o_isz = x_dt.itemsize

    # ---- dense pooling / upsampling operators (built once, tiny) -------------
    pool_np, up_np = _build_operators(sizes, H, W)
    pool_t = jnp.asarray(pool_np, dtype=stream_dt)         # (HW, nb*_PP)
    up = jnp.asarray(up_np, dtype=stream_dt)                # (nb, HW, _PP)

    # ---- fold BN scale into the pre-transposed 1x1-conv weight ---------------
    w = jnp.asarray(params["w"], jnp.float32)               # (nb, C, Cout)
    scale = jnp.asarray(params["scale"], jnp.float32)       # (nb, Cout)
    shift = jnp.asarray(params["shift"], jnp.float32)       # (nb, Cout)
    w_t = jnp.transpose(w, (0, 2, 1)) * scale[:, :, None]   # (nb, Cout, C)
    if compute_dtype is not None:
        w_t = w_t.astype(stream_dt)
    w_isz = jnp.dtype(w_t.dtype).itemsize
    shift_k = shift[:, :, None]                             # (nb, Cout, 1)

    # ---- x stays in native NCHW layout; spatial flatten is free --------------
    x2 = x_nchw.reshape(N, C, HW)
    x_stream = x2.astype(stream_dt) if compute_dtype is not None else x2

    # ---- per-call tile selection (generation-aware) --------------------------
    if hw_tile_pool is None:
        hw_tile_pool = _pick_tile(HW, 2 * C * s_isz, cap // 4)
    _check_tile(HW, hw_tile_pool)
    n_t1 = HW // hw_tile_pool

    if hw_tile_up is None:
        per_pos2 = 2 * (_PP * s_isz + Cout * o_isz + 2 * Cout * o_isz)
        hw_tile_up = _pick_tile(HW, per_pos2, cap // 3)
    _check_tile(HW, hw_tile_up)
    n_t2 = HW // hw_tile_up

    if pool_resident is None:
        pool_resident = (HW * nbpp * s_isz) <= cap // 16

    # ---- call 1: pooling (all branches) + 1x1 conv + BN + ReLU ---------------
    if pool_resident:
        pool_spec = pl.BlockSpec((HW, nbpp), lambda n, t: (0, 0))
        pool_rows = HW
    else:
        pool_spec = pl.BlockSpec((hw_tile_pool, nbpp), lambda n, t: (t, 0))
        pool_rows = hw_tile_pool

    vmem1 = _vmem_limit(
        2 * C * hw_tile_pool * s_isz            # x tiles (double buffered)
        + 2 * pool_rows * nbpp * s_isz          # pooling operator
        + 2 * nb * Cout * C * w_isz             # conv weights
        + 2 * nb * Cout * 128 * 4               # shift (lane-padded)
        + 2 * nb * Cout * _PP * 4               # z out block
        + C * nbpp * 4, cap)                    # accumulator scratch

    kernel1 = partial(_pool_conv_kernel, nb=nb, pp=_PP,
                      hw_tile=hw_tile_pool, pool_resident=pool_resident)

    z = pl.pallas_call(
        kernel1,
        out_shape=jax.ShapeDtypeStruct((N, nb, Cout, _PP), jnp.float32),
        grid_spec=pltpu.PrefetchScalarGridSpec(
            num_scalar_prefetch=0,
            grid=(N, n_t1),
            in_specs=[
                pool_spec,
                pl.BlockSpec((nb, Cout, C), lambda n, t: (0, 0, 0)),
                pl.BlockSpec((nb, Cout, 1), lambda n, t: (0, 0, 0)),
                pl.BlockSpec((1, C, hw_tile_pool), lambda n, t: (n, 0, t)),
            ],
            out_specs=pl.BlockSpec((1, nb, Cout, _PP),
                                   lambda n, t: (n, 0, 0, 0)),
            scratch_shapes=[pltpu.VMEM((C, nbpp), jnp.float32)],
        ),
        compiler_params=pltpu.CompilerParams(
            dimension_semantics=("parallel", "arbitrary"),
            vmem_limit_bytes=vmem1),
    )(pool_t, w_t, shift_k, x_stream)

    # ---- call 2: bilinear upsample + fused concat (x pass-through) -----------
    vmem2 = _vmem_limit(
        2 * (hw_tile_up * _PP * s_isz           # up tile
             + Cout * _PP * 4                   # z block
             + Cout * hw_tile_up * o_isz        # x pass-through tile
             + 2 * Cout * hw_tile_up * o_isz),  # output block
        cap)

    out = pl.pallas_call(
        _upsample_concat_kernel,
        out_shape=jax.ShapeDtypeStruct((N, 2, C, HW), x_dt),
        grid_spec=pltpu.PrefetchScalarGridSpec(
            num_scalar_prefetch=0,
            grid=(N, nb, n_t2),
            in_specs=[
                pl.BlockSpec((1, hw_tile_up, _PP), lambda n, b, t: (b, t, 0)),
                pl.BlockSpec((1, 1, Cout, _PP), lambda n, b, t: (n, b, 0, 0)),
                pl.BlockSpec((1, Cout, hw_tile_up), lambda n, b, t: (n, b, t)),
            ],
            out_specs=pl.BlockSpec((1, 2, Cout, hw_tile_up),
                                   lambda n, b, t: (n, 0, b, t)),
        ),
        compiler_params=pltpu.CompilerParams(
            dimension_semantics=("parallel", "parallel", "arbitrary"),
            vmem_limit_bytes=vmem2),
    )(up, z, x2)

    # (N, 2, C, HW) -> (N, 2C, H, W): contiguous reshape, no transpose/concat.
    # Channel order: [branch0, branch1, branch2, branch3, x] as in torch.cat.
    return out.reshape(N, 2 * C, H, W)


# ------------------------- deterministic parameter init -----------------------

def init_params(key, C, sizes=SIZES, use_bn=True, eps=1e-5):
    nb = len(sizes)
    Cout = C // nb
    ks = jax.random.split(key, 6)
    w = jax.random.normal(ks[0], (nb, C, Cout), jnp.float32) / np.sqrt(C)
    bias = 0.1 * jax.random.normal(ks[1], (nb, Cout), jnp.float32)
    gamma = 1.0 + 0.1 * jax.random.normal(ks[2], (nb, Cout), jnp.float32)
    beta = 0.1 * jax.random.normal(ks[3], (nb, Cout), jnp.float32)
    mean = 0.1 * jax.random.normal(ks[4], (nb, Cout), jnp.float32)
    var = 0.5 + jnp.abs(jax.random.normal(ks[5], (nb, Cout), jnp.float32))
    # fold inference-mode BatchNorm into an affine scale/shift on the conv out
    scale = gamma / jnp.sqrt(var + eps)
    shift = beta - mean * scale
    for b, P in enumerate(sizes):
        # pool_size == 1 forces use_bn=False -> Conv2dReLU uses a conv bias
        if not (use_bn and P != 1):
            scale = scale.at[b].set(1.0)
            shift = shift.at[b].set(bias[b])
    return {"w": w, "scale": scale, "shift": shift}


# --------------------------------- pure-JAX ref --------------------------------

def psp_module_reference(x_nchw, params, sizes=SIZES):
    N, C, H, W = x_nchw.shape
    hi = jax.lax.Precision.HIGHEST
    outs = []
    for b, P in enumerate(sizes):
        Ah = jnp.asarray(_adaptive_pool_matrix(P, H))
        Aw = jnp.asarray(_adaptive_pool_matrix(P, W))
        Uh = jnp.asarray(_bilinear_up_matrix(H, P))
        Uw = jnp.asarray(_bilinear_up_matrix(W, P))
        pooled = jnp.einsum('ph,qw,nchw->ncpq', Ah, Aw, x_nchw, precision=hi)
        z = jnp.einsum('ncpq,cd->ndpq', pooled, params["w"][b], precision=hi)
        z = jnp.maximum(z * params["scale"][b][None, :, None, None]
                        + params["shift"][b][None, :, None, None], 0.0)
        outs.append(jnp.einsum('hp,wq,ndpq->ndhw', Uh, Uw, z, precision=hi))
    outs.append(x_nchw)
    return jnp.concatenate(outs, axis=1)


if __name__ == "__main__":
    key = jax.random.PRNGKey(0)
    kx, kp = jax.random.split(key)
    # Small overall size, but realistic channel structure so Cout = 128
    # (lane-dense, 8-aligned channel blocks).
    N, C, H, W = 2, 512, 16, 16
    x = jax.random.normal(kx, (N, C, H, W), dtype=jnp.float32)
    params = init_params(kp, C)

    ref = psp_module_reference(x, params)

    # 1) default path: auto tiles (full-HW blocks), resident pooling operator.
    out = jax.block_until_ready(psp_module_forward(x, params))
    assert out.shape == (N, 2 * C, H, W), out.shape
    np.testing.assert_allclose(np.asarray(out), np.asarray(ref),
                               atol=1e-3, rtol=1e-3)

    # 2) tiled path: 128-wide HW tiles in both calls, streamed pooling operator
    #    (exercises the HW-reduction accumulator and the tiled pool BlockSpec).
    out2 = jax.block_until_ready(
        psp_module_forward(x, params, hw_tile_pool=128, hw_tile_up=128,
                           pool_resident=False))
    np.testing.assert_allclose(np.asarray(out2), np.asarray(ref),
                               atol=1e-3, rtol=1e-3)

    # 3) bf16 streaming path (f32 accumulation), resident pool + dynamic slice.
    out3 = jax.block_until_ready(
        psp_module_forward(x, params, hw_tile_pool=128,
                           compute_dtype=jnp.bfloat16))
    np.testing.assert_allclose(np.asarray(out3), np.asarray(ref),
                               atol=5e-2, rtol=5e-2)

    print("KERNEL_OK")
</pallas_src>

<mosaic_0001>
module attributes {stable_mosaic.version = 11 : i64} {
  func.func @_pool_conv_kernel(%arg0: i32, %arg1: i32, %arg2: memref<256x256xf32, #tpu.memory_space<vmem>>, %arg3: memref<4x128x512xf32, #tpu.memory_space<vmem>>, %arg4: memref<4x128x1xf32, #tpu.memory_space<vmem>>, %arg5: memref<1x512x256xf32, #tpu.memory_space<vmem>>, %arg6: memref<1x4x128x64xf32, #tpu.memory_space<vmem>>, %arg7: memref<512x256xf32, #tpu.memory_space<vmem>>) attributes {dimension_semantics = [#tpu.dimension_semantics<parallel>, #tpu.dimension_semantics<arbitrary>], iteration_bounds = array<i64: 2, 1>, scalar_prefetch = 0 : i64, scratch_operands = 1 : i64, tpu.core_type = #tpu.core_type<tc>, window_params = [{pipeline_mode = #tpu.pipeline_mode<synchronous>, transform_indices = @transform_0, window_bounds = array<i64: 256, 256>}, {pipeline_mode = #tpu.pipeline_mode<synchronous>, transform_indices = @transform_1, window_bounds = array<i64: 4, 128, 512>}, {pipeline_mode = #tpu.pipeline_mode<synchronous>, transform_indices = @transform_2, window_bounds = array<i64: 4, 128, 1>}, {transform_indices = @transform_3, window_bounds = array<i64: 1, 512, 256>}, {transform_indices = @transform_4, window_bounds = array<i64: 1, 4, 128, 64>}]} {
    %c0_i32 = arith.constant 0 : i32
    %0 = arith.cmpi eq, %arg1, %c0_i32 : i32
    %1 = arith.extui %0 : i1 to i32
    %c0_i32_0 = arith.constant 0 : i32
    %2 = arith.cmpi ne, %1, %c0_i32_0 : i32
    scf.if %2 {
      %cst_10 = arith.constant 0.000000e+00 : f32
      %16 = vector.broadcast %cst_10 : f32 to vector<512x256xf32>
      %c0_11 = arith.constant 0 : index
      %c0_12 = arith.constant 0 : index
      %17 = vector.load %arg7[%c0_11, %c0_12] : memref<512x256xf32, #tpu.memory_space<vmem>>, vector<512x256xf32>
      tpu.vector_store %arg7[%c0_11, %c0_12], %16 {strides = array<i32>} : memref<512x256xf32, #tpu.memory_space<vmem>>, vector<512x256xf32>,
    } else {
    }
    %c256_i32 = arith.constant 256 : i32
    %3 = arith.muli %arg1, %c256_i32 : i32
    %4 = tpu.assume_multiple %3, 128 : i32
    %5 = arith.index_cast %4 : i32 to index
    %c0 = arith.constant 0 : index
    %6 = vector.load %arg2[%5, %c0] : memref<256x256xf32, #tpu.memory_space<vmem>>, vector<256x256xf32>
    %c0_1 = arith.constant 0 : index
    %c0_2 = arith.constant 0 : index
    %7 = vector.load %arg7[%c0_1, %c0_2] : memref<512x256xf32, #tpu.memory_space<vmem>>, vector<512x256xf32>
    %c0_3 = arith.constant 0 : index
    %c0_4 = arith.constant 0 : index
    %c0_5 = arith.constant 0 : index
    %8 = vector.load %arg5[%c0_3, %c0_4, %c0_5] : memref<1x512x256xf32, #tpu.memory_space<vmem>>, vector<1x512x256xf32>
    %9 = vector.shape_cast %8 : vector<1x512x256xf32> to vector<512x256xf32>
    %cst = arith.constant dense<0.000000e+00> : vector<512x256xf32>
    %10 = tpu.matmul %9, %6, %cst {dimension_numbers = #tpu.dot_dimension_numbers<[1], [0], [0], [1], [0, 0, 1, 1], [], []>} : vector<512x256xf32>, vector<256x256xf32>, vector<512x256xf32> -> vector<512x256xf32>
    %11 = arith.addf %7, %10 : vector<512x256xf32>
    %c0_6 = arith.constant 0 : index
    %c0_7 = arith.constant 0 : index
    %12 = vector.load %arg7[%c0_6, %c0_7] : memref<512x256xf32, #tpu.memory_space<vmem>>, vector<512x256xf32>
    tpu.vector_store %arg7[%c0_6, %c0_7], %11 {strides = array<i32>} : memref<512x256xf32, #tpu.memory_space<vmem>>, vector<512x256xf32>,
    %c0_i32_8 = arith.constant 0 : i32
    %13 = arith.cmpi eq, %arg1, %c0_i32_8 : i32
    %14 = arith.extui %13 : i1 to i32
    %c0_i32_9 = arith.constant 0 : i32
    %15 = arith.cmpi ne, %14, %c0_i32_9 : i32
    scf.if %15 {
      %c0_10 = arith.constant 0 : index
      %c0_11 = arith.constant 0 : index
      %16 = vector.load %arg7[%c0_10, %c0_11] : memref<512x256xf32, #tpu.memory_space<vmem>>, vector<512x64xf32>
      %c0_12 = arith.constant 0 : index
      %c0_13 = arith.constant 0 : index
      %c0_14 = arith.constant 0 : index
      %17 = vector.load %arg3[%c0_12, %c0_13, %c0_14] : memref<4x128x512xf32, #tpu.memory_space<vmem>>, vector<1x128x512xf32>
      %18 = vector.shape_cast %17 : vector<1x128x512xf32> to vector<128x512xf32>
      %cst_15 = arith.constant dense<0.000000e+00> : vector<128x64xf32>
      %19 = tpu.matmul %18, %16, %cst_15 {dimension_numbers = #tpu.dot_dimension_numbers<[1], [0], [0], [1], [0, 0, 1, 1], [], []>} : vector<128x512xf32>, vector<512x64xf32>, vector<128x64xf32> -> vector<128x64xf32>
      %c0_16 = arith.constant 0 : index
      %c0_17 = arith.constant 0 : index
      %c0_18 = arith.constant 0 : index
      %20 = vector.load %arg4[%c0_16, %c0_17, %c0_18] : memref<4x128x1xf32, #tpu.memory_space<vmem>>, vector<1x128x1xf32>
      %21 = vector.shape_cast %20 : vector<1x128x1xf32> to vector<128x1xf32>
      %22 = vector.broadcast %21 : vector<128x1xf32> to vector<128x64xf32>
      %23 = arith.addf %19, %22 : vector<128x64xf32>
      %cst_19 = arith.constant 0.000000e+00 : f32
      %24 = vector.broadcast %cst_19 : f32 to vector<128x64xf32>
      %25 = arith.maximumf %23, %24 : vector<128x64xf32>
      %c0_20 = arith.constant 0 : index
      %c0_21 = arith.constant 0 : index
      %c0_22 = arith.constant 0 : index
      %c0_23 = arith.constant 0 : index
      %26 = vector.load %arg6[%c0_20, %c0_21, %c0_22, %c0_23] : memref<1x4x128x64xf32, #tpu.memory_space<vmem>>, vector<1x1x128x64xf32>
      %27 = vector.shape_cast %26 : vector<1x1x128x64xf32> to vector<128x64xf32>
      %28 = vector.shape_cast %25 : vector<128x64xf32> to vector<1x1x128x64xf32>
      tpu.vector_store %arg6[%c0_20, %c0_21, %c0_22, %c0_23], %28 {strides = array<i32>} : memref<1x4x128x64xf32, #tpu.memory_space<vmem>>, vector<1x1x128x64xf32>,
      %c0_24 = arith.constant 0 : index
      %c64 = arith.constant 64 : index
      %29 = vector.load %arg7[%c0_24, %c64] : memref<512x256xf32, #tpu.memory_space<vmem>>, vector<512x64xf32>
      %c1 = arith.constant 1 : index
      %c0_25 = arith.constant 0 : index
      %c0_26 = arith.constant 0 : index
      %30 = vector.load %arg3[%c1, %c0_25, %c0_26] : memref<4x128x512xf32, #tpu.memory_space<vmem>>, vector<1x128x512xf32>
      %31 = vector.shape_cast %30 : vector<1x128x512xf32> to vector<128x512xf32>
      %cst_27 = arith.constant dense<0.000000e+00> : vector<128x64xf32>
      %32 = tpu.matmul %31, %29, %cst_27 {dimension_numbers = #tpu.dot_dimension_numbers<[1], [0], [0], [1], [0, 0, 1, 1], [], []>} : vector<128x512xf32>, vector<512x64xf32>, vector<128x64xf32> -> vector<128x64xf32>
      %c1_28 = arith.constant 1 : index
      %c0_29 = arith.constant 0 : index
      %c0_30 = arith.constant 0 : index
      %33 = vector.load %arg4[%c1_28, %c0_29, %c0_30] : memref<4x128x1xf32, #tpu.memory_space<vmem>>, vector<1x128x1xf32>
      %34 = vector.shape_cast %33 : vector<1x128x1xf32> to vector<128x1xf32>
      %35 = vector.broadcast %34 : vector<128x1xf32> to vector<128x64xf32>
      %36 = arith.addf %32, %35 : vector<128x64xf32>
      %cst_31 = arith.constant 0.000000e+00 : f32
      %37 = vector.broadcast %cst_31 : f32 to vector<128x64xf32>
      %38 = arith.maximumf %36, %37 : vector<128x64xf32>
      %c0_32 = arith.constant 0 : index
      %c1_33 = arith.constant 1 : index
      %c0_34 = arith.constant 0 : index
      %c0_35 = arith.constant 0 : index
      %39 = vector.load %arg6[%c0_32, %c1_33, %c0_34, %c0_35] : memref<1x4x128x64xf32, #tpu.memory_space<vmem>>, vector<1x1x128x64xf32>
      %40 = vector.shape_cast %39 : vector<1x1x128x64xf32> to vector<128x64xf32>
      %41 = vector.shape_cast %38 : vector<128x64xf32> to vector<1x1x128x64xf32>
      tpu.vector_store %arg6[%c0_32, %c1_33, %c0_34, %c0_35], %41 {strides = array<i32>} : memref<1x4x128x64xf32, #tpu.memory_space<vmem>>, vector<1x1x128x64xf32>,
      %c0_36 = arith.constant 0 : index
      %c128 = arith.constant 128 : index
      %42 = vector.load %arg7[%c0_36, %c128] : memref<512x256xf32, #tpu.memory_space<vmem>>, vector<512x64xf32>
      %c2 = arith.constant 2 : index
      %c0_37 = arith.constant 0 : index
      %c0_38 = arith.constant 0 : index
      %43 = vector.load %arg3[%c2, %c0_37, %c0_38] : memref<4x128x512xf32, #tpu.memory_space<vmem>>, vector<1x128x512xf32>
      %44 = vector.shape_cast %43 : vector<1x128x512xf32> to vector<128x512xf32>
      %cst_39 = arith.constant dense<0.000000e+00> : vector<128x64xf32>
      %45 = tpu.matmul %44, %42, %cst_39 {dimension_numbers = #tpu.dot_dimension_numbers<[1], [0], [0], [1], [0, 0, 1, 1], [], []>} : vector<128x512xf32>, vector<512x64xf32>, vector<128x64xf32> -> vector<128x64xf32>
      %c2_40 = arith.constant 2 : index
      %c0_41 = arith.constant 0 : index
      %c0_42 = arith.constant 0 : index
      %46 = vector.load %arg4[%c2_40, %c0_41, %c0_42] : memref<4x128x1xf32, #tpu.memory_space<vmem>>, vector<1x128x1xf32>
      %47 = vector.shape_cast %46 : vector<1x128x1xf32> to vector<128x1xf32>
      %48 = vector.broadcast %47 : vector<128x1xf32> to vector<128x64xf32>
      %49 = arith.addf %45, %48 : vector<128x64xf32>
      %cst_43 = arith.constant 0.000000e+00 : f32
      %50 = vector.broadcast %cst_43 : f32 to vector<128x64xf32>
      %51 = arith.maximumf %49, %50 : vector<128x64xf32>
      %c0_44 = arith.constant 0 : index
      %c2_45 = arith.constant 2 : index
      %c0_46 = arith.constant 0 : index
      %c0_47 = arith.constant 0 : index
      %52 = vector.load %arg6[%c0_44, %c2_45, %c0_46, %c0_47] : memref<1x4x128x64xf32, #tpu.memory_space<vmem>>, vector<1x1x128x64xf32>
      %53 = vector.shape_cast %52 : vector<1x1x128x64xf32> to vector<128x64xf32>
      %54 = vector.shape_cast %51 : vector<128x64xf32> to vector<1x1x128x64xf32>
      tpu.vector_store %arg6[%c0_44, %c2_45, %c0_46, %c0_47], %54 {strides = array<i32>} : memref<1x4x128x64xf32, #tpu.memory_space<vmem>>, vector<1x1x128x64xf32>,
      %c0_48 = arith.constant 0 : index
      %c192 = arith.constant 192 : index
      %55 = vector.load %arg7[%c0_48, %c192] : memref<512x256xf32, #tpu.memory_space<vmem>>, vector<512x64xf32>
      %c3 = arith.constant 3 : index
      %c0_49 = arith.constant 0 : index
      %c0_50 = arith.constant 0 : index
      %56 = vector.load %arg3[%c3, %c0_49, %c0_50] : memref<4x128x512xf32, #tpu.memory_space<vmem>>, vector<1x128x512xf32>
      %57 = vector.shape_cast %56 : vector<1x128x512xf32> to vector<128x512xf32>
      %cst_51 = arith.constant dense<0.000000e+00> : vector<128x64xf32>
      %58 = tpu.matmul %57, %55, %cst_51 {dimension_numbers = #tpu.dot_dimension_numbers<[1], [0], [0], [1], [0, 0, 1, 1], [], []>} : vector<128x512xf32>, vector<512x64xf32>, vector<128x64xf32> -> vector<128x64xf32>
      %c3_52 = arith.constant 3 : index
      %c0_53 = arith.constant 0 : index
      %c0_54 = arith.constant 0 : index
      %59 = vector.load %arg4[%c3_52, %c0_53, %c0_54] : memref<4x128x1xf32, #tpu.memory_space<vmem>>, vector<1x128x1xf32>
      %60 = vector.shape_cast %59 : vector<1x128x1xf32> to vector<128x1xf32>
      %61 = vector.broadcast %60 : vector<128x1xf32> to vector<128x64xf32>
      %62 = arith.addf %58, %61 : vector<128x64xf32>
      %cst_55 = arith.constant 0.000000e+00 : f32
      %63 = vector.broadcast %cst_55 : f32 to vector<128x64xf32>
      %64 = arith.maximumf %62, %63 : vector<128x64xf32>
      %c0_56 = arith.constant 0 : index
      %c3_57 = arith.constant 3 : index
      %c0_58 = arith.constant 0 : index
      %c0_59 = arith.constant 0 : index
      %65 = vector.load %arg6[%c0_56, %c3_57, %c0_58, %c0_59] : memref<1x4x128x64xf32, #tpu.memory_space<vmem>>, vector<1x1x128x64xf32>
      %66 = vector.shape_cast %65 : vector<1x1x128x64xf32> to vector<128x64xf32>
      %67 = vector.shape_cast %64 : vector<128x64xf32> to vector<1x1x128x64xf32>
      tpu.vector_store %arg6[%c0_56, %c3_57, %c0_58, %c0_59], %67 {strides = array<i32>} : memref<1x4x128x64xf32, #tpu.memory_space<vmem>>, vector<1x1x128x64xf32>,
    } else {
    }
    return
  }
  func.func @transform_0(%arg0: i32, %arg1: i32) -> (i32, i32) {
    %c0_i32 = arith.constant 0 : i32
    %c0_i32_0 = arith.constant 0 : i32
    %c0_i32_1 = arith.constant 0 : i32
    return %c0_i32, %c0_i32_0 : i32, i32
  }
  func.func @transform_1(%arg0: i32, %arg1: i32) -> (i32, i32, i32) {
    %c0_i32 = arith.constant 0 : i32
    %c0_i32_0 = arith.constant 0 : i32
    %c0_i32_1 = arith.constant 0 : i32
    %c0_i32_2 = arith.constant 0 : i32
    return %c0_i32, %c0_i32_0, %c0_i32_1 : i32, i32, i32
  }
  func.func @transform_2(%arg0: i32, %arg1: i32) -> (i32, i32, i32) {
    %c0_i32 = arith.constant 0 : i32
    %c0_i32_0 = arith.constant 0 : i32
    %c0_i32_1 = arith.constant 0 : i32
    %c0_i32_2 = arith.constant 0 : i32
    return %c0_i32, %c0_i32_0, %c0_i32_1 : i32, i32, i32
  }
  func.func @transform_3(%arg0: i32, %arg1: i32) -> (i32, i32, i32) {
    %c0_i32 = arith.constant 0 : i32
    %c0_i32_0 = arith.constant 0 : i32
    return %arg0, %c0_i32, %arg1 : i32, i32, i32
  }
  func.func @transform_4(%arg0: i32, %arg1: i32) -> (i32, i32, i32, i32) {
    %c0_i32 = arith.constant 0 : i32
    %c0_i32_0 = arith.constant 0 : i32
    %c0_i32_1 = arith.constant 0 : i32
    %c0_i32_2 = arith.constant 0 : i32
    return %arg0, %c0_i32, %c0_i32_0, %c0_i32_1 : i32, i32, i32, i32
  }
}

</mosaic_0001>

<bundles_post_ra>
// kernel: tpu_custom_call.1
= control target key start
LH: loop header
LB: loop body
LE: loop exit
PB: predicated region body
PF: predicated region fallthrough
CT: control target
= control target key end

     0   :  { %9 = vsyncpa [#allocation4], 0  ;;  %s7695_s0 = inlined_call_operand.vmem [shape: f32[256,256], index: 0, kind: input, shape index: {}]   ;;  %s7696_s1 = inlined_call_operand.hbm [shape: f32[4,128,512], index: 1, kind: input, shape index: {}]   ;;  %s7697_s2 = inlined_call_operand.vmem [shape: f32[4,128,1], index: 2, kind: input, shape index: {}]   ;;  %s7698_s3 = inlined_call_operand.hbm [shape: f32[2,512,256], index: 3, kind: input, shape index: {}]   ;;  %s7699_s4 = inlined_call_operand.vmem [shape: f32[2,4,128,64], index: 4, kind: output, shape index: {}]  }
   0x1   :  { %10 = vsyncpa [#allocation6], 0 }
   0x2   :  { %12 = vsyncpa [#allocation6 + $0x1], 0  ;;  %s5844_s15 = smov 0   ;;  %s5846_s16 = smov 0  }
   0x3   :  { %s5848_s17 = smov 0   ;;  %s5850_s18 = smov 0  }
   0x4   :  { %s5852_s19 = smov 0   ;;  %s5854_s20 = smov 0  }
   0x5 LB: > { %s4214_s21 = sadd.s32 4294967295, %s5809_s20   ;;  %p115_p0 = scmp.ne.s32.totalorder %s5793_s16, %s5789_s15  ;;  %s5809_s20 = sphi %s5854_s20, %s18_s20   ;;  %s5805_s19 = sphi %s5852_s19, %s7835_s19   ;;  %s5801_s18 = sphi %s5850_s18, %s7834_s18   ;;  %s5797_s17 = sphi %s5848_s17, %s7833_s17   ;;  %s5793_s16 = sphi %s5846_s16, %s7832_s16   ;;  %s5789_s15 = sphi %s5844_s15, %s7831_s15  }
   0x6   : > { %p5874_p1 = scmp.eq.s32.totalorder %s4214_s21, 0  ;;  %p4216_p2 = scmp.ge.s32.totalorder %s5809_s20, 1 }
   0x7   : > { %p152_p3 = scmp.lt.s32.totalorder %s5809_s20, 3  ;;  %s5811_s25 = smov [#allocation3]  }
   0x8   : > { %s7729_s22 = scalar_select %p5874_p1, 1, 0 }
   0x9   : > { %p5882_p4 = por %p5874_p1, %p115_p0  ;;  %p5886_p5 = pnand %p4216_p2, %p152_p3 }
   0xa   : > { %s167_s26 = sshll.u32 %s5811_s25, 4  ;;  %s30_s28 = sadd.s32 1, %s5805_s19  ;;  %s168_s26 = int_to_ptr.vmem [resolvable:$true] %s167_s26 }
   0xb   : > { %s7730_s23 = scalar_select %p5882_p4, 1, 0 }
   0xc   : > { %s7731_s24 = scalar_select %p5886_p5, 1, 0 }
   0xd   : > { %p5309_p6 = pneg %p5886_p5  ;;  %s5697_s5 = scalar_lea.hbm %s7696_s1, 32768 }
   0xe   : > { %p5698_p8 = scmp.ne.s32.totalorder %s7696_s1, %s5697_s5  ;;  %p5704_p12 = scmp.lt.u32.totalorder %s5697_s5, %s7696_s1 }
   0xf   : > { %p5894_p7 = pnand %p5309_p6, %p5874_p1 }
  0x11   : > { %p5699_p9 = pneg %p5894_p7 }
  0x13   : > { %p5700_p10 = pnand %p5699_p9, %p5698_p8 }
  0x15   : > { %p5701_p11 = pneg %p5700_p10 }
  0x17   : > { %p5706_p13 = pnand %p5704_p12, %p5701_p11 }
  0x19   : > { %5709 = shalt.err (!%p5706_p13)
}
  0x1a   : > { %s5710_s10 = scalar_lea.vmem %s168_s26, 32768  ;;  %p5718_p6 = scmp.lt.s32.totalorder %s168_s26, %s168_s26 }
  0x1b   : > { %p5711_p0 = scmp.ne.s32.totalorder %s168_s26, %s5710_s10  ;;  %p5719_p4 = scmp.lt.s32.totalorder %s5710_s10, %s5710_s10 }
  0x1d   : > { %p5713_p2 = pnand %p5711_p0, %p5699_p9  ;;  %p5720_p1 = por %p5719_p4, %p5718_p6 }
  0x1f   : > { %p5714_p3 = pneg %p5713_p2 }
  0x21   : > { %p5721_p5 = pnand %p5720_p1, %p5714_p3 }
  0x23   : > { %5724 = shalt.err (!%p5721_p5)
}
  0x24   : > { %s5812_s11 = smov 512   ;;  %s5813_s12 = smov 32  }
  0x25   : > { %5312 = dma.hbm_to_vmem [thread:$0]  (!%p5894_p7), %s7696_s1, 32768, %s168_s26, [#allocation4], %s5812_s11, %s5812_s11, %s5813_s12  }
  0x26   : > { %p32_p4 = scmp.ge.s32.totalorder %s30_s28, 2  ;;  %s102_s15 = sadd.s32 1, %s5797_s17 }
  0x27   : > { %p109_p1 = scmp.ne.s32.totalorder %s5797_s17, %s5793_s16  ;;  %p110_p5 = scmp.eq.s32.totalorder %s5809_s20, 0 }
  0x28   : > { %s7837_s28 = smov (%p32_p4, %s30_s28), 0  ;;  %p5318_p9 = scmp.lt.s32.totalorder %s5809_s20, 2 }
  0x29   : > { %p111_p8 = por %p110_p5, %p109_p1  ;;  %s97_s21 = ssub.s32 %s5805_s19, %s7837_s28 }
  0x2a   : > { %s184_s25 = sand.u32 1, %s5797_s17   ;;  %p100_p10 = scmp.eq.s32.totalorder %s97_s21, 0 }
  0x2b   : > { %s4219_s29 = sshll.u32 %s184_s25, 10  ;;  %s4325_s30 = sshll.u32 %s5805_s19, 14 }
  0x2c   : > { %s5927_s5 = scalar_select %p100_p10, %s5797_s17, %s102_s15  }
  0x2d   : > { %s5932_s26 = scalar_lea.hbm %s7698_s3, %s4325_s30  ;;  %s188_s7 = scalar_lea.vmem [#allocation5], %s4219_s29 }
  0x2e   : > { %s197_s8 = sshll.u32 %s188_s7, 4  ;;  %p5934_p7 = pnand %p5318_p9, %p111_p8  ;;  %s5938_s8 = int_to_ptr.vmem [resolvable:$true] %s197_s8 }
  0x2f   : > { %s5940_s10 = scalar_lea.sflag [#allocation6], %s184_s25  ;;  %s5725_s11 = scalar_lea.hbm %s5932_s26, 16384 }
  0x30   : > { %p5726_p11 = scmp.ne.s32.totalorder %s5932_s26, %s5725_s11  ;;  %p5727_p12 = pneg %p5934_p7 }
  0x31   : > { %s5730_s14 = scalar_lea.hbm %s7698_s3, 32768  ;;  %p5731_p2 = scmp.lt.u32.totalorder %s5932_s26, %s7698_s3 }
  0x32   : > { %p5728_p13 = pnand %p5727_p12, %p5726_p11  ;;  %p5732_p3 = scmp.lt.u32.totalorder %s5730_s14, %s5725_s11 }
  0x33   : > { %p5734_p4 = scmp.lt.u32.totalorder %s5725_s11, %s5932_s26 }
  0x34   : > { %p5729_p0 = pneg %p5728_p13  ;;  %p5733_p6 = por %p5732_p3, %p5731_p2 }
  0x36   : > { %p5735_p1 = por %p5734_p4, %p5733_p6 }
  0x38   : > { %p5736_p5 = pnand %p5735_p1, %p5729_p0 }
  0x3a   : > { %5739 = shalt.err (!%p5736_p5)
}
  0x3b   : > { %s5740_s25 = scalar_lea.vmem %s5938_s8, 16384  ;;  %s5814_s29 = smov [#allocation5]  }
  0x3c   : > { %p5741_p8 = scmp.ne.s32.totalorder %s5938_s8, %s5740_s25  ;;  %s5745_s30 = sshll.u32 %s5814_s29, 4  ;;  %s5746_s30 = int_to_ptr.vmem [resolvable:$false] %s5745_s30 }
  0x3d   : > { %s5747_s27 = scalar_lea.vmem %s5746_s30, 32768  ;;  %p5748_p11 = scmp.lt.s32.totalorder %s5938_s8, %s5746_s30 }
  0x3e   : > { %p5743_p9 = pnand %p5741_p8, %p5727_p12  ;;  %p5749_p13 = scmp.lt.s32.totalorder %s5747_s27, %s5740_s25 }
  0x40   : > { %p5744_p10 = pneg %p5743_p9  ;;  %p5750_p2 = por %p5749_p13, %p5748_p11 }
  0x42   : > { %p5751_p3 = pnand %p5750_p2, %p5744_p10 }
  0x44   : > { %5754 = shalt.err (!%p5751_p3)
}
  0x45   : > { %s5815_s6 = smov 256   ;;  %s5816_s7 = smov 16  }
  0x46   : > { %5316 = dma.hbm_to_vmem [thread:$0]  (!%p5934_p7), %s5932_s26, 16384, %s5938_s8, %s5940_s10, %s5815_s6, %s5815_s6, %s5816_s7  }
  0x47   : > { %p7734_p12 = scmp.ne.s32.totalorder %s7731_s24, 0 }
  0x49   : > { %209 = sbr.rel (%p7734_p12) target bundleno = 1177 (0x499), region = 36 }
  0x50   : > { %p7735_p0 = scmp.ne.s32.totalorder %s7729_s22, 0 }
  0x52   : > { %5780 = dma.done.wait (%p7735_p0), [#allocation4], 32768  }
  0x53   : > { %5782 = vsyncadd (%p7735_p0), [#allocation4], 4294934528  ;;  %s215_s11 = sand.u32 1, %s5793_s16   ;;  %p7736_p6 = scmp.ne.s32.totalorder %s7730_s23, 0 }
  0x54   : > { %s4224_s12 = sshll.u32 %s215_s11, 10  ;;  %s216_s13 = scalar_lea.sflag [#allocation6], %s215_s11 }
  0x55   : > { %s5975_s14 = scalar_lea.vmem [#allocation5], %s4224_s12 }
  0x56   : > { %5784 = dma.done.wait (%p7736_p6), %s216_s13, 16384  }
  0x57   : > { %5786 = vsyncadd (%p7736_p6), %s216_s13, 4294950912  ;;  %v389_v0 = vld [vmem:[%s7695_s0 + $0x8] sm:$0xff]  ;;  %v391_v1 = vld [vmem:[%s7695_s0 + $0x18] sm:$0xff]  ;;  %p245_p7 = scmp.lt.s32.totalorder %s5801_s18, 1  ;;  %vm1946_vm0 = vcmask 523264  }
  0x58   : > { %v388_v2 = vld [vmem:[%s7695_s0] sm:$0xff]  ;;  %v4967_v3 = vpack.c.bf16 %v391_v1, %v389_v0  ;;  %v390_v4 = vld [vmem:[%s7695_s0 + $0x10] sm:$0xff]  ;;  %v393_v5 = vld [vmem:[%s7695_s0 + $0x28] sm:$0xff] }
  0x59   : > { %v395_v6 = vld [vmem:[%s7695_s0 + $0x38] sm:$0xff]  ;;  %v4969_v7 = vpack.c.bf16 %v390_v4, %v388_v2  ;;  %v392_v9 = vld [vmem:[%s7695_s0 + $0x20] sm:$0xff]  ;;  %v394_v10 = vld [vmem:[%s7695_s0 + $0x30] sm:$0xff]  ;;  %s7839_s18 = smov (!%p245_p7, %s5801_s18), 1 }
  0x5a   : > { %v4971_v8 = vpack.c.bf16 %v395_v6, %v393_v5  ;;  %v397_v11 = vld [vmem:[%s7695_s0 + $0x48] sm:$0xff]  ;;  %4968 = vmatprep.subr.bf16.mxu0 %v4967_v3  ;;  %v399_v12 = vld [vmem:[%s7695_s0 + $0x58] sm:$0xff]  ;;  %v4973_v13 = vpack.c.bf16 %v394_v10, %v392_v9  ;;  %v396_v15 = vld [vmem:[%s7695_s0 + $0x40] sm:$0xff]  ;;  %s4326_s12 = sshll.u32 %s7839_s18, 9 }
  0x5b   : > { %4970 = vmatpush1.bf16.msra.mxu0 %v4969_v7  ;;  %v4975_v14 = vpack.c.bf16 %v399_v12, %v397_v11  ;;  %v398_v16 = vld [vmem:[%s7695_s0 + $0x50] sm:$0xff]  ;;  %v401_v17 = vld [vmem:[%s7695_s0 + $0x68] sm:$0xff]  ;;  %v403_v18 = vld [vmem:[%s7695_s0 + $0x78] sm:$0xff]  ;;  %s7384_s18 = scalar_lea.vmem %s7699_s4, %s4326_s12 }
  0x5c   : > { %4972 = vmatprep.subr.bf16.mxu0 %v4971_v8  ;;  %v4977_v19 = vpack.c.bf16 %v398_v16, %v396_v15  ;;  %v4979_v20 = vpack.c.bf16 %v403_v18, %v401_v17  ;;  %v400_v21 = vld [vmem:[%s7695_s0 + $0x60] sm:$0xff]  ;;  %v402_v22 = vld [vmem:[%s7695_s0 + $0x70] sm:$0xff]  ;;  %v405_v23 = vld [vmem:[%s7695_s0 + $0x88] sm:$0xff] }
  0x5d   : > { %v407_v24 = vld [vmem:[%s7695_s0 + $0x98] sm:$0xff]  ;;  %v4981_v25 = vpack.c.bf16 %v402_v22, %v400_v21  ;;  %v404_v27 = vld [vmem:[%s7695_s0 + $0x80] sm:$0xff]  ;;  %v406_v28 = vld [vmem:[%s7695_s0 + $0x90] sm:$0xff] }
  0x5e   : > { %v4983_v26 = vpack.c.bf16 %v407_v24, %v405_v23  ;;  %v409_v29 = vld [vmem:[%s7695_s0 + $0xa8] sm:$0xff]  ;;  %v411_v30 = vld [vmem:[%s7695_s0 + $0xb8] sm:$0xff]  ;;  %v4985_v31 = vpack.c.bf16 %v406_v28, %v404_v27  ;;  %v408_v33 = vld [vmem:[%s7695_s0 + $0xa0] sm:$0xff] }
  0x5f   : > { %4974 = vmatpush1.bf16.msra.mxu0 %v4973_v13  ;;  %v4987_v32 = vpack.c.bf16 %v411_v30, %v409_v29  ;;  %v410_v34 = vld [vmem:[%s7695_s0 + $0xb0] sm:$0xff]  ;;  %v413_v35 = vld [vmem:[%s7695_s0 + $0xc8] sm:$0xff]  ;;  %v415_v36 = vld [vmem:[%s7695_s0 + $0xd8] sm:$0xff] }
  0x60   : > { %4976 = vmatprep.subr.bf16.mxu0 %v4975_v14  ;;  %v4989_v37 = vpack.c.bf16 %v410_v34, %v408_v33  ;;  %v4991_v38 = vpack.c.bf16 %v415_v36, %v413_v35  ;;  %v412_v39 = vld [vmem:[%s7695_s0 + $0xc0] sm:$0xff]  ;;  %v414_v40 = vld [vmem:[%s7695_s0 + $0xd0] sm:$0xff]  ;;  %v581_v41 = vld [vmem:[%s5975_s14 + $0x8] sm:$0xff] }
  0x61   : > { %v417_v42 = vld [vmem:[%s7695_s0 + $0xe8] sm:$0xff]  ;;  %v419_v43 = vld [vmem:[%s7695_s0 + $0xf8] sm:$0xff]  ;;  %772 = vmatprep.mubr.f32.mxu0 %v581_v41  ;;  %v4993_v44 = vpack.c.bf16 %v414_v40, %v412_v39  ;;  %v416_v46 = vld [vmem:[%s7695_s0 + $0xe0] sm:$0xff] }
  0x62   : > { %v4995_v45 = vpack.c.bf16 %v419_v43, %v417_v42  ;;  %v418_v47 = vld [vmem:[%s7695_s0 + $0xf0] sm:$0xff]  ;;  %v421_v48 = vld [vmem:[%s7695_s0 + $0x108] sm:$0xff]  ;;  %v423_v49 = vld [vmem:[%s7695_s0 + $0x118] sm:$0xff] }
  0x63   : > { %4978 = vmatpush1.bf16.msra.mxu0 %v4977_v19  ;;  %v4997_v50 = vpack.c.bf16 %v418_v47, %v416_v46  ;;  %v4999_v51 = vpack.c.bf16 %v423_v49, %v421_v48  ;;  %v420_v52 = vld [vmem:[%s7695_s0 + $0x100] sm:$0xff]  ;;  %v422_v53 = vld [vmem:[%s7695_s0 + $0x110] sm:$0xff]  ;;  %v425_v54 = vld [vmem:[%s7695_s0 + $0x128] sm:$0xff] }
  0x64   : > { %4980 = vmatprep.subr.bf16.mxu0 %v4979_v20  ;;  %v427_v55 = vld [vmem:[%s7695_s0 + $0x138] sm:$0xff]  ;;  %v5001_v56 = vpack.c.bf16 %v422_v53, %v420_v52  ;;  %v424_v58 = vld [vmem:[%s7695_s0 + $0x120] sm:$0xff]  ;;  %v426_v59 = vld [vmem:[%s7695_s0 + $0x130] sm:$0xff] }
  0x65   : > { %v5003_v57 = vpack.c.bf16 %v427_v55, %v425_v54  ;;  %v429_v60 = vld [vmem:[%s7695_s0 + $0x148] sm:$0xff]  ;;  %v431_v61 = vld [vmem:[%s7695_s0 + $0x158] sm:$0xff]  ;;  %v5005_v62 = vpack.c.bf16 %v426_v59, %v424_v58  ;;  %v428_v0 = vld [vmem:[%s7695_s0 + $0x140] sm:$0xff] }
  0x66   : > { %v5007_v63 = vpack.c.bf16 %v431_v61, %v429_v60  ;;  %v430_v1 = vld [vmem:[%s7695_s0 + $0x150] sm:$0xff]  ;;  %v433_v2 = vld [vmem:[%s7695_s0 + $0x168] sm:$0xff]  ;;  %v435_v3 = vld [vmem:[%s7695_s0 + $0x178] sm:$0xff] }
  0x67   : > { %4982 = vmatpush1.bf16.msra.mxu0 %v4981_v25  ;;  %v5009_v4 = vpack.c.bf16 %v430_v1, %v428_v0  ;;  %v5011_v5 = vpack.c.bf16 %v435_v3, %v433_v2  ;;  %v432_v6 = vld [vmem:[%s7695_s0 + $0x160] sm:$0xff]  ;;  %v434_v7 = vld [vmem:[%s7695_s0 + $0x170] sm:$0xff]  ;;  %v437_v8 = vld [vmem:[%s7695_s0 + $0x188] sm:$0xff] }
  0x68   : > { %4984 = vmatprep.subr.bf16.mxu0 %v4983_v26  ;;  %v439_v9 = vld [vmem:[%s7695_s0 + $0x198] sm:$0xff]  ;;  %v5013_v10 = vpack.c.bf16 %v434_v7, %v432_v6  ;;  %v436_v12 = vld [vmem:[%s7695_s0 + $0x180] sm:$0xff]  ;;  %v438_v13 = vld [vmem:[%s7695_s0 + $0x190] sm:$0xff] }
  0x69   : > { %v5015_v11 = vpack.c.bf16 %v439_v9, %v437_v8  ;;  %v441_v14 = vld [vmem:[%s7695_s0 + $0x1a8] sm:$0xff]  ;;  %v443_v15 = vld [vmem:[%s7695_s0 + $0x1b8] sm:$0xff]  ;;  %v5017_v16 = vpack.c.bf16 %v438_v13, %v436_v12  ;;  %v440_v18 = vld [vmem:[%s7695_s0 + $0x1a0] sm:$0xff] }
  0x6a   : > { %v5019_v17 = vpack.c.bf16 %v443_v15, %v441_v14  ;;  %v442_v19 = vld [vmem:[%s7695_s0 + $0x1b0] sm:$0xff]  ;;  %v445_v20 = vld [vmem:[%s7695_s0 + $0x1c8] sm:$0xff]  ;;  %v447_v21 = vld [vmem:[%s7695_s0 + $0x1d8] sm:$0xff] }
  0x6b   : > { %4986 = vmatpush1.bf16.msra.mxu0 %v4985_v31  ;;  %v5021_v22 = vpack.c.bf16 %v442_v19, %v440_v18  ;;  %v5023_v23 = vpack.c.bf16 %v447_v21, %v445_v20  ;;  %v444_v24 = vld [vmem:[%s7695_s0 + $0x1c0] sm:$0xff]  ;;  %v446_v25 = vld [vmem:[%s7695_s0 + $0x1d0] sm:$0xff]  ;;  %v449_v26 = vld [vmem:[%s7695_s0 + $0x1e8] sm:$0xff] }
  0x6c   : > { %4988 = vmatprep.subr.bf16.mxu0 %v4987_v32  ;;  %v451_v27 = vld [vmem:[%s7695_s0 + $0x1f8] sm:$0xff]  ;;  %v5025_v28 = vpack.c.bf16 %v446_v25, %v444_v24  ;;  %v448_v30 = vld [vmem:[%s7695_s0 + $0x1e0] sm:$0xff]  ;;  %v450_v31 = vld [vmem:[%s7695_s0 + $0x1f0] sm:$0xff] }
  0x6d   : > { %v5027_v29 = vpack.c.bf16 %v451_v27, %v449_v26  ;;  %v5029_v32 = vpack.c.bf16 %v450_v31, %v448_v30  ;;  %v580_v33 = vld [vmem:[%s5975_s14] sm:$0xff]  ;;  %v583_v34 = vld [vmem:[%s5975_s14 + $0x18] sm:$0xff]  ;;  %v582_v35 = vld [vmem:[%s5975_s14 + $0x10] sm:$0xff] }
  0x6e   : > { %v585_v36 = vld [vmem:[%s5975_s14 + $0x28] sm:$0xff]  ;;  %v586_v39 = vld [vmem:[%s5975_s14 + $0x30] sm:$0xff]  ;;  %v588_v41 = vld [vmem:[%s5975_s14 + $0x40] sm:$0xff] }
  0x6f   : > { %4990 = vmatpush1.bf16.msra.mxu0 %v4989_v37  ;;  %v584_v37 = vld [vmem:[%s5975_s14 + $0x20] sm:$0xff]  ;;  %v589_v40 = vld [vmem:[%s5975_s14 + $0x48] sm:$0xff]  ;;  %v591_v42 = vld [vmem:[%s5975_s14 + $0x58] sm:$0xff] }
  0x70   : > { %4992 = vmatprep.subr.bf16.mxu0 %v4991_v38  ;;  %v587_v38 = vld [vmem:[%s5975_s14 + $0x38] sm:$0xff]  ;;  %v590_v43 = vld [vmem:[%s5975_s14 + $0x50] sm:$0xff]  ;;  %v597_v48 = vld [vmem:[%s5975_s14 + $0x88] sm:$0xff] }
  0x71   : > { %v595_v46 = vld [vmem:[%s5975_s14 + $0x78] sm:$0xff]  ;;  %v594_v47 = vld [vmem:[%s5975_s14 + $0x70] sm:$0xff]  ;;  %v596_v49 = vld [vmem:[%s5975_s14 + $0x80] sm:$0xff] }
  0x72   : > { %v601_v52 = vld [vmem:[%s5975_s14 + $0xa8] sm:$0xff]  ;;  %v600_v53 = vld [vmem:[%s5975_s14 + $0xa0] sm:$0xff]  ;;  %v603_v54 = vld [vmem:[%s5975_s14 + $0xb8] sm:$0xff] }
  0x73   : > { %4994 = vmatpush1.bf16.msra.mxu0 %v4993_v44  ;;  %v593_v44 = vld [vmem:[%s5975_s14 + $0x68] sm:$0xff]  ;;  %v602_v55 = vld [vmem:[%s5975_s14 + $0xb0] sm:$0xff]  ;;  %v607_v58 = vld [vmem:[%s5975_s14 + $0xd8] sm:$0xff] }
  0x74   : > { %4996 = vmatprep.subr.bf16.mxu0 %v4995_v45  ;;  %v592_v45 = vld [vmem:[%s5975_s14 + $0x60] sm:$0xff]  ;;  %v606_v59 = vld [vmem:[%s5975_s14 + $0xd0] sm:$0xff]  ;;  %v609_v60 = vld [vmem:[%s5975_s14 + $0xe8] sm:$0xff] }
  0x75   : > { %v608_v61 = vld [vmem:[%s5975_s14 + $0xe0] sm:$0xff]  ;;  %v613_v0 = vld [vmem:[%s5975_s14 + $0x108] sm:$0xff]  ;;  %v615_v2 = vld [vmem:[%s5975_s14 + $0x118] sm:$0xff] }
  0x76   : > { %v612_v1 = vld [vmem:[%s5975_s14 + $0x100] sm:$0xff]  ;;  %v614_v3 = vld [vmem:[%s5975_s14 + $0x110] sm:$0xff]  ;;  %v619_v6 = vld [vmem:[%s5975_s14 + $0x138] sm:$0xff] }
  0x77   : > { %4998 = vmatpush1.bf16.msra.mxu0 %v4997_v50  ;;  %v599_v50 = vld [vmem:[%s5975_s14 + $0x98] sm:$0xff]  ;;  %v618_v7 = vld [vmem:[%s5975_s14 + $0x130] sm:$0xff]  ;;  %v621_v8 = vld [vmem:[%s5975_s14 + $0x148] sm:$0xff] }
  0x78   : > { %5000 = vmatprep.subr.bf16.mxu0 %v4999_v51  ;;  %v598_v51 = vld [vmem:[%s5975_s14 + $0x90] sm:$0xff]  ;;  %v620_v9 = vld [vmem:[%s5975_s14 + $0x140] sm:$0xff]  ;;  %v625_v12 = vld [vmem:[%s5975_s14 + $0x168] sm:$0xff] }
  0x79   : > { %v624_v13 = vld [vmem:[%s5975_s14 + $0x160] sm:$0xff]  ;;  %v627_v14 = vld [vmem:[%s5975_s14 + $0x178] sm:$0xff]  ;;  %v626_v15 = vld [vmem:[%s5975_s14 + $0x170] sm:$0xff] }
  0x7a   : > { %v631_v18 = vld [vmem:[%s5975_s14 + $0x198] sm:$0xff]  ;;  %v630_v19 = vld [vmem:[%s5975_s14 + $0x190] sm:$0xff]  ;;  %v633_v20 = vld [vmem:[%s5975_s14 + $0x1a8] sm:$0xff] }
  0x7b   : > { %5002 = vmatpush1.bf16.msra.mxu0 %v5001_v56  ;;  %v605_v56 = vld [vmem:[%s5975_s14 + $0xc8] sm:$0xff]  ;;  %v632_v21 = vld [vmem:[%s5975_s14 + $0x1a0] sm:$0xff]  ;;  %v639_v26 = vld [vmem:[%s5975_s14 + $0x1d8] sm:$0xff] }
  0x7c   : > { %5004 = vmatprep.subr.bf16.mxu0 %v5003_v57  ;;  %v604_v57 = vld [vmem:[%s5975_s14 + $0xc0] sm:$0xff]  ;;  %v637_v24 = vld [vmem:[%s5975_s14 + $0x1c8] sm:$0xff]  ;;  %v638_v27 = vld [vmem:[%s5975_s14 + $0x1d0] sm:$0xff] }
  0x7d   : > { %v636_v25 = vld [vmem:[%s5975_s14 + $0x1c0] sm:$0xff]  ;;  %v643_v30 = vld [vmem:[%s5975_s14 + $0x1f8] sm:$0xff]  ;;  %v642_v31 = vld [vmem:[%s5975_s14 + $0x1f0] sm:$0xff] }
  0x7f   : > { %5006 = vmatpush1.bf16.msra.mxu0 %v5005_v62  ;;  %v611_v62 = vld [vmem:[%s5975_s14 + $0xf8] sm:$0xff] }
  0x80   : > { %5008 = vmatprep.subr.bf16.mxu0 %v5007_v63  ;;  %v610_v63 = vld [vmem:[%s5975_s14 + $0xf0] sm:$0xff] }
  0x83   : > { %5010 = vmatpush1.bf16.msra.mxu0 %v5009_v4  ;;  %v617_v4 = vld [vmem:[%s5975_s14 + $0x128] sm:$0xff] }
  0x84   : > { %5012 = vmatprep.subr.bf16.mxu0 %v5011_v5  ;;  %v616_v5 = vld [vmem:[%s5975_s14 + $0x120] sm:$0xff] }
  0x87   : > { %5014 = vmatpush1.bf16.msra.mxu0 %v5013_v10  ;;  %v623_v10 = vld [vmem:[%s5975_s14 + $0x158] sm:$0xff] }
  0x88   : > { %5016 = vmatprep.subr.bf16.mxu0 %v5015_v11  ;;  %v622_v11 = vld [vmem:[%s5975_s14 + $0x150] sm:$0xff] }
  0x8b   : > { %5018 = vmatpush1.bf16.msra.mxu0 %v5017_v16  ;;  %v629_v16 = vld [vmem:[%s5975_s14 + $0x188] sm:$0xff] }
  0x8c   : > { %5020 = vmatprep.subr.bf16.mxu0 %v5019_v17  ;;  %v628_v17 = vld [vmem:[%s5975_s14 + $0x180] sm:$0xff] }
  0x8f   : > { %5022 = vmatpush1.bf16.msra.mxu0 %v5021_v22  ;;  %v635_v22 = vld [vmem:[%s5975_s14 + $0x1b8] sm:$0xff] }
  0x90   : > { %5024 = vmatprep.subr.bf16.mxu0 %v5023_v23  ;;  %v634_v23 = vld [vmem:[%s5975_s14 + $0x1b0] sm:$0xff] }
  0x93   : > { %5026 = vmatpush1.bf16.msra.mxu0 %v5025_v28  ;;  %v641_v28 = vld [vmem:[%s5975_s14 + $0x1e8] sm:$0xff] }
  0x94   : > { %5028 = vmatprep.subr.bf16.mxu0 %v5027_v29  ;;  %v640_v29 = vld [vmem:[%s5975_s14 + $0x1e0] sm:$0xff] }
  0x97   : > { %5030 = vmatpush1.bf16.msra.mxu0 %v5029_v32  ;;  %v645_v32 = vld [vmem:[%s5975_s14 + $0x208] sm:$0xff] }
  0x9a   : > { %773 = vmatmul.mubr.f32.vlgmr.msra.gmra.mrb[0].mxu0 %v580_v33  ;;  %v644_v33 = vld [vmem:[%s5975_s14 + $0x200] sm:$0xff] }
  0x9b   : > { %778 = vmatprep.mubr.f32.mxu0 %v583_v34  ;;  %v647_v34 = vld [vmem:[%s5975_s14 + $0x218] sm:$0xff] }
  0x9e   : > { %779 = vmatmul.mubr.f32.gmra.mrb[2].mxu0 %v582_v35  ;;  %v646_v35 = vld [vmem:[%s5975_s14 + $0x210] sm:$0xff] }
  0x9f   : > { %784 = vmatprep.mubr.f32.mxu0 %v585_v36  ;;  %v649_v36 = vld [vmem:[%s5975_s14 + $0x228] sm:$0xff] }
  0xa2   : > { %785 = vmatmul.mubr.f32.gmra.mrb[4].mxu0 %v584_v37  ;;  %v648_v37 = vld [vmem:[%s5975_s14 + $0x220] sm:$0xff] }
  0xa3   : > { %790 = vmatprep.mubr.f32.mxu0 %v587_v38  ;;  %v651_v38 = vld [vmem:[%s5975_s14 + $0x238] sm:$0xff] }
  0xa6   : > { %791 = vmatmul.mubr.f32.gmra.mrb[6].mxu0 %v586_v39  ;;  %v650_v39 = vld [vmem:[%s5975_s14 + $0x230] sm:$0xff] }
  0xa7   : > { %796 = vmatprep.mubr.f32.mxu0 %v589_v40  ;;  %v653_v40 = vld [vmem:[%s5975_s14 + $0x248] sm:$0xff] }
  0xaa   : > { %797 = vmatmul.mubr.f32.gmra.mrb[8].mxu0 %v588_v41  ;;  %v652_v41 = vld [vmem:[%s5975_s14 + $0x240] sm:$0xff] }
  0xab   : > { %802 = vmatprep.mubr.f32.mxu0 %v591_v42  ;;  %v655_v42 = vld [vmem:[%s5975_s14 + $0x258] sm:$0xff] }
  0xae   : > { %803 = vmatmul.mubr.f32.gmra.mrb[10].mxu0 %v590_v43  ;;  %v654_v43 = vld [vmem:[%s5975_s14 + $0x250] sm:$0xff] }
  0xaf   : > { %808 = vmatprep.mubr.f32.mxu0 %v593_v44  ;;  %v657_v44 = vld [vmem:[%s5975_s14 + $0x268] sm:$0xff] }
  0xb2   : > { %809 = vmatmul.mubr.f32.gmra.mrb[12].mxu0 %v592_v45  ;;  %v656_v45 = vld [vmem:[%s5975_s14 + $0x260] sm:$0xff] }
  0xb3   : > { %814 = vmatprep.mubr.f32.mxu0 %v595_v46  ;;  %v659_v46 = vld [vmem:[%s5975_s14 + $0x278] sm:$0xff] }
  0xb6   : > { %815 = vmatmul.mubr.f32.gmra.mrb[14].mxu0 %v594_v47  ;;  %v658_v47 = vld [vmem:[%s5975_s14 + $0x270] sm:$0xff] }
  0xb7   : > { %820 = vmatprep.mubr.f32.mxu0 %v597_v48  ;;  %v661_v48 = vld [vmem:[%s5975_s14 + $0x288] sm:$0xff] }
  0xba   : > { %821 = vmatmul.mubr.f32.gmra.mrb[16].mxu0 %v596_v49  ;;  %v660_v49 = vld [vmem:[%s5975_s14 + $0x280] sm:$0xff] }
  0xbb   : > { %826 = vmatprep.mubr.f32.mxu0 %v599_v50  ;;  %v663_v50 = vld [vmem:[%s5975_s14 + $0x298] sm:$0xff] }
  0xbe   : > { %827 = vmatmul.mubr.f32.gmra.mrb[18].mxu0 %v598_v51  ;;  %v662_v51 = vld [vmem:[%s5975_s14 + $0x290] sm:$0xff] }
  0xbf   : > { %832 = vmatprep.mubr.f32.mxu0 %v601_v52  ;;  %v665_v52 = vld [vmem:[%s5975_s14 + $0x2a8] sm:$0xff] }
  0xc2   : > { %833 = vmatmul.mubr.f32.gmra.mrb[20].mxu0 %v600_v53  ;;  %v664_v53 = vld [vmem:[%s5975_s14 + $0x2a0] sm:$0xff] }
  0xc3   : > { %838 = vmatprep.mubr.f32.mxu0 %v603_v54  ;;  %v667_v54 = vld [vmem:[%s5975_s14 + $0x2b8] sm:$0xff] }
  0xc6   : > { %839 = vmatmul.mubr.f32.gmra.mrb[22].mxu0 %v602_v55  ;;  %v666_v55 = vld [vmem:[%s5975_s14 + $0x2b0] sm:$0xff] }
  0xc7   : > { %844 = vmatprep.mubr.f32.mxu0 %v605_v56  ;;  %v669_v56 = vld [vmem:[%s5975_s14 + $0x2c8] sm:$0xff] }
  0xca   : > { %845 = vmatmul.mubr.f32.gmra.mrb[24].mxu0 %v604_v57  ;;  %v668_v57 = vld [vmem:[%s5975_s14 + $0x2c0] sm:$0xff] }
  0xcb   : > { %850 = vmatprep.mubr.f32.mxu0 %v607_v58  ;;  %v671_v58 = vld [vmem:[%s5975_s14 + $0x2d8] sm:$0xff] }
  0xce   : > { %851 = vmatmul.mubr.f32.gmra.mrb[26].mxu0 %v606_v59  ;;  %v670_v59 = vld [vmem:[%s5975_s14 + $0x2d0] sm:$0xff] }
  0xcf   : > { %856 = vmatprep.mubr.f32.mxu0 %v609_v60  ;;  %v673_v60 = vld [vmem:[%s5975_s14 + $0x2e8] sm:$0xff] }
  0xd2   : > { %857 = vmatmul.mubr.f32.gmra.mrb[28].mxu0 %v608_v61  ;;  %v672_v61 = vld [vmem:[%s5975_s14 + $0x2e0] sm:$0xff] }
  0xd3   : > { %862 = vmatprep.mubr.f32.mxu0 %v611_v62  ;;  %v675_v62 = vld [vmem:[%s5975_s14 + $0x2f8] sm:$0xff] }
  0xd6   : > { %863 = vmatmul.mubr.f32.gmra.mrb[30].mxu0 %v610_v63  ;;  %v674_v63 = vld [vmem:[%s5975_s14 + $0x2f0] sm:$0xff] }
  0xd7   : > { %868 = vmatprep.mubr.f32.mxu0 %v613_v0  ;;  %v677_v0 = vld [vmem:[%s5975_s14 + $0x308] sm:$0xff] }
  0xda   : > { %869 = vmatmul.mubr.f32.gmra.mrb[32].mxu0 %v612_v1  ;;  %v676_v1 = vld [vmem:[%s5975_s14 + $0x300] sm:$0xff] }
  0xdb   : > { %874 = vmatprep.mubr.f32.mxu0 %v615_v2  ;;  %v679_v2 = vld [vmem:[%s5975_s14 + $0x318] sm:$0xff] }
  0xde   : > { %875 = vmatmul.mubr.f32.gmra.mrb[34].mxu0 %v614_v3  ;;  %v678_v3 = vld [vmem:[%s5975_s14 + $0x310] sm:$0xff] }
  0xdf   : > { %880 = vmatprep.mubr.f32.mxu0 %v617_v4  ;;  %v681_v4 = vld [vmem:[%s5975_s14 + $0x328] sm:$0xff] }
  0xe2   : > { %881 = vmatmul.mubr.f32.gmra.mrb[36].mxu0 %v616_v5  ;;  %v680_v5 = vld [vmem:[%s5975_s14 + $0x320] sm:$0xff] }
  0xe3   : > { %886 = vmatprep.mubr.f32.mxu0 %v619_v6  ;;  %v683_v6 = vld [vmem:[%s5975_s14 + $0x338] sm:$0xff] }
  0xe6   : > { %887 = vmatmul.mubr.f32.gmra.mrb[38].mxu0 %v618_v7  ;;  %v682_v7 = vld [vmem:[%s5975_s14 + $0x330] sm:$0xff] }
  0xe7   : > { %892 = vmatprep.mubr.f32.mxu0 %v621_v8  ;;  %v685_v8 = vld [vmem:[%s5975_s14 + $0x348] sm:$0xff] }
  0xea   : > { %893 = vmatmul.mubr.f32.gmra.mrb[40].mxu0 %v620_v9  ;;  %v684_v9 = vld [vmem:[%s5975_s14 + $0x340] sm:$0xff] }
  0xeb   : > { %898 = vmatprep.mubr.f32.mxu0 %v623_v10  ;;  %v687_v10 = vld [vmem:[%s5975_s14 + $0x358] sm:$0xff] }
  0xee   : > { %899 = vmatmul.mubr.f32.gmra.mrb[42].mxu0 %v622_v11  ;;  %v686_v11 = vld [vmem:[%s5975_s14 + $0x350] sm:$0xff] }
  0xef   : > { %904 = vmatprep.mubr.f32.mxu0 %v625_v12  ;;  %v689_v12 = vld [vmem:[%s5975_s14 + $0x368] sm:$0xff] }
  0xf2   : > { %905 = vmatmul.mubr.f32.gmra.mrb[44].mxu0 %v624_v13 }
  0xf3   : > { %910 = vmatprep.mubr.f32.mxu0 %v627_v14 }
  0xf6   : > { %911 = vmatmul.mubr.f32.gmra.mrb[46].mxu0 %v626_v15  ;;  %v688_v15 = vld [vmem:[%s5975_s14 + $0x360] sm:$0xff] }
  0xf7   : > { %916 = vmatprep.mubr.f32.mxu0 %v629_v16  ;;  %v691_v16 = vld [vmem:[%s5975_s14 + $0x378] sm:$0xff] }
  0xfa   : > { %917 = vmatmul.mubr.f32.gmra.mrb[48].mxu0 %v628_v17 }
  0xfb   : > { %922 = vmatprep.mubr.f32.mxu0 %v631_v18 }
  0xfe   : > { %923 = vmatmul.mubr.f32.gmra.mrb[50].mxu0 %v630_v19 }
  0xff   : > { %928 = vmatprep.mubr.f32.mxu0 %v633_v20 }
 0x102   : > { %929 = vmatmul.mubr.f32.gmra.mrb[52].mxu0 %v632_v21 }
 0x103   : > { %934 = vmatprep.mubr.f32.mxu0 %v635_v22 }
 0x106   : > { %935 = vmatmul.mubr.f32.gmra.mrb[54].mxu0 %v634_v23  ;;  %v690_v23 = vld [vmem:[%s5975_s14 + $0x370] sm:$0xff] }
 0x107   : > { %940 = vmatprep.mubr.f32.mxu0 %v637_v24  ;;  %v693_v24 = vld [vmem:[%s5975_s14 + $0x388] sm:$0xff] }
 0x10a   : > { %941 = vmatmul.mubr.f32.gmra.mrb[56].mxu0 %v636_v25 }
 0x10b   : > { %946 = vmatprep.mubr.f32.mxu0 %v639_v26 }
 0x10e   : > { %947 = vmatmul.mubr.f32.gmra.mrb[58].mxu0 %v638_v27  ;;  %v692_v27 = vld [vmem:[%s5975_s14 + $0x380] sm:$0xff] }
 0x10f   : > { %952 = vmatprep.mubr.f32.mxu0 %v641_v28  ;;  %v695_v28 = vld [vmem:[%s5975_s14 + $0x398] sm:$0xff] }
 0x112   : > { %953 = vmatmul.mubr.f32.gmra.mrb[60].mxu0 %v640_v29 }
 0x113   : > { %958 = vmatprep.mubr.f32.mxu0 %v643_v30 }
 0x116   : > { %959 = vmatmul.mubr.f32.gmra.mrb[62].mxu0 %v642_v31 }
 0x117   : > { %964 = vmatprep.mubr.f32.mxu0 %v645_v32 }
 0x11a   : > { %965 = vmatmul.mubr.f32.gmra.mrb[64].mxu0 %v644_v33  ;;  %v1524_v33 = vld [vmem:[#allocation3 + $0x160] sm:$0xff] }
 0x11b   : > { %970 = vmatprep.mubr.f32.mxu0 %v647_v34 }
 0x11e   : > { %971 = vmatmul.mubr.f32.gmra.mrb[66].mxu0 %v646_v35  ;;  %v694_v35 = vld [vmem:[%s5975_s14 + $0x390] sm:$0xff] }
 0x11f   : > { %976 = vmatprep.mubr.f32.mxu0 %v649_v36  ;;  %v697_v36 = vld [vmem:[%s5975_s14 + $0x3a8] sm:$0xff] }
 0x122   : > { %977 = vmatmul.mubr.f32.gmra.mrb[68].mxu0 %v648_v37 }
 0x123   : > { %982 = vmatprep.mubr.f32.mxu0 %v651_v38 }
 0x126   : > { %983 = vmatmul.mubr.f32.gmra.mrb[70].mxu0 %v650_v39  ;;  %v696_v39 = vld [vmem:[%s5975_s14 + $0x3a0] sm:$0xff] }
 0x127   : > { %988 = vmatprep.mubr.f32.mxu0 %v653_v40  ;;  %v699_v40 = vld [vmem:[%s5975_s14 + $0x3b8] sm:$0xff] }
 0x12a   : > { %989 = vmatmul.mubr.f32.gmra.mrb[72].mxu0 %v652_v41 }
 0x12b   : > { %994 = vmatprep.mubr.f32.mxu0 %v655_v42 }
 0x12e   : > { %995 = vmatmul.mubr.f32.gmra.mrb[74].mxu0 %v654_v43 }
 0x12f   : > { %1000 = vmatprep.mubr.f32.mxu0 %v657_v44 }
 0x132   : > { %1001 = vmatmul.mubr.f32.gmra.mrb[76].mxu0 %v656_v45 }
 0x133   : > { %1006 = vmatprep.mubr.f32.mxu0 %v659_v46 }
 0x136   : > { %1007 = vmatmul.mubr.f32.gmra.mrb[78].mxu0 %v658_v47  ;;  %v698_v47 = vld [vmem:[%s5975_s14 + $0x3b0] sm:$0xff] }
 0x137   : > { %1012 = vmatprep.mubr.f32.mxu0 %v661_v48  ;;  %v701_v48 = vld [vmem:[%s5975_s14 + $0x3c8] sm:$0xff] }
 0x13a   : > { %1013 = vmatmul.mubr.f32.gmra.mrb[80].mxu0 %v660_v49 }
 0x13b   : > { %1018 = vmatprep.mubr.f32.mxu0 %v663_v50 }
 0x13e   : > { %1019 = vmatmul.mubr.f32.gmra.mrb[82].mxu0 %v662_v51  ;;  %v700_v51 = vld [vmem:[%s5975_s14 + $0x3c0] sm:$0xff] }
 0x13f   : > { %1024 = vmatprep.mubr.f32.mxu0 %v665_v52  ;;  %v703_v52 = vld [vmem:[%s5975_s14 + $0x3d8] sm:$0xff] }
 0x142   : > { %1025 = vmatmul.mubr.f32.gmra.mrb[84].mxu0 %v664_v53 }
 0x143   : > { %1030 = vmatprep.mubr.f32.mxu0 %v667_v54 }
 0x146   : > { %1031 = vmatmul.mubr.f32.gmra.mrb[86].mxu0 %v666_v55 }
 0x147   : > { %1036 = vmatprep.mubr.f32.mxu0 %v669_v56 }
 0x14a   : > { %1037 = vmatmul.mubr.f32.gmra.mrb[88].mxu0 %v668_v57 }
 0x14b   : > { %1042 = vmatprep.mubr.f32.mxu0 %v671_v58 }
 0x14e   : > { %1043 = vmatmul.mubr.f32.gmra.mrb[90].mxu0 %v670_v59  ;;  %v702_v59 = vld [vmem:[%s5975_s14 + $0x3d0] sm:$0xff] }
 0x14f   : > { %1048 = vmatprep.mubr.f32.mxu0 %v673_v60  ;;  %v705_v60 = vld [vmem:[%s5975_s14 + $0x3e8] sm:$0xff] }
 0x152   : > { %1049 = vmatmul.mubr.f32.gmra.mrb[92].mxu0 %v672_v61 }
 0x153   : > { %1054 = vmatprep.mubr.f32.mxu0 %v675_v62 }
 0x156   : > { %1055 = vmatmul.mubr.f32.gmra.mrb[94].mxu0 %v674_v63  ;;  %v704_v63 = vld [vmem:[%s5975_s14 + $0x3e0] sm:$0xff] }
 0x157   : > { %1060 = vmatprep.mubr.f32.mxu0 %v677_v0  ;;  %v707_v0 = vld [vmem:[%s5975_s14 + $0x3f8] sm:$0xff] }
 0x15a   : > { %1061 = vmatmul.mubr.f32.gmra.mrb[96].mxu0 %v676_v1 }
 0x15b   : > { %1066 = vmatprep.mubr.f32.mxu0 %v679_v2 }
 0x15e   : > { %1067 = vmatmul.mubr.f32.gmra.mrb[98].mxu0 %v678_v3 }
 0x15f   : > { %1072 = vmatprep.mubr.f32.mxu0 %v681_v4 }
 0x162   : > { %1073 = vmatmul.mubr.f32.gmra.mrb[100].mxu0 %v680_v5  ;;  %v5818_v5 = vmov 0  }
 0x163   : > { %1078 = vmatprep.mubr.f32.mxu0 %v683_v6  ;;  %v1481_v6 = vld [vmem:[#allocation3 + $0x8] sm:$0xff]  ;;  %5696 = vset.pattern.permute.xlu1 %v5818_v5 }
 0x164   : > { %1704 = vmatprep.mubr.f32.mxu1 %v1481_v6  ;;  %5695 = vset.pattern.permute.xlu0 %v5818_v5  ;;  %v1516_v5 = vld [vmem:[#allocation3 + $0x120] sm:$0xff] }
 0x166   : > { %1079 = vmatmul.mubr.f32.gmra.mrb[102].mxu0 %v682_v7  ;;  %v706_v7 = vld [vmem:[%s5975_s14 + $0x3f0] sm:$0xff]  ;;  %s5817_s14 = smov 64  }
 0x167   : > { %1084 = vmatprep.mubr.f32.mxu0 %v685_v8 }
 0x16a   : > { %1085 = vmatmul.mubr.f32.gmra.mrb[104].mxu0 %v684_v9 }
 0x16b   : > { %1090 = vmatprep.mubr.f32.mxu0 %v687_v10 }
 0x16d   : > { %v6282_v13 = vpop.f32.mrb[0].mxu0 }
 0x16e   : > { %v6284_v14 = vpop.f32.mrb[1].mxu0  ;;  %1091 = vmatmul.mubr.f32.gmra.mrb[106].mxu0 %v686_v11 }
 0x16f   : > { %1096 = vmatprep.mubr.f32.mxu0 %v689_v12 }
 0x171   : > { %v6288_v17 = vpop.f32.mrb[2].mxu0 }
 0x172   : > { %v5380_v18 = vpack.i.bf16 %v6288_v17, %v6282_v13  ;;  %v6292_v19 = vpop.f32.mrb[3].mxu0  ;;  %1097 = vmatmul.mubr.f32.gmra.mrb[108].mxu0 %v688_v15  ;;  %v5033_v20 = vpack.c.bf16 %v6288_v17, %v6282_v13 }
 0x173   : > { %1102 = vmatprep.mubr.f32.mxu0 %v691_v16 }
 0x175   : > { %v6302_v25 = vpop.f32.mrb[4].mxu0 }
 0x176   : > { %v6304_v26 = vpop.f32.mrb[5].mxu0  ;;  %1103 = vmatmul.mubr.f32.gmra.mrb[110].mxu0 %v690_v23 }
 0x177   : > { %1108 = vmatprep.mubr.f32.mxu0 %v693_v24 }
 0x179   : > { %v6308_v29 = vpop.f32.mrb[6].mxu0 }
 0x17a   : > { %v5390_v30 = vpack.i.bf16 %v6308_v29, %v6302_v25  ;;  %v5037_v31 = vpack.c.bf16 %v6308_v29, %v6302_v25  ;;  %v6314_v32 = vpop.f32.mrb[7].mxu0  ;;  %1109 = vmatmul.mubr.f32.gmra.mrb[112].mxu0 %v692_v27 }
 0x17b   : > { %1114 = vmatprep.mubr.f32.mxu0 %v695_v28 }
 0x17d   : > { %v6322_v37 = vpop.f32.mrb[8].mxu0 }
 0x17e   : > { %v6324_v38 = vpop.f32.mrb[9].mxu0  ;;  %1115 = vmatmul.mubr.f32.gmra.mrb[114].mxu0 %v694_v35 }
 0x17f   : > { %1120 = vmatprep.mubr.f32.mxu0 %v697_v36 }
 0x181   : > { %v6328_v41 = vpop.f32.mrb[10].mxu0 }
 0x182   : > { %v5395_v42 = vpack.i.bf16 %v6328_v41, %v6322_v37  ;;  %v5041_v43 = vpack.c.bf16 %v6328_v41, %v6322_v37  ;;  %v6334_v44 = vpop.f32.mrb[11].mxu0  ;;  %1121 = vmatmul.mubr.f32.gmra.mrb[116].mxu0 %v696_v39 }
 0x183   : > { %1126 = vmatprep.mubr.f32.mxu0 %v699_v40 }
 0x185   : > { %v6342_v49 = vpop.f32.mrb[12].mxu0 }
 0x186   : > { %v6344_v50 = vpop.f32.mrb[13].mxu0  ;;  %1127 = vmatmul.mubr.f32.gmra.mrb[118].mxu0 %v698_v47 }
 0x187   : > { %1132 = vmatprep.mubr.f32.mxu0 %v701_v48 }
 0x189   : > { %v6348_v53 = vpop.f32.mrb[14].mxu0 }
 0x18a   : > { %v5400_v54 = vpack.i.bf16 %v6348_v53, %v6342_v49  ;;  %v5045_v55 = vpack.c.bf16 %v6348_v53, %v6342_v49  ;;  %v6354_v56 = vpop.f32.mrb[15].mxu0  ;;  %1133 = vmatmul.mubr.f32.gmra.mrb[120].mxu0 %v700_v51 }
 0x18b   : > { %1138 = vmatprep.mubr.f32.mxu0 %v703_v52 }
 0x18d   : > { %v6362_v61 = vpop.f32.mrb[16].mxu0 }
 0x18e   : > { %v6364_v62 = vpop.f32.mrb[17].mxu0  ;;  %1139 = vmatmul.mubr.f32.gmra.mrb[122].mxu0 %v702_v59 }
 0x18f   : > { %1144 = vmatprep.mubr.f32.mxu0 %v705_v60 }
 0x191   : > { %v6368_v1 = vpop.f32.mrb[18].mxu0 }
 0x192   : > { %v5405_v2 = vpack.i.bf16 %v6368_v1, %v6362_v61  ;;  %v5049_v3 = vpack.c.bf16 %v6368_v1, %v6362_v61  ;;  %v6374_v4 = vpop.f32.mrb[19].mxu0  ;;  %1145 = vmatmul.mubr.f32.gmra.mrb[124].mxu0 %v704_v63 }
 0x193   : > { %1150 = vmatprep.mubr.f32.mxu0 %v707_v0 }
 0x195   : > { %v6381_v8 = vpop.f32.mrb[20].mxu0 }
 0x196   : > { %v6383_v9 = vpop.f32.mrb[21].mxu0  ;;  %1151 = vmatmul.mubr.f32.gmra.mrb[126].mxu0 %v706_v7 }
 0x199   : > { %v6385_v10 = vpop.f32.mrb[22].mxu0 }
 0x19a   : > { %v5410_v11 = vpack.i.bf16 %v6385_v10, %v6381_v8  ;;  %v5053_v12 = vpack.c.bf16 %v6385_v10, %v6381_v8  ;;  %v6391_v15 = vpop.f32.mrb[23].mxu0 }
 0x19d   : > { %v6397_v24 = vpop.f32.mrb[24].mxu0 }
 0x19e   : > { %v6399_v27 = vpop.f32.mrb[25].mxu0 }
 0x1a1   : > { %v6401_v28 = vpop.f32.mrb[26].mxu0 }
 0x1a2   : > { %v5415_v35 = vpack.i.bf16 %v6401_v28, %v6397_v24  ;;  %v5057_v36 = vpack.c.bf16 %v6401_v28, %v6397_v24  ;;  %v6407_v39 = vpop.f32.mrb[27].mxu0  ;;  %v1480_v24 = vld [vmem:[#allocation3] sm:$0xff] }
 0x1a5   : > { %v6413_v48 = vpop.f32.mrb[28].mxu0 }
 0x1a6   : > { %v6415_v51 = vpop.f32.mrb[29].mxu0 }
 0x1a7   : > { %7737 = vst [vmem:[#allocation9_spill] sm:$0xff] %v6415_v51 }
 0x1a9   : > { %v6417_v52 = vpop.f32.mrb[30].mxu0 }
 0x1aa   : > { %v5450_v59 = vpack.i.bf16 %v6417_v52, %v6413_v48  ;;  %v5061_v60 = vpack.c.bf16 %v6417_v52, %v6413_v48  ;;  %v6423_v63 = vpop.f32.mrb[31].mxu0  ;;  %v1509_v48 = vld [vmem:[#allocation3 + $0xe8] sm:$0xff] }
 0x1ad   : > { %v870_v47 = vpop.f32.mrb[32].mxu0 }
 0x1ae   : > { %v6429_v23 = vpop.f32.mrb[33].mxu0 }
 0x1b1   : > { %v876_v58 = vpop.f32.mrb[34].mxu0 }
 0x1b2   : > { %v6431_v46 = vpop.f32.mrb[35].mxu0  ;;  %v5375_v34 = vpack.i.bf16 %v876_v58, %v870_v47  ;;  %v5031_v22 = vpack.c.bf16 %v876_v58, %v870_v47 }
 0x1b4   : > { %5376 = vrot.lane.b32.xlu0 %v5375_v34, %s5817_s14  ;;  %5032 = vmatprep.subr.bf16.mxu1 %v5031_v22  ;;  %v1512_v34 = vld [vmem:[#allocation3 + $0x100] sm:$0xff] }
 0x1b5   : > { %v882_v7 = vpop.f32.mrb[36].mxu0  ;;  %5034 = vmatpush3.bf16.msra.mxu1 %v5033_v20 }
 0x1b6   : > { %v6441_v6 = vpop.f32.mrb[37].mxu0 }
 0x1b8   : > { %5381 = vrot.lane.b32.xlu0 %v5380_v18, %s5817_s14 }
 0x1b9   : > { %v888_v58 = vpop.f32.mrb[38].mxu0 }
 0x1ba   : > { %v5035_v47 = vpack.c.bf16 %v888_v58, %v882_v7  ;;  %v6447_v40 = vpop.f32.mrb[39].mxu0  ;;  %v5385_v16 = vpack.i.bf16 %v888_v58, %v882_v7 }
 0x1bc   : > { %5386 = vrot.lane.b32.xlu1 %v5385_v16, %s5817_s14  ;;  %5036 = vmatprep.subr.bf16.mxu1 %v5035_v47  ;;  %v1508_v16 = vld [vmem:[#allocation3 + $0xe0] sm:$0xff]  ;;  %v1517_v47 = vld [vmem:[#allocation3 + $0x128] sm:$0xff] }
 0x1bd   : > { %v894_v20 = vpop.f32.mrb[40].mxu0  ;;  %5038 = vmatpush3.bf16.msra.mxu1 %v5037_v31 }
 0x1be   : > { %v6457_v13 = vpop.f32.mrb[41].mxu0 }
 0x1bf   : > { %7738 = vst [vmem:[#allocation10_spill] sm:$0xff] %v6457_v13 }
 0x1c0   : > { %5391 = vrot.lane.b32.xlu1 %v5390_v30, %s5817_s14 }
 0x1c1   : > { %v900_v17 = vpop.f32.mrb[42].mxu0 }
 0x1c2   : > { %v5420_v18 = vpack.i.bf16 %v900_v17, %v894_v20  ;;  %v5039_v7 = vpack.c.bf16 %v900_v17, %v894_v20  ;;  %v6463_v58 = vpop.f32.mrb[43].mxu0 }
 0x1c3   : > { %7739 = vst [vmem:[#allocation11_spill] sm:$0xff] %v6463_v58 }
 0x1c4   : > { %5396 = vrot.lane.b32.xlu1 %v5395_v42, %s5817_s14  ;;  %5421 = vrot.lane.b32.xlu0 %v5420_v18, %s5817_s14 }
 0x1c5   : > { %5040 = vmatprep.subr.bf16.mxu1 %v5039_v7  ;;  %v906_v25 = vpop.f32.mrb[44].mxu0 }
 0x1c6   : > { %5042 = vmatpush3.bf16.msra.mxu1 %v5041_v43  ;;  %v6477_v29 = vpop.f32.mrb[45].mxu0 }
 0x1c7   : > { %7740 = vst [vmem:[#allocation12_spill] sm:$0xff] %v6477_v29 }
 0x1c8   : > { %5401 = vrot.lane.b32.xlu1 %v5400_v54, %s5817_s14 }
 0x1c9   : > { %v912_v30 = vpop.f32.mrb[46].mxu0 }
 0x1ca   : > { %v5425_v31 = vpack.i.bf16 %v912_v30, %v906_v25  ;;  %v5043_v20 = vpack.c.bf16 %v912_v30, %v906_v25  ;;  %v6483_v17 = vpop.f32.mrb[47].mxu0  ;;  %v1492_v30 = vld [vmem:[#allocation3 + $0x60] sm:$0xff] }
 0x1cb   : > { %7741 = vst [vmem:[#allocation13_spill] sm:$0xff] %v6483_v17 }
 0x1cc   : > { %5406 = vrot.lane.b32.xlu1 %v5405_v2, %s5817_s14  ;;  %5426 = vrot.lane.b32.xlu0 %v5425_v31, %s5817_s14  ;;  %v1500_v2 = vld [vmem:[#allocation3 + $0xa0] sm:$0xff] }
 0x1cd   : > { %5044 = vmatprep.subr.bf16.mxu1 %v5043_v20  ;;  %v918_v37 = vpop.f32.mrb[48].mxu0 }
 0x1ce   : > { %5046 = vmatpush3.bf16.msra.mxu1 %v5045_v55  ;;  %v6497_v41 = vpop.f32.mrb[49].mxu0 }
 0x1cf   : > { %7742 = vst [vmem:[#allocation14_spill] sm:$0xff] %v6497_v41  ;;  %v1540_v41 = vld [vmem:[#allocation3 + $0x1e0] sm:$0xff] }
 0x1d0   : > { %5411 = vrot.lane.b32.xlu1 %v5410_v11, %s5817_s14 }
 0x1d1   : > { %v924_v43 = vpop.f32.mrb[50].mxu0 }
 0x1d2   : > { %v5430_v54 = vpack.i.bf16 %v924_v43, %v918_v37  ;;  %v5047_v7 = vpack.c.bf16 %v924_v43, %v918_v37  ;;  %v6503_v25 = vpop.f32.mrb[51].mxu0 }
 0x1d3   : > { %7743 = vst [vmem:[#allocation15_spill] sm:$0xff] %v6503_v25  ;;  %v7754_v25 = vpack.i.bf16 %v6334_v44, %v6324_v38 }
 0x1d4   : > { %5416 = vrot.lane.b32.xlu1 %v5415_v35, %s5817_s14  ;;  %5431 = vrot.lane.b32.xlu0 %v5430_v54, %s5817_s14 }
 0x1d5   : > { %5048 = vmatprep.subr.bf16.mxu1 %v5047_v7  ;;  %v930_v49 = vpop.f32.mrb[52].mxu0  ;;  %v1501_v7 = vld [vmem:[#allocation3 + $0xa8] sm:$0xff] }
 0x1d6   : > { %5050 = vmatpush3.bf16.msra.mxu1 %v5049_v3  ;;  %v6517_v53 = vpop.f32.mrb[53].mxu0 }
 0x1d7   : > { %7744 = vst [vmem:[#allocation16_spill] sm:$0xff] %v6517_v53 }
 0x1d8   : > { %5451 = vrot.lane.b32.xlu1 %v5450_v59, %s5817_s14 }
 0x1d9   : > { %v936_v55 = vpop.f32.mrb[54].mxu0 }
 0x1da   : > { %v5435_v11 = vpack.i.bf16 %v936_v55, %v930_v49  ;;  %v5051_v31 = vpack.c.bf16 %v936_v55, %v930_v49  ;;  %v6523_v20 = vpop.f32.mrb[55].mxu0  ;;  %v1493_v49 = vld [vmem:[#allocation3 + $0x68] sm:$0xff] }
 0x1db   : > { %7745 = vst [vmem:[#allocation17_spill] sm:$0xff] %v6523_v20  ;;  %v1541_v20 = vld [vmem:[#allocation3 + $0x1e8] sm:$0xff] }
 0x1dc   : > { %5436 = vrot.lane.b32.xlu0 %v5435_v11, %s5817_s14  ;;  %5052 = vmatprep.subr.bf16.mxu1 %v5051_v31 }
 0x1dd   : > { %v942_v61 = vpop.f32.mrb[56].mxu0  ;;  %5054 = vmatpush3.bf16.msra.mxu1 %v5053_v12 }
 0x1de   : > { %v6533_v1 = vpop.f32.mrb[57].mxu0 }
 0x1df   : > { %7746 = vst [vmem:[#allocation18_spill] sm:$0xff] %v6533_v1  ;;  %v1532_v1 = vld [vmem:[#allocation3 + $0x1a0] sm:$0xff] }
 0x1e1   : > { %v948_v3 = vpop.f32.mrb[58].mxu0 }
 0x1e2   : > { %v5440_v59 = vpack.i.bf16 %v948_v3, %v942_v61  ;;  %v5055_v43 = vpack.c.bf16 %v948_v3, %v942_v61  ;;  %v6535_v54 = vpop.f32.mrb[59].mxu0  ;;  %v1489_v3 = vld [vmem:[#allocation3 + $0x48] sm:$0xff] }
 0x1e3   : > { %7747 = vst [vmem:[#allocation19_spill] sm:$0xff] %v6535_v54  ;;  %v7750_v54 = vpack.i.bf16 %v6292_v19, %v6284_v14 }
 0x1e4   : > { %5441 = vrot.lane.b32.xlu0 %v5440_v59, %s5817_s14  ;;  %5056 = vmatprep.subr.bf16.mxu1 %v5055_v43 }
 0x1e5   : > { %v954_v55 = vpop.f32.mrb[60].mxu0  ;;  %5058 = vmatpush3.bf16.msra.mxu1 %v5057_v36  ;;  %v1485_v36 = vld [vmem:[#allocation3 + $0x28] sm:$0xff] }
 0x1e6   : > { %v6545_v8 = vpop.f32.mrb[61].mxu0 }
 0x1e7   : > { %7748 = vst [vmem:[#allocation20_spill] sm:$0xff] %v6545_v8 }
 0x1e9   : > { %v960_v10 = vpop.f32.mrb[62].mxu0 }
 0x1ea   : > { %v5445_v12 = vpack.i.bf16 %v960_v10, %v954_v55  ;;  %v5059_v11 = vpack.c.bf16 %v960_v10, %v954_v55  ;;  %v6547_v31 = vpop.f32.mrb[63].mxu0  ;;  %v1484_v55 = vld [vmem:[#allocation3 + $0x20] sm:$0xff] }
 0x1eb   : > { %7749 = vst [vmem:[#allocation21_spill] sm:$0xff] %v6547_v31  ;;  %v1533_v31 = vld [vmem:[#allocation3 + $0x1a8] sm:$0xff] }
 0x1ec   : > { %5446 = vrot.lane.b32.xlu0 %v5445_v12, %s5817_s14  ;;  %5060 = vmatprep.subr.bf16.mxu1 %v5059_v11  ;;  %v1525_v12 = vld [vmem:[#allocation3 + $0x168] sm:$0xff] }
 0x1ed   : > { %v6554_v59 = vpop.f32.mrb[64].mxu0  ;;  %5062 = vmatpush3.bf16.msra.mxu1 %v5061_v60 }
 0x1ee   : > { %v6559_v28 = vpop.f32.mrb[65].mxu0 }
 0x1f0   : > { %1705 = vmatmul.mubr.f32.vlgmr.msra.gmra.mrb[0].mxu1 %v1480_v24  ;;  %v1488_v24 = vld [vmem:[#allocation3 + $0x40] sm:$0xff] }
 0x1f1   : > { %v6561_v43 = vpop.f32.mrb[66].mxu0  ;;  %1709 = vmatprep.mubr.f32.mxu1 %v1485_v36 }
 0x1f2   : > { %v5455_v10 = vpack.i.bf16 %v6561_v43, %v6554_v59  ;;  %v6567_v11 = vpop.f32.mrb[67].mxu0 }
 0x1f4   : > { %5456 = vrot.lane.b32.xlu1 %v5455_v10, %s5817_s14  ;;  %1710 = vmatmul.mubr.f32.gmra.mrb[2].mxu1 %v1484_v55  ;;  %v1497_v55 = vld [vmem:[#allocation3 + $0x88] sm:$0xff] }
 0x1f5   : > { %v6574_v60 = vpop.f32.mrb[68].mxu0  ;;  %1714 = vmatprep.mubr.f32.mxu1 %v1489_v3 }
 0x1f6   : > { %v6576_v36 = vpop.f32.mrb[69].mxu0 }
 0x1f8   : > { %1715 = vmatmul.mubr.f32.gmra.mrb[4].mxu1 %v1488_v24  ;;  %v1496_v24 = vld [vmem:[#allocation3 + $0x80] sm:$0xff] }
 0x1f9   : > { %v6578_v37 = vpop.f32.mrb[70].mxu0  ;;  %1719 = vmatprep.mubr.f32.mxu1 %v1493_v49 }
 0x1fa   : > { %v5460_v18 = vpack.i.bf16 %v6578_v37, %v6574_v60  ;;  %v6584_v10 = vpop.f32.mrb[71].mxu0 }
 0x1fc   : > { %5461 = vrot.lane.b32.xlu1 %v5460_v18, %s5817_s14  ;;  %1720 = vmatmul.mubr.f32.gmra.mrb[6].mxu1 %v1492_v30  ;;  %v1505_v30 = vld [vmem:[#allocation3 + $0xc8] sm:$0xff] }
 0x1fd   : > { %v6591_v49 = vpop.f32.mrb[72].mxu0  ;;  %1724 = vmatprep.mubr.f32.mxu1 %v1497_v55 }
 0x1fe   : > { %v6593_v61 = vpop.f32.mrb[73].mxu0 }
 0x200   : > { %1725 = vmatmul.mubr.f32.gmra.mrb[8].mxu1 %v1496_v24  ;;  %v1504_v24 = vld [vmem:[#allocation3 + $0xc0] sm:$0xff] }
 0x201   : > { %v6595_v35 = vpop.f32.mrb[74].mxu0  ;;  %1729 = vmatprep.mubr.f32.mxu1 %v1501_v7 }
 0x202   : > { %v5465_v42 = vpack.i.bf16 %v6595_v35, %v6591_v49  ;;  %v6601_v18 = vpop.f32.mrb[75].mxu0 }
 0x204   : > { %5466 = vrot.lane.b32.xlu1 %v5465_v42, %s5817_s14  ;;  %1730 = vmatmul.mubr.f32.gmra.mrb[10].mxu1 %v1500_v2  ;;  %v1513_v2 = vld [vmem:[#allocation3 + $0x108] sm:$0xff] }
 0x205   : > { %v6608_v7 = vpop.f32.mrb[76].mxu0  ;;  %1734 = vmatprep.mubr.f32.mxu1 %v1505_v30 }
 0x206   : > { %v6610_v3 = vpop.f32.mrb[77].mxu0 }
 0x208   : > { %1735 = vmatmul.mubr.f32.gmra.mrb[12].mxu1 %v1504_v24 }
 0x209   : > { %v6612_v0 = vpop.f32.mrb[78].mxu0  ;;  %1739 = vmatprep.mubr.f32.mxu1 %v1509_v48 }
 0x20a   : > { %v5470_v55 = vpack.i.bf16 %v6612_v0, %v6608_v7  ;;  %v6618_v42 = vpop.f32.mrb[79].mxu0 }
 0x20c   : > { %5471 = vrot.lane.b32.xlu1 %v5470_v55, %s5817_s14  ;;  %1740 = vmatmul.mubr.f32.gmra.mrb[14].mxu1 %v1508_v16  ;;  %v1521_v16 = vld [vmem:[#allocation3 + $0x148] sm:$0xff] }
 0x20d   : > { %v6625_v48 = vpop.f32.mrb[80].mxu0  ;;  %1744 = vmatprep.mubr.f32.mxu1 %v1513_v2 }
 0x20e   : > { %v6627_v22 = vpop.f32.mrb[81].mxu0 }
 0x210   : > { %1745 = vmatmul.mubr.f32.gmra.mrb[16].mxu1 %v1512_v34 }
 0x211   : > { %v6629_v57 = vpop.f32.mrb[82].mxu0  ;;  %1749 = vmatprep.mubr.f32.mxu1 %v1517_v47  ;;  %v1520_v47 = vld [vmem:[#allocation3 + $0x140] sm:$0xff] }
 0x212   : > { %v5475_v30 = vpack.i.bf16 %v6629_v57, %v6625_v48  ;;  %v6635_v55 = vpop.f32.mrb[83].mxu0 }
 0x214   : > { %5476 = vrot.lane.b32.xlu1 %v5475_v30, %s5817_s14  ;;  %1750 = vmatmul.mubr.f32.gmra.mrb[18].mxu1 %v1516_v5  ;;  %v1529_v5 = vld [vmem:[#allocation3 + $0x188] sm:$0xff] }
 0x215   : > { %v6642_v34 = vpop.f32.mrb[84].mxu0  ;;  %1754 = vmatprep.mubr.f32.mxu1 %v1521_v16 }
 0x216   : > { %v6644_v52 = vpop.f32.mrb[85].mxu0 }
 0x218   : > { %1755 = vmatmul.mubr.f32.gmra.mrb[20].mxu1 %v1520_v47  ;;  %v1528_v47 = vld [vmem:[#allocation3 + $0x180] sm:$0xff] }
 0x219   : > { %v6646_v24 = vpop.f32.mrb[86].mxu0  ;;  %1759 = vmatprep.mubr.f32.mxu1 %v1525_v12 }
 0x21a   : > { %v5480_v2 = vpack.i.bf16 %v6646_v24, %v6642_v34  ;;  %v6652_v30 = vpop.f32.mrb[87].mxu0 }
 0x21c   : > { %5481 = vrot.lane.b32.xlu1 %v5480_v2, %s5817_s14  ;;  %1760 = vmatmul.mubr.f32.gmra.mrb[22].mxu1 %v1524_v33  ;;  %v1537_v33 = vld [vmem:[#allocation3 + $0x1c8] sm:$0xff] }
 0x21d   : > { %v6659_v12 = vpop.f32.mrb[88].mxu0  ;;  %1764 = vmatprep.mubr.f32.mxu1 %v1529_v5 }
 0x21e   : > { %v6661_v8 = vpop.f32.mrb[89].mxu0 }
 0x220   : > { %1765 = vmatmul.mubr.f32.gmra.mrb[24].mxu1 %v1528_v47  ;;  %v1536_v47 = vld [vmem:[#allocation3 + $0x1c0] sm:$0xff] }
 0x221   : > { %v6663_v45 = vpop.f32.mrb[90].mxu0  ;;  %1769 = vmatprep.mubr.f32.mxu1 %v1533_v31 }
 0x222   : > { %v5485_v16 = vpack.i.bf16 %v6663_v45, %v6659_v12  ;;  %v6669_v2 = vpop.f32.mrb[91].mxu0 }
 0x224   : > { %5486 = vrot.lane.b32.xlu1 %v5485_v16, %s5817_s14  ;;  %1770 = vmatmul.mubr.f32.gmra.mrb[26].mxu1 %v1532_v1  ;;  %v1483_v1 = vld [vmem:[#allocation3 + $0x18] sm:$0xff] }
 0x225   : > { %v6676_v31 = vpop.f32.mrb[92].mxu0  ;;  %1774 = vmatprep.mubr.f32.mxu1 %v1537_v33 }
 0x226   : > { %v6678_v53 = vpop.f32.mrb[93].mxu0 }
 0x228   : > { %1775 = vmatmul.mubr.f32.gmra.mrb[28].mxu1 %v1536_v47 }
 0x229   : > { %v6680_v21 = vpop.f32.mrb[94].mxu0  ;;  %1779 = vmatprep.mubr.f32.mxu1 %v1541_v20 }
 0x22a   : > { %v5530_v5 = vpack.i.bf16 %v6680_v21, %v6676_v31  ;;  %v6686_v16 = vpop.f32.mrb[95].mxu0 }
 0x22c   : > { %5531 = vrot.lane.b32.xlu1 %v5530_v5, %s5817_s14  ;;  %1780 = vmatmul.mubr.f32.gmra.mrb[30].mxu1 %v1540_v41  ;;  %v7751_v5 = vpack.i.bf16 %v6314_v32, %v6304_v26 }
 0x22d   : > { %v1062_v20 = vpop.f32.mrb[96].mxu0  ;;  %1849 = vmatprep.mubr.f32.mxu1 %v1483_v1  ;;  %v7753_v1 = vpack.c.bf16 %v6567_v11, %v6559_v28 }
 0x22e   : > { %v6693_v47 = vpop.f32.mrb[97].mxu0 }
 0x230   : > { %5541 = vrot.lane.b32.xlu1 %v7750_v54, %s5817_s14 }
 0x231   : > { %v1068_v29 = vpop.f32.mrb[98].mxu0 }
 0x232   : > { %v5490_v17 = vpack.i.bf16 %v1068_v29, %v1062_v20  ;;  %v5063_v13 = vpack.c.bf16 %v1068_v29, %v1062_v20  ;;  %v6699_v58 = vpop.f32.mrb[99].mxu0  ;;  %v7752_v29 = vpack.c.bf16 %v6561_v43, %v6554_v59 }
 0x233   : > { %v5191_v41 = vpack.c.bf16 %v6699_v58, %v6693_v47 }
 0x234   : > { %5551 = vrot.lane.b32.xlu1 %v7751_v5, %s5817_s14  ;;  %5491 = vrot.lane.b32.xlu0 %v5490_v17, %s5817_s14 }
 0x235   : > { %5064 = vmatprep.subr.bf16.mxu1 %v5063_v13  ;;  %v1074_v54 = vpop.f32.mrb[100].mxu0  ;;  %5192 = vmatprep.subr.bf16.mxu0 %v5191_v41  ;;  %v7755_v41 = vpack.i.bf16 %v6354_v56, %v6344_v50 }
 0x236   : > { %5066 = vmatpush3.bf16.msra.mxu1 %v7752_v29  ;;  %5194 = vmatpush3.bf16.msra.mxu0 %v7753_v1  ;;  %v6716_v20 = vpop.f32.mrb[101].mxu0  ;;  %v7757_v29 = vpack.c.bf16 %v6584_v10, %v6576_v36 }
 0x238   : > { %5561 = vrot.lane.b32.xlu1 %v7754_v25, %s5817_s14 }
 0x239   : > { %v1080_v5 = vpop.f32.mrb[102].mxu0 }
 0x23a   : > { %v5495_v17 = vpack.i.bf16 %v1080_v5, %v1074_v54  ;;  %v5067_v13 = vpack.c.bf16 %v1080_v5, %v1074_v54  ;;  %v6722_v33 = vpop.f32.mrb[103].mxu0  ;;  %v7756_v54 = vpack.c.bf16 %v6578_v37, %v6574_v60  ;;  %v7758_v5 = vpack.i.bf16 %v6374_v4, %v6364_v62 }
 0x23b   : > { %v5195_v43 = vpack.c.bf16 %v6722_v33, %v6716_v20 }
 0x23c   : > { %5571 = vrot.lane.b32.xlu1 %v7755_v41, %s5817_s14  ;;  %5496 = vrot.lane.b32.xlu0 %v5495_v17, %s5817_s14 }
 0x23d   : > { %5068 = vmatprep.subr.bf16.mxu1 %v5067_v13  ;;  %v1086_v25 = vpop.f32.mrb[104].mxu0  ;;  %5196 = vmatprep.subr.bf16.mxu0 %v5195_v43  ;;  %v7759_v43 = vpack.i.bf16 %v6391_v15, %v6383_v9 }
 0x23e   : > { %5070 = vmatpush3.bf16.msra.mxu1 %v7756_v54  ;;  %5198 = vmatpush3.bf16.msra.mxu0 %v7757_v29  ;;  %v6739_v1 = vpop.f32.mrb[105].mxu0  ;;  %v7761_v29 = vpack.c.bf16 %v6601_v18, %v6593_v61 }
 0x240   : > { %5581 = vrot.lane.b32.xlu1 %v7758_v5, %s5817_s14 }
 0x241   : > { %v1092_v41 = vpop.f32.mrb[106].mxu0 }
 0x242   : > { %v5500_v17 = vpack.i.bf16 %v1092_v41, %v1086_v25  ;;  %v5071_v13 = vpack.c.bf16 %v1092_v41, %v1086_v25  ;;  %v6745_v59 = vpop.f32.mrb[107].mxu0  ;;  %v7760_v25 = vpack.c.bf16 %v6595_v35, %v6591_v49  ;;  %v7762_v41 = vpack.i.bf16 %v6407_v39, %v6399_v27 }
 0x243   : > { %v5199_v60 = vpack.c.bf16 %v6745_v59, %v6739_v1 }
 0x244   : > { %5591 = vrot.lane.b32.xlu1 %v7759_v43, %s5817_s14  ;;  %5501 = vrot.lane.b32.xlu0 %v5500_v17, %s5817_s14 }
 0x245   : > { %5072 = vmatprep.subr.bf16.mxu1 %v5071_v13  ;;  %v1098_v54 = vpop.f32.mrb[108].mxu0  ;;  %5200 = vmatprep.subr.bf16.mxu0 %v5199_v60  ;;  %v7763_v60 = vpack.i.bf16 %v6423_v63, %v6415_v51 }
 0x246   : > { %5074 = vmatpush3.bf16.msra.mxu1 %v7760_v25  ;;  %5202 = vmatpush3.bf16.msra.mxu0 %v7761_v29  ;;  %v6762_v5 = vpop.f32.mrb[109].mxu0 }
 0x248   : > { %5601 = vrot.lane.b32.xlu1 %v7762_v41, %s5817_s14  ;;  %v7765_v41 = vpack.c.bf16 %v6618_v42, %v6610_v3 }
 0x249   : > { %v1104_v43 = vpop.f32.mrb[110].mxu0 }
 0x24a   : > { %v5505_v17 = vpack.i.bf16 %v1104_v43, %v1098_v54  ;;  %v5075_v13 = vpack.c.bf16 %v1104_v43, %v1098_v54  ;;  %v6768_v37 = vpop.f32.mrb[111].mxu0  ;;  %v7764_v54 = vpack.c.bf16 %v6612_v0, %v6608_v7  ;;  %v7766_v43 = vpack.i.bf16 %v6567_v11, %v6559_v28 }
 0x24b   : > { %v5203_v49 = vpack.c.bf16 %v6768_v37, %v6762_v5  ;;  %v7768_v11 = vpack.c.bf16 %v6629_v57, %v6625_v48 }
 0x24c   : > { %5611 = vrot.lane.b32.xlu1 %v7763_v60, %s5817_s14  ;;  %5506 = vrot.lane.b32.xlu0 %v5505_v17, %s5817_s14 }
 0x24d   : > { %5076 = vmatprep.subr.bf16.mxu1 %v5075_v13  ;;  %v1110_v25 = vpop.f32.mrb[112].mxu0  ;;  %5204 = vmatprep.subr.bf16.mxu0 %v5203_v49  ;;  %v7767_v49 = vpack.i.bf16 %v6584_v10, %v6576_v36  ;;  %v7770_v36 = vpack.i.bf16 %v6601_v18, %v6593_v61  ;;  %v7772_v18 = vpack.c.bf16 %v6646_v24, %v6642_v34 }
 0x24e   : > { %5078 = vmatpush3.bf16.msra.mxu1 %v7764_v54  ;;  %v6782_v29 = vpop.f32.mrb[113].mxu0  ;;  %5206 = vmatpush3.bf16.msra.mxu0 %v7765_v41  ;;  %v7769_v54 = vpack.c.bf16 %v6635_v55, %v6627_v22 }
 0x250   : > { %5621 = vrot.lane.b32.xlu1 %v7766_v43, %s5817_s14 }
 0x251   : > { %v1116_v60 = vpop.f32.mrb[114].mxu0 }
 0x252   : > { %v5510_v17 = vpack.i.bf16 %v1116_v60, %v1110_v25  ;;  %v5079_v13 = vpack.c.bf16 %v1116_v60, %v1110_v25  ;;  %v6791_v35 = vpop.f32.mrb[115].mxu0 }
 0x253   : > { %v5207_v7 = vpack.c.bf16 %v6791_v35, %v6782_v29 }
 0x254   : > { %5631 = vrot.lane.b32.xlu1 %v7767_v49, %s5817_s14  ;;  %5511 = vrot.lane.b32.xlu0 %v5510_v17, %s5817_s14  ;;  %v6816_v17 = vpop.permute.xlu1 %5386  ;;  %v7773_v49 = vpack.c.bf16 %v6652_v30, %v6644_v52 }
 0x255   : > { %5080 = vmatprep.subr.bf16.mxu1 %v5079_v13  ;;  %v1122_v28 = vpop.f32.mrb[116].mxu0  ;;  %5208 = vmatprep.subr.bf16.mxu0 %v5207_v7  ;;  %v7771_v13 = vpack.i.bf16 %v6618_v42, %v6610_v3  ;;  %v7774_v3 = vpack.i.bf16 %v6635_v55, %v6627_v22  ;;  %v7776_v55 = vpack.c.bf16 %v6663_v45, %v6659_v12 }
 0x256   : > { %5082 = vmatpush3.bf16.msra.mxu1 %v7768_v11  ;;  %v6805_v25 = vpop.f32.mrb[117].mxu0  ;;  %5210 = vmatpush3.bf16.msra.mxu0 %v7769_v54 }
 0x258   : > { %5641 = vrot.lane.b32.xlu1 %v7770_v36, %s5817_s14  ;;  %v5392_v42 = vpop.permute.xlu1 %5391 }
 0x259   : > { %v1128_v10 = vpop.f32.mrb[118].mxu0 }
 0x25a   : > { %v5515_v41 = vpack.i.bf16 %v1128_v10, %v1122_v28  ;;  %v5083_v43 = vpack.c.bf16 %v1128_v10, %v1122_v28  ;;  %v6814_v60 = vpop.f32.mrb[119].mxu0  ;;  %v5377_v10 = vpop.permute.xlu0 %5376 }
 0x25b   : > { %v5211_v48 = vpack.c.bf16 %v6814_v60, %v6805_v25 }
 0x25c   : > { %5651 = vrot.lane.b32.xlu1 %v7771_v13, %s5817_s14  ;;  %5516 = vrot.lane.b32.xlu0 %v5515_v41, %s5817_s14  ;;  %v7775_v41 = vpack.i.bf16 %v6652_v30, %v6644_v52  ;;  %v5397_v13 = vpop.permute.xlu1 %5396  ;;  %v7778_v52 = vpack.i.bf16 %v6669_v2, %v6661_v8  ;;  %v5379_v30 = vunpack.i.h.bf16 %v5377_v10 }
 0x25d   : > { %5084 = vmatprep.subr.bf16.mxu1 %v5083_v43  ;;  %v1134_v61 = vpop.f32.mrb[120].mxu0  ;;  %5212 = vmatprep.subr.bf16.mxu0 %v5211_v48  ;;  %v7777_v48 = vpack.c.bf16 %v6669_v2, %v6661_v8  ;;  %v7779_v8 = vpack.i.bf16 %v6686_v16, %v6678_v53  ;;  %v5389_v2 = vunpack.i.h.bf16 %v6816_v17 }
 0x25e   : > { %5086 = vmatpush3.bf16.msra.mxu1 %v7772_v18  ;;  %v6830_v7 = vpop.f32.mrb[121].mxu0  ;;  %5214 = vmatpush3.bf16.msra.mxu0 %v7773_v49  ;;  %v5382_v18 = vpop.permute.xlu0 %5381 }
 0x260   : > { %5661 = vrot.lane.b32.xlu1 %v7774_v3, %s5817_s14 }
 0x261   : > { %v1140_v28 = vpop.f32.mrb[122].mxu0 }
 0x262   : > { %v5520_v11 = vpack.i.bf16 %v1140_v28, %v1134_v61  ;;  %v5087_v54 = vpack.c.bf16 %v1140_v28, %v1134_v61  ;;  %v6839_v36 = vpop.f32.mrb[123].mxu0  ;;  %v5378_v61 = vunpack.i.l.bf16 %v5377_v10  ;;  %v5388_v10 = vunpack.i.l.bf16 %v6816_v17  ;;  %v1487_v17 = vld [vmem:[#allocation3 + $0x38] sm:$0xff] }
 0x263   : > { %v5215_v34 = vpack.c.bf16 %v6839_v36, %v6830_v7 }
 0x264   : > { %5671 = vrot.lane.b32.xlu1 %v7775_v41, %s5817_s14  ;;  %5521 = vrot.lane.b32.xlu0 %v5520_v11, %s5817_s14  ;;  %v5402_v41 = vpop.permute.xlu1 %5401 }
 0x265   : > { %5088 = vmatprep.subr.bf16.mxu1 %v5087_v54  ;;  %v1146_v22 = vpop.f32.mrb[124].mxu0  ;;  %5216 = vmatprep.subr.bf16.mxu0 %v5215_v34  ;;  %v5384_v54 = vunpack.i.h.bf16 %v5382_v18  ;;  %v5383_v34 = vunpack.i.l.bf16 %v5382_v18  ;;  %v7781_v18 = vpack.c.bf16 %v6686_v16, %v6678_v53  ;;  %v1546_v53 = vld [vmem:[%s7697_s2 + $0x10] sm:$0xff] }
 0x266   : > { %5090 = vmatpush3.bf16.msra.mxu1 %v7776_v55  ;;  %v6853_v43 = vpop.f32.mrb[125].mxu0  ;;  %5218 = vmatpush3.bf16.msra.mxu0 %v7777_v48  ;;  %v1545_v55 = vld [vmem:[%s7697_s2 + $0x8] sm:$0xff]  ;;  %v5422_v48 = vpop.permute.xlu0 %5421  ;;  %v1486_v16 = vld [vmem:[#allocation3 + $0x30] sm:$0xff] }
 0x268   : > { %5681 = vrot.lane.b32.xlu1 %v7778_v52, %s5817_s14  ;;  %v7780_v52 = vpack.c.bf16 %v6680_v21, %v6676_v31  ;;  %v5099_v21 = vpack.c.bf16 %v5389_v2, %v5388_v10 }
 0x269   : > { %v1152_v49 = vpop.f32.mrb[126].mxu0 }
 0x26a   : > { %v5525_v3 = vpack.i.bf16 %v1152_v49, %v1146_v22  ;;  %v5091_v28 = vpack.c.bf16 %v1152_v49, %v1146_v22  ;;  %v6862_v45 = vpop.f32.mrb[127].mxu0  ;;  %v5095_v22 = vpack.c.bf16 %v5379_v30, %v5378_v61  ;;  %v1482_v49 = vld [vmem:[#allocation3 + $0x10] sm:$0xff]  ;;  %v7782_v30 = vpack.i.bf16 %v6431_v46, %v6429_v23  ;;  %v5427_v31 = vpop.permute.xlu0 %5426 }
 0x26b   : > { %v5219_v11 = vpack.c.bf16 %v6862_v45, %v6853_v43  ;;  %v5424_v61 = vunpack.i.h.bf16 %v5422_v48  ;;  %v5429_v2 = vunpack.i.h.bf16 %v5427_v31  ;;  %v5428_v10 = vunpack.i.l.bf16 %v5427_v31 }
 0x26c   : > { %5691 = vrot.lane.b32.xlu1 %v7779_v8, %s5817_s14  ;;  %5526 = vrot.lane.b32.xlu0 %v5525_v3, %s5817_s14  ;;  %v5097_v3 = vpack.c.bf16 %v5384_v54, %v5383_v34  ;;  %v5423_v8 = vunpack.i.l.bf16 %v5422_v48  ;;  %v5407_v54 = vpop.permute.xlu1 %5406 }
 0x26d   : > { %5092 = vmatprep.subr.bf16.mxu1 %v5091_v28  ;;  %5220 = vmatprep.subr.bf16.mxu0 %v5219_v11  ;;  %v5394_v28 = vunpack.i.h.bf16 %v5392_v42  ;;  %v5393_v11 = vunpack.i.l.bf16 %v5392_v42  ;;  %v1491_v42 = vld [vmem:[#allocation3 + $0x58] sm:$0xff] }
 0x26e   : > { %5094 = vmatpush3.bf16.msra.mxu1 %v7780_v52  ;;  %5222 = vmatpush3.bf16.msra.mxu0 %v7781_v18  ;;  %v5398_v52 = vunpack.i.l.bf16 %v5397_v13  ;;  %v5103_v48 = vpack.c.bf16 %v5424_v61, %v5423_v8  ;;  %v1548_v18 = vld [vmem:[%s7697_s2 + $0x20] sm:$0xff] }
 0x26f   : > { %5096 = vmatprep.subr.bf16.mxu1 %v5095_v22  ;;  %v5101_v34 = vpack.c.bf16 %v5394_v28, %v5393_v11  ;;  %v5399_v22 = vunpack.i.h.bf16 %v5397_v13  ;;  %v1495_v13 = vld [vmem:[#allocation3 + $0x78] sm:$0xff]  ;;  %v5404_v28 = vunpack.i.h.bf16 %v5402_v41  ;;  %v5403_v11 = vunpack.i.l.bf16 %v5402_v41 }
 0x270   : > { %5536 = vrot.lane.b32.xlu0 %v7782_v30, %s5817_s14  ;;  %1567 = vperm.xlu1 %5696, %v1545_v55   ;;  %v7783_v55 = vpack.i.bf16 %v6447_v40, %v6441_v6  ;;  %v7784_v30 = vld [vmem:[#allocation11_spill] sm:$0xff]  ;;  %v5412_v61 = vpop.permute.xlu1 %5411  ;;  %v1499_v41 = vld [vmem:[#allocation3 + $0x98] sm:$0xff] }
 0x271   : > { %1850 = vmatmul.mubr.f32.vlgmr.msra.gmra.mrb[32].mxu1 %v1482_v49  ;;  %v5432_v49 = vpop.permute.xlu0 %5431  ;;  %v5413_v24 = vunpack.i.l.bf16 %v5412_v61 }
 0x272   : > { %5098 = vmatpush3.bf16.msra.mxu1 %v5097_v3  ;;  %1854 = vmatprep.mubr.f32.mxu1 %v1487_v17  ;;  %v1490_v17 = vld [vmem:[#allocation3 + $0x50] sm:$0xff]  ;;  %v5105_v3 = vpack.c.bf16 %v5399_v22, %v5398_v52  ;;  %v5434_v8 = vunpack.i.h.bf16 %v5432_v49  ;;  %v5433_v31 = vunpack.i.l.bf16 %v5432_v49  ;;  %v5109_v52 = vpack.c.bf16 %v5404_v28, %v5403_v11 }
 0x273   : > { %5100 = vmatprep.subr.bf16.mxu1 %v5099_v21  ;;  %v7785_v21 = vld [vmem:[#allocation10_spill] sm:$0xff]  ;;  %v1494_v22 = vld [vmem:[#allocation3 + $0x70] sm:$0xff] }
 0x274   : > { %5546 = vrot.lane.b32.xlu0 %v7783_v55, %s5817_s14  ;;  %1572 = vperm.xlu1 %5696, %v1546_v53   ;;  %v7786_v53 = vpack.i.bf16 %v7784_v30, %v7785_v21  ;;  %v5409_v55 = vunpack.i.h.bf16 %v5407_v54  ;;  %v5111_v49 = vpack.c.bf16 %v5434_v8, %v5433_v31  ;;  %v5417_v28 = vpop.permute.xlu1 %5416 }
 0x275   : > { %1855 = vmatmul.mubr.f32.gmra.mrb[34].mxu1 %v1486_v16  ;;  %v5107_v16 = vpack.c.bf16 %v5429_v2, %v5428_v10  ;;  %v5418_v57 = vunpack.i.l.bf16 %v5417_v28 }
 0x276   : > { %5102 = vmatpush3.bf16.msra.mxu1 %v5101_v34  ;;  %1859 = vmatprep.mubr.f32.mxu1 %v1491_v42  ;;  %v1550_v42 = vld [vmem:[%s7697_s2 + $0x30] sm:$0xff]  ;;  %v5437_v34 = vpop.permute.xlu0 %5436 }
 0x277   : > { %5104 = vmatprep.subr.bf16.mxu1 %v5103_v48  ;;  %v5408_v48 = vunpack.i.l.bf16 %v5407_v54  ;;  %v5439_v2 = vunpack.i.h.bf16 %v5437_v34  ;;  %v5438_v10 = vunpack.i.l.bf16 %v5437_v34  ;;  %v1503_v54 = vld [vmem:[#allocation3 + $0xb8] sm:$0xff] }
 0x278   : > { %5556 = vrot.lane.b32.xlu0 %v7786_v53, %s5817_s14  ;;  %1582 = vperm.xlu1 %5696, %v1548_v18   ;;  %v7787_v18 = vld [vmem:[#allocation13_spill] sm:$0xff]  ;;  %v7788_v53 = vld [vmem:[#allocation12_spill] sm:$0xff] }
 0x279   : > { %1860 = vmatmul.mubr.f32.gmra.mrb[36].mxu1 %v1490_v17  ;;  %v7789_v12 = vpack.i.bf16 %v7787_v18, %v7788_v53  ;;  %v1552_v17 = vld [vmem:[%s7697_s2 + $0x40] sm:$0xff]  ;;  %v5113_v11 = vpack.c.bf16 %v5409_v55, %v5408_v48  ;;  %v1502_v55 = vld [vmem:[#allocation3 + $0xb0] sm:$0xff] }
 0x27a   : > { %5106 = vmatpush3.bf16.msra.mxu1 %v5105_v3  ;;  %1864 = vmatprep.mubr.f32.mxu1 %v1495_v13  ;;  %v5442_v13 = vpop.permute.xlu0 %5441  ;;  %v1498_v3 = vld [vmem:[#allocation3 + $0x90] sm:$0xff] }
 0x27b   : > { %5108 = vmatprep.subr.bf16.mxu1 %v5107_v16  ;;  %v5414_v16 = vunpack.i.h.bf16 %v5412_v61  ;;  %v5444_v8 = vunpack.i.h.bf16 %v5442_v13  ;;  %v5443_v31 = vunpack.i.l.bf16 %v5442_v13  ;;  %v1507_v61 = vld [vmem:[#allocation3 + $0xd8] sm:$0xff] }
 0x27c   : > { %5566 = vrot.lane.b32.xlu0 %v7789_v12, %s5817_s14  ;;  %1592 = vperm.xlu1 %5696, %v1550_v42   ;;  %v7790_v12 = vld [vmem:[#allocation15_spill] sm:$0xff]  ;;  %v7791_v42 = vld [vmem:[#allocation14_spill] sm:$0xff] }
 0x27d   : > { %1865 = vmatmul.mubr.f32.gmra.mrb[38].mxu1 %v1494_v22  ;;  %v7792_v34 = vpack.i.bf16 %v7790_v12, %v7791_v42  ;;  %v5115_v22 = vpack.c.bf16 %v5439_v2, %v5438_v10  ;;  %v5117_v48 = vpack.c.bf16 %v5414_v16, %v5413_v24  ;;  %v5452_v2 = vpop.permute.xlu1 %5451  ;;  %v1506_v24 = vld [vmem:[#allocation3 + $0xd0] sm:$0xff] }
 0x27e   : > { %5110 = vmatpush3.bf16.msra.mxu1 %v5109_v52  ;;  %1869 = vmatprep.mubr.f32.mxu1 %v1499_v41  ;;  %v1554_v41 = vld [vmem:[%s7697_s2 + $0x50] sm:$0xff]  ;;  %v5447_v52 = vpop.permute.xlu0 %5446  ;;  %v5454_v16 = vunpack.i.h.bf16 %v5452_v2 }
 0x27f   : > { %5112 = vmatprep.subr.bf16.mxu1 %v5111_v49  ;;  %v5419_v49 = vunpack.i.h.bf16 %v5417_v28  ;;  %v5449_v10 = vunpack.i.h.bf16 %v5447_v52  ;;  %v5448_v13 = vunpack.i.l.bf16 %v5447_v52  ;;  %v1511_v28 = vld [vmem:[#allocation3 + $0xf8] sm:$0xff] }
 0x280   : > { %5576 = vrot.lane.b32.xlu0 %v7792_v34, %s5817_s14  ;;  %1602 = vperm.xlu1 %5696, %v1552_v17   ;;  %v7793_v34 = vld [vmem:[#allocation17_spill] sm:$0xff]  ;;  %v7794_v17 = vld [vmem:[#allocation16_spill] sm:$0xff] }
 0x281   : > { %1870 = vmatmul.mubr.f32.gmra.mrb[40].mxu1 %v1498_v3  ;;  %v7795_v0 = vpack.i.bf16 %v7793_v34, %v7794_v17  ;;  %v5119_v3 = vpack.c.bf16 %v5444_v8, %v5443_v31  ;;  %v2836_v52 = vld [vmem:[#allocation3 + $0x418] sm:$0xff]  ;;  %v5123_v8 = vpack.c.bf16 %v5449_v10, %v5448_v13  ;;  %v1558_v31 = vld [vmem:[%s7697_s2 + $0x70] sm:$0xff]  ;;  %v4227_v10 = vld [vmem:[%s7697_s2 + $0x80] sm:$0xff] }
 0x282   : > { %5114 = vmatpush3.bf16.msra.mxu1 %v5113_v11  ;;  %1874 = vmatprep.mubr.f32.mxu1 %v1503_v54  ;;  %v1556_v54 = vld [vmem:[%s7697_s2 + $0x60] sm:$0xff]  ;;  %v5121_v11 = vpack.c.bf16 %v5419_v49, %v5418_v57  ;;  %v1510_v57 = vld [vmem:[#allocation3 + $0xf0] sm:$0xff] }
 0x283   : > { %5116 = vmatprep.subr.bf16.mxu1 %v5115_v22  ;;  %v5453_v22 = vunpack.i.l.bf16 %v5452_v2  ;;  %3203 = vmatprep.mubr.f32.mxu0 %v2836_v52  ;;  %v7799_v49 = vld [vmem:[#allocation21_spill] sm:$0xff]  ;;  %v1514_v13 = vld [vmem:[#allocation3 + $0x110] sm:$0xff] }
 0x284   : > { %5586 = vrot.lane.b32.xlu0 %v7795_v0, %s5817_s14  ;;  %1612 = vperm.xlu1 %5696, %v1554_v41   ;;  %v7796_v0 = vld [vmem:[#allocation19_spill] sm:$0xff]  ;;  %v7797_v41 = vld [vmem:[#allocation18_spill] sm:$0xff]  ;;  %v4231_v52 = vld [vmem:[%s7697_s2 + $0xa0] sm:$0xff] }
 0x285   : > { %1875 = vmatmul.mubr.f32.gmra.mrb[42].mxu1 %v1502_v55  ;;  %v7798_v51 = vpack.i.bf16 %v7796_v0, %v7797_v41  ;;  %v2835_v55 = vld [vmem:[#allocation3 + $0x410] sm:$0xff] }
 0x286   : > { %5118 = vmatpush3.bf16.msra.mxu1 %v5117_v48  ;;  %1879 = vmatprep.mubr.f32.mxu1 %v1507_v61  ;;  %v1515_v61 = vld [vmem:[#allocation3 + $0x118] sm:$0xff]  ;;  %v5125_v48 = vpack.c.bf16 %v5454_v16, %v5453_v22  ;;  %v7803_v16 = vpack.i.bf16 %v6722_v33, %v6716_v20  ;;  %v1522_v22 = vld [vmem:[#allocation3 + $0x150] sm:$0xff]  ;;  %v7805_v20 = vpack.i.bf16 %v6768_v37, %v6762_v5 }
 0x287   : > { %5120 = vmatprep.subr.bf16.mxu1 %v5119_v3  ;;  %3204 = vmatmul.mubr.f32.vlgmr.msra.gmra.mrb[128].mxu0 %v2835_v55  ;;  %v1519_v3 = vld [vmem:[#allocation3 + $0x138] sm:$0xff]  ;;  %v5457_v55 = vpop.permute.xlu1 %5456 }
 0x288   : > { %5596 = vrot.lane.b32.xlu0 %v7798_v51, %s5817_s14  ;;  %1622 = vperm.xlu1 %5696, %v1556_v54   ;;  %v7800_v51 = vld [vmem:[#allocation20_spill] sm:$0xff]  ;;  %v7802_v54 = vpack.i.bf16 %v6699_v58, %v6693_v47  ;;  %v7804_v47 = vpack.i.bf16 %v6745_v59, %v6739_v1  ;;  %v7806_v1 = vpack.i.bf16 %v6791_v35, %v6782_v29  ;;  %v1538_v35 = vld [vmem:[#allocation3 + $0x1d0] sm:$0xff] }
 0x289   : > { %1880 = vmatmul.mubr.f32.gmra.mrb[44].mxu1 %v1506_v24  ;;  %v7801_v2 = vpack.i.bf16 %v7799_v49, %v7800_v51  ;;  %v4229_v24 = vld [vmem:[%s7697_s2 + $0x90] sm:$0xff]  ;;  %v1527_v58 = vld [vmem:[#allocation3 + $0x178] sm:$0xff] }
 0x28a   : > { %5122 = vmatpush3.bf16.msra.mxu1 %v5121_v11  ;;  %1884 = vmatprep.mubr.f32.mxu1 %v1511_v28  ;;  %v1518_v28 = vld [vmem:[#allocation3 + $0x130] sm:$0xff]  ;;  %v1523_v11 = vld [vmem:[#allocation3 + $0x158] sm:$0xff] }
 0x28b   : > { %5124 = vmatprep.subr.bf16.mxu1 %v5123_v8  ;;  %v1526_v8 = vld [vmem:[#allocation3 + $0x170] sm:$0xff]  ;;  %v1531_v33 = vld [vmem:[#allocation3 + $0x198] sm:$0xff]  ;;  %v5462_v37 = vpop.permute.xlu1 %5461 }
 0x28c   : > { %5606 = vrot.lane.b32.xlu0 %v7801_v2, %s5817_s14  ;;  %1632 = vperm.xlu1 %5696, %v1558_v31   ;;  %v1530_v31 = vld [vmem:[#allocation3 + $0x190] sm:$0xff]  ;;  %v1535_v59 = vld [vmem:[#allocation3 + $0x1b8] sm:$0xff] }
 0x28d   : > { %1885 = vmatmul.mubr.f32.gmra.mrb[46].mxu1 %v1510_v57  ;;  %v4233_v57 = vld [vmem:[%s7697_s2 + $0xb0] sm:$0xff]  ;;  %v1539_v5 = vld [vmem:[#allocation3 + $0x1d8] sm:$0xff] }
 0x28e   : > { %5126 = vmatpush3.bf16.msra.mxu1 %v5125_v48  ;;  %1889 = vmatprep.mubr.f32.mxu1 %v1515_v61  ;;  %v1534_v61 = vld [vmem:[#allocation3 + $0x1b0] sm:$0xff]  ;;  %v7807_v48 = vpack.i.bf16 %v6814_v60, %v6805_v25 }
 0x28f   : > { %v6973_v29 = vpop.permute.xlu1 %5466  ;;  %v1542_v60 = vld [vmem:[#allocation3 + $0x1f0] sm:$0xff] }
 0x290   : > { %5616 = vrot.lane.b32.xlu0 %v7802_v54, %s5817_s14  ;;  %2111 = vperm.xlu1 %5696, %v4227_v10   ;;  %v7808_v54 = vpack.i.bf16 %v6839_v36, %v6830_v7  ;;  %v7809_v7 = vpack.i.bf16 %v6862_v45, %v6853_v43  ;;  %v1544_v36 = vld [vmem:[%s7697_s2] sm:$0xff]  ;;  %v4237_v43 = vld [vmem:[%s7697_s2 + $0xd0] sm:$0xff] }
 0x291   : > { %1890 = vmatmul.mubr.f32.gmra.mrb[48].mxu1 %v1514_v13 }
 0x292   : > { %1894 = vmatprep.mubr.f32.mxu1 %v1519_v3  ;;  %v1543_v3 = vld [vmem:[#allocation3 + $0x1f8] sm:$0xff] }
 0x294   : > { %5626 = vrot.lane.b32.xlu0 %v7803_v16, %s5817_s14  ;;  %2121 = vperm.xlu1 %5696, %v4229_v24   ;;  %v4235_v24 = vld [vmem:[%s7697_s2 + $0xc0] sm:$0xff]  ;;  %v5459_v16 = vunpack.i.h.bf16 %v5457_v55 }
 0x295   : > { %1895 = vmatmul.mubr.f32.gmra.mrb[50].mxu1 %v1518_v28  ;;  %v6982_v28 = vpop.permute.xlu1 %5471 }
 0x296   : > { %1899 = vmatprep.mubr.f32.mxu1 %v1523_v11  ;;  %v2029_v11 = vld [vmem:[#allocation3 + $0x208] sm:$0xff] }
 0x298   : > { %5636 = vrot.lane.b32.xlu0 %v7804_v47, %s5817_s14  ;;  %2131 = vperm.xlu1 %5696, %v4231_v52   ;;  %v2028_v47 = vld [vmem:[#allocation3 + $0x200] sm:$0xff] }
 0x299   : > { %1900 = vmatmul.mubr.f32.gmra.mrb[52].mxu1 %v1522_v22  ;;  %v5458_v22 = vunpack.i.l.bf16 %v5457_v55  ;;  %v6991_v52 = vpop.permute.xlu1 %5476  ;;  %v5464_v55 = vunpack.i.h.bf16 %v5462_v37 }
 0x29a   : > { %1904 = vmatprep.mubr.f32.mxu1 %v1527_v58 }
 0x29c   : > { %5646 = vrot.lane.b32.xlu0 %v7805_v20, %s5817_s14  ;;  %2141 = vperm.xlu1 %5696, %v4233_v57   ;;  %v2033_v20 = vld [vmem:[#allocation3 + $0x228] sm:$0xff]  ;;  %v2032_v57 = vld [vmem:[#allocation3 + $0x220] sm:$0xff] }
 0x29d   : > { %1905 = vmatmul.mubr.f32.gmra.mrb[54].mxu1 %v1526_v8 }
 0x29e   : > { %1909 = vmatprep.mubr.f32.mxu1 %v1531_v33 }
 0x2a0   : > { %5656 = vrot.lane.b32.xlu0 %v7806_v1, %s5817_s14  ;;  %2151 = vperm.xlu1 %5696, %v4235_v24   ;;  %v1547_v1 = vld [vmem:[%s7697_s2 + $0x18] sm:$0xff] }
 0x2a1   : > { %1910 = vmatmul.mubr.f32.gmra.mrb[56].mxu1 %v1530_v31  ;;  %v5129_v31 = vpack.c.bf16 %v5459_v16, %v5458_v22  ;;  %v4239_v16 = vld [vmem:[%s7697_s2 + $0xe0] sm:$0xff]  ;;  %v1551_v22 = vld [vmem:[%s7697_s2 + $0x38] sm:$0xff] }
 0x2a2   : > { %1914 = vmatprep.mubr.f32.mxu1 %v1535_v59  ;;  %v5463_v59 = vunpack.i.l.bf16 %v5462_v37 }
 0x2a4   : > { %5666 = vrot.lane.b32.xlu0 %v7807_v48, %s5817_s14  ;;  %2161 = vperm.xlu1 %5696, %v4237_v43   ;;  %v5133_v37 = vpack.c.bf16 %v5464_v55, %v5463_v59  ;;  %v1549_v48 = vld [vmem:[%s7697_s2 + $0x28] sm:$0xff]  ;;  %v5473_v55 = vunpack.i.l.bf16 %v6982_v28  ;;  %v2044_v43 = vld [vmem:[#allocation3 + $0x280] sm:$0xff] }
 0x2a5   : > { %1915 = vmatmul.mubr.f32.gmra.mrb[58].mxu1 %v1534_v61  ;;  %v6999_v61 = vpop.permute.xlu1 %5481 }
 0x2a6   : > { %v5492_v2 = vpop.permute.xlu0 %5491  ;;  %1919 = vmatprep.mubr.f32.mxu1 %v1539_v5  ;;  %v2037_v5 = vld [vmem:[#allocation3 + $0x248] sm:$0xff] }
 0x2a7   : > { %v5494_v10 = vunpack.i.h.bf16 %v5492_v2  ;;  %v5493_v13 = vunpack.i.l.bf16 %v5492_v2  ;;  %v5469_v2 = vunpack.i.h.bf16 %v6973_v29 }
 0x2a8   : > { %5676 = vrot.lane.b32.xlu0 %v7808_v54, %s5817_s14  ;;  %2171 = vperm.xlu1 %5696, %v4239_v16   ;;  %v1557_v16 = vld [vmem:[%s7697_s2 + $0x68] sm:$0xff] }
 0x2a9   : > { %1920 = vmatmul.mubr.f32.gmra.mrb[60].mxu1 %v1538_v35  ;;  %v5127_v25 = vpack.c.bf16 %v5494_v10, %v5493_v13  ;;  %v5468_v35 = vunpack.i.l.bf16 %v6973_v29  ;;  %v2036_v13 = vld [vmem:[#allocation3 + $0x240] sm:$0xff]  ;;  %v7006_v54 = vpop.permute.xlu1 %5486 }
 0x2aa   : > { %1924 = vmatprep.mubr.f32.mxu1 %v1543_v3  ;;  %v2840_v3 = vld [vmem:[#allocation3 + $0x438] sm:$0xff] }
 0x2ab   : > { %5128 = vmatprep.subr.bf16.mxu1 %v5127_v25  ;;  %3208 = vmatprep.mubr.f32.mxu0 %v2840_v3  ;;  %v2852_v3 = vld [vmem:[#allocation3 + $0x498] sm:$0xff] }
 0x2ac   : > { %5686 = vrot.lane.b32.xlu0 %v7809_v7, %s5817_s14  ;;  %v5137_v7 = vpack.c.bf16 %v5469_v2, %v5468_v35 }
 0x2ad   : > { %1925 = vmatmul.mubr.f32.gmra.mrb[62].mxu1 %v1542_v60  ;;  %v2041_v60 = vld [vmem:[#allocation3 + $0x268] sm:$0xff] }
 0x2ae   : > { %v5497_v58 = vpop.permute.xlu0 %5496  ;;  %2509 = vmatprep.mubr.f32.mxu1 %v2029_v11  ;;  %v2839_v11 = vld [vmem:[#allocation3 + $0x430] sm:$0xff] }
 0x2af   : > { %v5499_v8 = vunpack.i.h.bf16 %v5497_v58  ;;  %v5498_v33 = vunpack.i.l.bf16 %v5497_v58  ;;  %3209 = vmatmul.mubr.f32.gmra.mrb[130].mxu0 %v2839_v11  ;;  %v2844_v58 = vld [vmem:[#allocation3 + $0x458] sm:$0xff] }
 0x2b0   : > { %1562 = vperm.xlu0 %5695, %v1544_v36   ;;  %v2040_v36 = vld [vmem:[#allocation3 + $0x260] sm:$0xff]  ;;  %3213 = vmatprep.mubr.f32.mxu0 %v2844_v58 }
 0x2b1   : > { %2510 = vmatmul.mubr.f32.vlgmr.msra.gmra.mrb[64].mxu1 %v2028_v47  ;;  %v5131_v45 = vpack.c.bf16 %v5499_v8, %v5498_v33  ;;  %v7014_v47 = vpop.permute.xlu1 %5531  ;;  %v2045_v8 = vld [vmem:[#allocation3 + $0x288] sm:$0xff]  ;;  %v2843_v33 = vld [vmem:[#allocation3 + $0x450] sm:$0xff]  ;;  %v2052_v58 = vld [vmem:[#allocation3 + $0x2c0] sm:$0xff] }
 0x2b2   : > { %5130 = vmatpush3.bf16.msra.mxu1 %v5129_v31  ;;  %2514 = vmatprep.mubr.f32.mxu1 %v2033_v20  ;;  %v1553_v20 = vld [vmem:[%s7697_s2 + $0x48] sm:$0xff]  ;;  %v5474_v31 = vunpack.i.h.bf16 %v6982_v28  ;;  %v1555_v28 = vld [vmem:[%s7697_s2 + $0x58] sm:$0xff] }
 0x2b3   : > { %5132 = vmatprep.subr.bf16.mxu1 %v5131_v45  ;;  %3214 = vmatmul.mubr.f32.gmra.mrb[132].mxu0 %v2843_v33  ;;  %v2848_v45 = vld [vmem:[#allocation3 + $0x478] sm:$0xff] }
 0x2b4   : > { %1577 = vperm.xlu0 %5695, %v1547_v1   ;;  %3218 = vmatprep.mubr.f32.mxu0 %v2848_v45 }
 0x2b5   : > { %2515 = vmatmul.mubr.f32.gmra.mrb[66].mxu1 %v2032_v57  ;;  %v7024_v2 = vpop.permute.xlu1 %5541 }
 0x2b6   : > { %5134 = vmatpush3.bf16.msra.mxu1 %v5133_v37  ;;  %v5502_v10 = vpop.permute.xlu0 %5501  ;;  %2519 = vmatprep.mubr.f32.mxu1 %v2037_v5  ;;  %v2049_v5 = vld [vmem:[#allocation3 + $0x2a8] sm:$0xff]  ;;  %v2847_v37 = vld [vmem:[#allocation3 + $0x470] sm:$0xff] }
 0x2b7   : > { %v5504_v24 = vunpack.i.h.bf16 %v5502_v10  ;;  %v5503_v25 = vunpack.i.l.bf16 %v5502_v10  ;;  %3219 = vmatmul.mubr.f32.gmra.mrb[134].mxu0 %v2847_v37  ;;  %v5141_v10 = vpack.c.bf16 %v5474_v31, %v5473_v55  ;;  %v2057_v55 = vld [vmem:[#allocation3 + $0x2e8] sm:$0xff]  ;;  %v2056_v37 = vld [vmem:[#allocation3 + $0x2e0] sm:$0xff] }
 0x2b8   : > { %1587 = vperm.xlu0 %5695, %v1549_v48   ;;  %v4241_v48 = vld [vmem:[%s7697_s2 + $0xf0] sm:$0xff]  ;;  %3223 = vmatprep.mubr.f32.mxu0 %v2852_v3 }
 0x2b9   : > { %2520 = vmatmul.mubr.f32.gmra.mrb[68].mxu1 %v2036_v13  ;;  %v5135_v29 = vpack.c.bf16 %v5504_v24, %v5503_v25  ;;  %v2048_v13 = vld [vmem:[#allocation3 + $0x2a0] sm:$0xff]  ;;  %2181 = vperm.xlu1 %5696, %v4241_v48   ;;  %v2053_v24 = vld [vmem:[#allocation3 + $0x2c8] sm:$0xff]  ;;  %v7036_v33 = vpop.permute.xlu1 %5551  ;;  %v2860_v48 = vld [vmem:[#allocation3 + $0x4d8] sm:$0xff] }
 0x2ba   : > { %2524 = vmatprep.mubr.f32.mxu1 %v2041_v60  ;;  %v2851_v60 = vld [vmem:[#allocation3 + $0x490] sm:$0xff] }
 0x2bb   : > { %5136 = vmatprep.subr.bf16.mxu1 %v5135_v29  ;;  %3224 = vmatmul.mubr.f32.gmra.mrb[136].mxu0 %v2851_v60  ;;  %v5484_v60 = vunpack.i.h.bf16 %v6999_v61 }
 0x2bc   : > { %5138 = vmatpush3.bf16.msra.mxu1 %v5137_v7  ;;  %1597 = vperm.xlu0 %5695, %v1551_v22   ;;  %v5479_v22 = vunpack.i.h.bf16 %v6991_v52  ;;  %v5478_v7 = vunpack.i.l.bf16 %v6991_v52  ;;  %v1559_v52 = vld [vmem:[%s7697_s2 + $0x78] sm:$0xff] }
 0x2bd   : > { %2525 = vmatmul.mubr.f32.gmra.mrb[70].mxu1 %v2040_v36  ;;  %v7043_v3 = vpop.permute.xlu1 %5561 }
 0x2be   : > { %v5507_v59 = vpop.permute.xlu0 %5506  ;;  %2529 = vmatprep.mubr.f32.mxu1 %v2045_v8  ;;  %v2856_v8 = vld [vmem:[#allocation3 + $0x4b8] sm:$0xff] }
 0x2bf   : > { %v5509_v1 = vunpack.i.h.bf16 %v5507_v59  ;;  %v5508_v57 = vunpack.i.l.bf16 %v5507_v59  ;;  %3228 = vmatprep.mubr.f32.mxu0 %v2856_v8  ;;  %v2065_v8 = vld [vmem:[#allocation3 + $0x328] sm:$0xff] }
 0x2c0   : > { %1607 = vperm.xlu0 %5695, %v1553_v20  }
 0x2c1   : > { %2530 = vmatmul.mubr.f32.gmra.mrb[72].mxu1 %v2044_v43  ;;  %v5139_v35 = vpack.c.bf16 %v5509_v1, %v5508_v57  ;;  %v2855_v43 = vld [vmem:[#allocation3 + $0x4b0] sm:$0xff] }
 0x2c2   : > { %2534 = vmatprep.mubr.f32.mxu1 %v2049_v5  ;;  %3229 = vmatmul.mubr.f32.gmra.mrb[138].mxu0 %v2855_v43  ;;  %v5145_v5 = vpack.c.bf16 %v5479_v22, %v5478_v7  ;;  %v2060_v22 = vld [vmem:[#allocation3 + $0x300] sm:$0xff]  ;;  %v2864_v7 = vld [vmem:[#allocation3 + $0x4f8] sm:$0xff] }
 0x2c3   : > { %5140 = vmatprep.subr.bf16.mxu1 %v5139_v35  ;;  %v4359_v25 = vpop.f32.mrb[0].mxu1  ;;  %v2061_v35 = vld [vmem:[#allocation3 + $0x308] sm:$0xff]  ;;  %3233 = vmatprep.mubr.f32.mxu0 %v2860_v48 }
 0x2c4   : > { %5142 = vmatpush3.bf16.msra.mxu1 %v5141_v10  ;;  %1617 = vperm.xlu0 %5695, %v1555_v28   ;;  %v4360_v11 = vpop.f32.mrb[1].mxu1  ;;  %v2859_v10 = vld [vmem:[#allocation3 + $0x4d0] sm:$0xff] }
 0x2c5   : > { %2535 = vmatmul.mubr.f32.gmra.mrb[74].mxu1 %v2048_v13  ;;  %v7032_v29 = vadd.f32 %v4360_v11, %v4359_v25  ;;  %v5483_v11 = vunpack.i.l.bf16 %v6999_v61  ;;  %v4230_v61 = vld [vmem:[%s7697_s2 + $0x98] sm:$0xff] }
 0x2c6   : > { %v5512_v36 = vpop.permute.xlu0 %5511  ;;  %2539 = vmatprep.mubr.f32.mxu1 %v2053_v24  ;;  %v4228_v24 = vld [vmem:[%s7697_s2 + $0x88] sm:$0xff]  ;;  %3234 = vmatmul.mubr.f32.gmra.mrb[140].mxu0 %v2859_v10 }
 0x2c7   : > { %v5514_v20 = vunpack.i.h.bf16 %v5512_v36  ;;  %v5513_v31 = vunpack.i.l.bf16 %v5512_v36  ;;  %v4362_v59 = vpop.f32.mrb[2].mxu1  ;;  %3238 = vmatprep.mubr.f32.mxu0 %v2864_v7 }
 0x2c8   : > { %1627 = vperm.xlu0 %5695, %v1557_v16   ;;  %v4363_v45 = vpop.f32.mrb[3].mxu1 }
 0x2c9   : > { %2540 = vmatmul.mubr.f32.gmra.mrb[76].mxu1 %v2052_v58  ;;  %v5143_v1 = vpack.c.bf16 %v5514_v20, %v5513_v31  ;;  %v7041_v57 = vadd.f32 %v4363_v45, %v4362_v59  ;;  %v2863_v31 = vld [vmem:[#allocation3 + $0x4f0] sm:$0xff]  ;;  %v5149_v45 = vpack.c.bf16 %v5484_v60, %v5483_v11  ;;  %v5488_v60 = vunpack.i.l.bf16 %v7006_v54 }
 0x2ca   : > { %2544 = vmatprep.mubr.f32.mxu1 %v2057_v55  ;;  %3239 = vmatmul.mubr.f32.gmra.mrb[142].mxu0 %v2863_v31 }
 0x2cb   : > { %5144 = vmatprep.subr.bf16.mxu1 %v5143_v1  ;;  %v4365_v28 = vpop.f32.mrb[4].mxu1  ;;  %v2064_v1 = vld [vmem:[#allocation3 + $0x320] sm:$0xff] }
 0x2cc   : > { %5146 = vmatpush3.bf16.msra.mxu1 %v5145_v5  ;;  %1637 = vperm.xlu0 %5695, %v1559_v52   ;;  %v4366_v13 = vpop.f32.mrb[5].mxu1  ;;  %v2868_v52 = vld [vmem:[#allocation3 + $0x518] sm:$0xff]  ;;  %v7057_v5 = vpop.permute.xlu1 %5571 }
 0x2cd   : > { %2545 = vmatmul.mubr.f32.gmra.mrb[78].mxu1 %v2056_v37  ;;  %v7048_v25 = vadd.f32 %v4366_v13, %v4365_v28  ;;  %v2069_v37 = vld [vmem:[#allocation3 + $0x348] sm:$0xff]  ;;  %3243 = vmatprep.mubr.f32.mxu0 %v2868_v52  ;;  %v2876_v52 = vld [vmem:[#allocation3 + $0x558] sm:$0xff] }
 0x2ce   : > { %v5517_v16 = vpop.permute.xlu0 %5516  ;;  %2549 = vmatprep.mubr.f32.mxu1 %v2061_v35  ;;  %v2867_v35 = vld [vmem:[#allocation3 + $0x510] sm:$0xff]  ;;  %v4232_v13 = vld [vmem:[%s7697_s2 + $0xa8] sm:$0xff] }
 0x2cf   : > { %v5519_v36 = vunpack.i.h.bf16 %v5517_v16  ;;  %v5518_v58 = vunpack.i.l.bf16 %v5517_v16  ;;  %v4368_v20 = vpop.f32.mrb[6].mxu1  ;;  %3244 = vmatmul.mubr.f32.gmra.mrb[144].mxu0 %v2867_v35  ;;  %v2068_v16 = vld [vmem:[#allocation3 + $0x340] sm:$0xff]  ;;  %v2875_v35 = vld [vmem:[#allocation3 + $0x550] sm:$0xff] }
 0x2d0   : > { %2116 = vperm.xlu0 %5695, %v4228_v24   ;;  %v4369_v55 = vpop.f32.mrb[7].mxu1  ;;  %v5489_v24 = vunpack.i.h.bf16 %v7006_v54  ;;  %v4234_v54 = vld [vmem:[%s7697_s2 + $0xb8] sm:$0xff] }
 0x2d1   : > { %2550 = vmatmul.mubr.f32.gmra.mrb[80].mxu1 %v2060_v22  ;;  %v5147_v59 = vpack.c.bf16 %v5519_v36, %v5518_v58  ;;  %v7052_v43 = vadd.f32 %v4369_v55, %v4368_v20  ;;  %v2872_v22 = vld [vmem:[#allocation3 + $0x538] sm:$0xff]  ;;  %v2073_v58 = vld [vmem:[#allocation3 + $0x368] sm:$0xff]  ;;  %v2871_v20 = vld [vmem:[#allocation3 + $0x530] sm:$0xff]  ;;  %v7066_v55 = vpop.permute.xlu1 %5581 }
 0x2d2   : > { %2554 = vmatprep.mubr.f32.mxu1 %v2065_v8  ;;  %3248 = vmatprep.mubr.f32.mxu0 %v2872_v22 }
 0x2d3   : > { %5148 = vmatprep.subr.bf16.mxu1 %v5147_v59  ;;  %v4371_v48 = vpop.f32.mrb[8].mxu1  ;;  %3249 = vmatmul.mubr.f32.gmra.mrb[146].mxu0 %v2871_v20 }
 0x2d4   : > { %5150 = vmatpush3.bf16.msra.mxu1 %v5149_v45  ;;  %2126 = vperm.xlu0 %5695, %v4230_v61   ;;  %v4372_v28 = vpop.f32.mrb[9].mxu1  ;;  %v5153_v45 = vpack.c.bf16 %v5489_v24, %v5488_v60  ;;  %v4236_v24 = vld [vmem:[%s7697_s2 + $0xc8] sm:$0xff]  ;;  %v5534_v60 = vunpack.i.h.bf16 %v7014_v47 }
 0x2d5   : > { %2555 = vmatmul.mubr.f32.gmra.mrb[82].mxu1 %v2064_v1  ;;  %v7059_v10 = vadd.f32 %v4372_v28, %v4371_v48  ;;  %v2072_v1 = vld [vmem:[#allocation3 + $0x360] sm:$0xff]  ;;  %3253 = vmatprep.mubr.f32.mxu0 %v2876_v52 }
 0x2d6   : > { %v5522_v11 = vpop.permute.xlu0 %5521  ;;  %2559 = vmatprep.mubr.f32.mxu1 %v2069_v37  ;;  %v2077_v37 = vld [vmem:[#allocation3 + $0x388] sm:$0xff]  ;;  %v4259_v28 = vld [vmem:[%s7697_s2 + $0x100] sm:$0xff] }
 0x2d7   : > { %v5524_v7 = vunpack.i.h.bf16 %v5522_v11  ;;  %v5523_v36 = vunpack.i.l.bf16 %v5522_v11  ;;  %v4374_v8 = vpop.f32.mrb[10].mxu1  ;;  %3254 = vmatmul.mubr.f32.gmra.mrb[148].mxu0 %v2875_v35  ;;  %2916 = vperm.xlu1 %5696, %v4259_v28   ;;  %v2080_v28 = vld [vmem:[#allocation3 + $0x3a0] sm:$0xff] }
 0x2d8   : > { %v4375_v31 = vpop.f32.mrb[11].mxu1  ;;  %2136 = vperm.xlu0 %5695, %v4232_v13  }
 0x2d9   : > { %2560 = vmatmul.mubr.f32.gmra.mrb[84].mxu1 %v2068_v16  ;;  %v5151_v59 = vpack.c.bf16 %v5524_v7, %v5523_v36  ;;  %v7068_v61 = vadd.f32 %v4375_v31, %v4374_v8  ;;  %v5533_v16 = vunpack.i.l.bf16 %v7014_v47  ;;  %v2076_v7 = vld [vmem:[#allocation3 + $0x380] sm:$0xff]  ;;  %v2880_v36 = vld [vmem:[#allocation3 + $0x578] sm:$0xff]  ;;  %v2081_v31 = vld [vmem:[#allocation3 + $0x3a8] sm:$0xff] }
 0x2da   : > { %2564 = vmatprep.mubr.f32.mxu1 %v2073_v58  ;;  %v7083_v58 = vpop.permute.xlu1 %5591  ;;  %3258 = vmatprep.mubr.f32.mxu0 %v2880_v36 }
 0x2db   : > { %5152 = vmatprep.subr.bf16.mxu1 %v5151_v59  ;;  %v4377_v48 = vpop.f32.mrb[12].mxu1 }
 0x2dc   : > { %5154 = vmatpush3.bf16.msra.mxu1 %v5153_v45  ;;  %v4378_v13 = vpop.f32.mrb[13].mxu1  ;;  %2146 = vperm.xlu0 %5695, %v4234_v54   ;;  %v2879_v54 = vld [vmem:[#allocation3 + $0x570] sm:$0xff] }
 0x2dd   : > { %2565 = vmatmul.mubr.f32.gmra.mrb[86].mxu1 %v2072_v1  ;;  %v7076_v11 = vadd.f32 %v4378_v13, %v4377_v48  ;;  %v4261_v45 = vld [vmem:[%s7697_s2 + $0x110] sm:$0xff]  ;;  %3259 = vmatmul.mubr.f32.gmra.mrb[150].mxu0 %v2879_v54  ;;  %v5157_v48 = vpack.c.bf16 %v5534_v60, %v5533_v16  ;;  %v2884_v13 = vld [vmem:[#allocation3 + $0x598] sm:$0xff]  ;;  %v7810_v60 = vpack.c.bf16 %v6431_v46, %v6429_v23  ;;  %v2084_v54 = vld [vmem:[#allocation3 + $0x3c0] sm:$0xff] }
 0x2de   : > { %v5527_v22 = vpop.permute.xlu0 %5526  ;;  %2569 = vmatprep.mubr.f32.mxu1 %v2077_v37  ;;  %v4238_v37 = vld [vmem:[%s7697_s2 + $0xd8] sm:$0xff]  ;;  %2926 = vperm.xlu1 %5696, %v4261_v45   ;;  %v4265_v46 = vld [vmem:[%s7697_s2 + $0x130] sm:$0xff] }
 0x2df   : > { %v5529_v8 = vunpack.i.h.bf16 %v5527_v22  ;;  %v5528_v20 = vunpack.i.l.bf16 %v5527_v22  ;;  %v4380_v59 = vpop.f32.mrb[14].mxu1  ;;  %v2085_v22 = vld [vmem:[#allocation3 + $0x3c8] sm:$0xff]  ;;  %3263 = vmatprep.mubr.f32.mxu0 %v2884_v13  ;;  %v2888_v45 = vld [vmem:[#allocation3 + $0x5b8] sm:$0xff] }
 0x2e0   : > { %v4381_v1 = vpop.f32.mrb[15].mxu1  ;;  %2156 = vperm.xlu0 %5695, %v4236_v24   ;;  %v2883_v24 = vld [vmem:[#allocation3 + $0x590] sm:$0xff] }
 0x2e1   : > { %v5155_v47 = vpack.c.bf16 %v5529_v8, %v5528_v20  ;;  %2570 = vmatmul.mubr.f32.gmra.mrb[88].mxu1 %v2076_v7  ;;  %v7088_v52 = vadd.f32 %v4381_v1, %v4380_v59  ;;  %v4263_v8 = vld [vmem:[%s7697_s2 + $0x120] sm:$0xff]  ;;  %v7098_v20 = vpop.permute.xlu1 %5601  ;;  %3264 = vmatmul.mubr.f32.gmra.mrb[152].mxu0 %v2883_v24  ;;  %v2089_v1 = vld [vmem:[#allocation3 + $0x3e8] sm:$0xff] }
 0x2e2   : > { %v7093_v35 = vpop.permute.xlu0 %5536  ;;  %2574 = vmatprep.mubr.f32.mxu1 %v2081_v31  ;;  %v4240_v31 = vld [vmem:[%s7697_s2 + $0xe8] sm:$0xff]  ;;  %3268 = vmatprep.mubr.f32.mxu0 %v2888_v45 }
 0x2e3   : > { %5156 = vmatprep.subr.bf16.mxu1 %v5155_v47  ;;  %v4383_v36 = vpop.f32.mrb[16].mxu1  ;;  %2936 = vperm.xlu1 %5696, %v4263_v8  }
 0x2e4   : > { %5158 = vmatpush3.bf16.msra.mxu1 %v5157_v48  ;;  %v4384_v7 = vpop.f32.mrb[17].mxu1  ;;  %2166 = vperm.xlu0 %5695, %v4238_v37   ;;  %v2887_v37 = vld [vmem:[#allocation3 + $0x5b0] sm:$0xff] }
 0x2e5   : > { %2575 = vmatmul.mubr.f32.gmra.mrb[90].mxu1 %v2080_v28  ;;  %5160 = vmatprep.subr.bf16.mxu1 %v7810_v60  ;;  %v7103_v16 = vadd.f32 %v4384_v7, %v4383_v36  ;;  %v4242_v28 = vld [vmem:[%s7697_s2 + $0xf8] sm:$0xff]  ;;  %v7120_v24 = vpop.permute.xlu1 %5611  ;;  %v2891_v60 = vld [vmem:[#allocation3 + $0x5d0] sm:$0xff] }
 0x2e6   : > { %v7108_v59 = vpop.permute.xlu0 %5546  ;;  %2579 = vmatprep.mubr.f32.mxu1 %v2085_v22  ;;  %v2088_v22 = vld [vmem:[#allocation3 + $0x3e0] sm:$0xff]  ;;  %3269 = vmatmul.mubr.f32.gmra.mrb[154].mxu0 %v2887_v37  ;;  %v2892_v36 = vld [vmem:[#allocation3 + $0x5d8] sm:$0xff]  ;;  %v2030_v37 = vld [vmem:[#allocation3 + $0x210] sm:$0xff] }
 0x2e7   : > { %v4386_v47 = vpop.f32.mrb[18].mxu1  ;;  %v2031_v7 = vld [vmem:[#allocation3 + $0x218] sm:$0xff]  ;;  %3273 = vmatprep.mubr.f32.mxu0 %v2892_v36  ;;  %2946 = vperm.xlu1 %5696, %v4265_v46  }
 0x2e8   : > { %v4387_v48 = vpop.f32.mrb[19].mxu1  ;;  %2176 = vperm.xlu0 %5695, %v4240_v31   ;;  %v2035_v46 = vld [vmem:[#allocation3 + $0x238] sm:$0xff] }
 0x2e9   : > { %2580 = vmatmul.mubr.f32.gmra.mrb[92].mxu1 %v2084_v54  ;;  %v7113_v23 = vadd.f32 %v4387_v48, %v4386_v47  ;;  %v4267_v54 = vld [vmem:[%s7697_s2 + $0x140] sm:$0xff]  ;;  %v2896_v48 = vld [vmem:[#allocation3 + $0x5f8] sm:$0xff] }
 0x2ea   : > { %v7118_v13 = vpop.permute.xlu0 %5556  ;;  %2584 = vmatprep.mubr.f32.mxu1 %v2089_v1  ;;  %v4260_v1 = vld [vmem:[%s7697_s2 + $0x108] sm:$0xff]  ;;  %3274 = vmatmul.mubr.f32.gmra.mrb[156].mxu0 %v2891_v60 }
 0x2eb   : > { %7811 = vst [vmem:[#allocation11_spill] sm:$0xff] %v7113_v23  ;;  %v4389_v8 = vpop.f32.mrb[20].mxu1  ;;  %3278 = vmatprep.mubr.f32.mxu0 %v2896_v48  ;;  %2956 = vperm.xlu1 %5696, %v4267_v54   ;;  %v2895_v23 = vld [vmem:[#allocation3 + $0x5f0] sm:$0xff]  ;;  %v3385_v48 = vld [vmem:[#allocation3 + $0x618] sm:$0xff] }
 0x2ec   : > { %v4390_v31 = vpop.f32.mrb[21].mxu1  ;;  %2186 = vperm.xlu0 %5695, %v4242_v28   ;;  %v2034_v54 = vld [vmem:[#allocation3 + $0x230] sm:$0xff] }
 0x2ed   : > { %2585 = vmatmul.mubr.f32.gmra.mrb[94].mxu1 %v2088_v22  ;;  %v7125_v45 = vadd.f32 %v4390_v31, %v4389_v8  ;;  %v7132_v22 = vpop.permute.xlu1 %5621  ;;  %v4262_v31 = vld [vmem:[%s7697_s2 + $0x118] sm:$0xff] }
 0x2ee   : > { %v7130_v47 = vpop.permute.xlu0 %5566  ;;  %2654 = vmatprep.mubr.f32.mxu1 %v2031_v7  ;;  %v7813_v7 = vpack.c.bf16 %v6292_v19, %v6284_v14  ;;  %3279 = vmatmul.mubr.f32.gmra.mrb[158].mxu0 %v2895_v23  ;;  %v4264_v19 = vld [vmem:[%s7697_s2 + $0x128] sm:$0xff]  ;;  %v4271_v23 = vld [vmem:[%s7697_s2 + $0x160] sm:$0xff] }
 0x2ef   : > { %v4392_v36 = vpop.f32.mrb[22].mxu1  ;;  %4008 = vmatprep.mubr.f32.mxu0 %v3385_v48 }
 0x2f0   : > { %v4393_v28 = vpop.f32.mrb[23].mxu1  ;;  %2921 = vperm.xlu0 %5695, %v4260_v1   ;;  %v4269_v1 = vld [vmem:[%s7697_s2 + $0x150] sm:$0xff] }
 0x2f1   : > { %2655 = vmatmul.mubr.f32.vlgmr.msra.gmra.mrb[96].mxu1 %v2030_v37  ;;  %v7134_v8 = vadd.f32 %v4393_v28, %v4392_v36  ;;  %v7814_v37 = vpack.c.bf16 %v6447_v40, %v6441_v6  ;;  %v2039_v36 = vld [vmem:[#allocation3 + $0x258] sm:$0xff]  ;;  %2966 = vperm.xlu1 %5696, %v4269_v1   ;;  %v2038_v6 = vld [vmem:[#allocation3 + $0x250] sm:$0xff]  ;;  %v7817_v1 = vpack.c.bf16 %v6334_v44, %v6324_v38  ;;  %v4268_v44 = vld [vmem:[%s7697_s2 + $0x148] sm:$0xff] }
 0x2f2   : > { %5162 = vmatpush3.bf16.msra.mxu1 %v7813_v7  ;;  %v7142_v60 = vpop.permute.xlu0 %5576  ;;  %2659 = vmatprep.mubr.f32.mxu1 %v2035_v46  ;;  %v7815_v46 = vpack.c.bf16 %v6314_v32, %v6304_v26  ;;  %v2043_v7 = vld [vmem:[#allocation3 + $0x278] sm:$0xff] }
 0x2f3   : > { %7812 = vst [vmem:[#allocation10_spill] sm:$0xff] %v7134_v8  ;;  %5164 = vmatprep.subr.bf16.mxu1 %v7814_v37  ;;  %v4395_v28 = vpop.f32.mrb[24].mxu1  ;;  %v4266_v32 = vld [vmem:[%s7697_s2 + $0x138] sm:$0xff] }
 0x2f4   : > { %v4396_v8 = vpop.f32.mrb[25].mxu1  ;;  %2931 = vperm.xlu0 %5695, %v4262_v31   ;;  %v7163_v31 = vpop.permute.xlu1 %5631 }
 0x2f5   : > { %2660 = vmatmul.mubr.f32.gmra.mrb[98].mxu1 %v2034_v54  ;;  %v7150_v14 = vadd.f32 %v4396_v8, %v4395_v28  ;;  %v7816_v8 = vpack.c.bf16 %v7784_v30, %v7785_v21  ;;  %2976 = vperm.xlu1 %5696, %v4271_v23   ;;  %v2042_v30 = vld [vmem:[#allocation3 + $0x270] sm:$0xff]  ;;  %v2047_v28 = vld [vmem:[#allocation3 + $0x298] sm:$0xff]  ;;  %v7819_v23 = vpack.c.bf16 %v6354_v56, %v6344_v50  ;;  %v5624_v56 = vunpack.i.h.bf16 %v7132_v22 }
 0x2f6   : > { %5166 = vmatpush3.bf16.msra.mxu1 %v7815_v46  ;;  %v7158_v40 = vpop.permute.xlu0 %5586  ;;  %2664 = vmatprep.mubr.f32.mxu1 %v2039_v36  ;;  %v4273_v21 = vld [vmem:[%s7697_s2 + $0x170] sm:$0xff]  ;;  %v7818_v36 = vpack.c.bf16 %v7787_v18, %v7788_v53  ;;  %v4270_v50 = vld [vmem:[%s7697_s2 + $0x158] sm:$0xff] }
 0x2f7   : > { %5168 = vmatprep.subr.bf16.mxu1 %v7816_v8  ;;  %v4398_v54 = vpop.f32.mrb[26].mxu1  ;;  %v2046_v53 = vld [vmem:[#allocation3 + $0x290] sm:$0xff]  ;;  %v4291_v8 = vld [vmem:[%s7697_s2 + $0x180] sm:$0xff] }
 0x2f8   : > { %v4399_v48 = vpop.f32.mrb[27].mxu1  ;;  %2941 = vperm.xlu0 %5695, %v4264_v19  }
 0x2f9   : > { %2665 = vmatmul.mubr.f32.gmra.mrb[100].mxu1 %v2038_v6  ;;  %v7168_v26 = vadd.f32 %v4399_v48, %v4398_v54  ;;  %v7184_v6 = vpop.permute.xlu1 %5641  ;;  %2986 = vperm.xlu1 %5696, %v4273_v21   ;;  %v2051_v54 = vld [vmem:[#allocation3 + $0x2b8] sm:$0xff]  ;;  %v2050_v21 = vld [vmem:[#allocation3 + $0x2b0] sm:$0xff] }
 0x2fa   : > { %5170 = vmatpush3.bf16.msra.mxu1 %v7817_v1  ;;  %v7176_v37 = vpop.permute.xlu0 %5596  ;;  %2669 = vmatprep.mubr.f32.mxu1 %v2043_v7  ;;  %v7820_v7 = vpack.c.bf16 %v7790_v12, %v7791_v42  ;;  %v7821_v12 = vpack.c.bf16 %v6374_v4, %v6364_v62  ;;  %v4272_v62 = vld [vmem:[%s7697_s2 + $0x168] sm:$0xff] }
 0x2fb   : > { %5172 = vmatprep.subr.bf16.mxu1 %v7818_v36  ;;  %v4401_v19 = vpop.f32.mrb[28].mxu1  ;;  %v4293_v36 = vld [vmem:[%s7697_s2 + $0x190] sm:$0xff] }
 0x2fc   : > { %v4402_v46 = vpop.f32.mrb[29].mxu1  ;;  %2951 = vperm.xlu0 %5695, %v4266_v32  }
 0x2fd   : > { %2670 = vmatmul.mubr.f32.gmra.mrb[102].mxu1 %v2042_v30  ;;  %v7186_v38 = vadd.f32 %v4402_v46, %v4401_v19  ;;  %3465 = vperm.xlu1 %5696, %v4291_v8   ;;  %v5623_v30 = vunpack.i.l.bf16 %v7132_v22  ;;  %v7822_v19 = vpack.c.bf16 %v7793_v34, %v7794_v17  ;;  %v2055_v22 = vld [vmem:[#allocation3 + $0x2d8] sm:$0xff]  ;;  %v5633_v8 = vunpack.i.l.bf16 %v7163_v31 }
 0x2fe   : > { %5174 = vmatpush3.bf16.msra.mxu1 %v7819_v23  ;;  %v7194_v18 = vpop.permute.xlu0 %5606  ;;  %2674 = vmatprep.mubr.f32.mxu1 %v2047_v28  ;;  %v7215_v28 = vpop.permute.xlu1 %5651  ;;  %v7823_v34 = vpack.c.bf16 %v6391_v15, %v6383_v9  ;;  %v5539_v15 = vunpack.i.h.bf16 %v7093_v35 }
 0x2ff   : > { %5176 = vmatprep.subr.bf16.mxu1 %v7820_v7  ;;  %v4404_v48 = vpop.f32.mrb[30].mxu1  ;;  %v7225_v4 = vpack.c.bf16 %v5624_v56, %v5623_v30  ;;  %v2054_v7 = vld [vmem:[#allocation3 + $0x2d0] sm:$0xff]  ;;  %v5538_v56 = vunpack.i.l.bf16 %v7093_v35 }
 0x300   : > { %v4405_v32 = vpop.f32.mrb[31].mxu1  ;;  %2961 = vperm.xlu0 %5695, %v4268_v44   ;;  %v2058_v35 = vld [vmem:[#allocation3 + $0x2f0] sm:$0xff] }
 0x301   : > { %2675 = vmatmul.mubr.f32.gmra.mrb[104].mxu1 %v2046_v53  ;;  %v7202_v1 = vadd.f32 %v4405_v32, %v4404_v48  ;;  %3475 = vperm.xlu1 %5696, %v4293_v36   ;;  %v5634_v53 = vunpack.i.h.bf16 %v7163_v31  ;;  %v7824_v48 = vpack.c.bf16 %v7796_v0, %v7797_v41  ;;  %v2059_v31 = vld [vmem:[#allocation3 + $0x2f8] sm:$0xff] }
 0x302   : > { %5178 = vmatpush3.bf16.msra.mxu1 %v7821_v12  ;;  %v5617_v42 = vpop.permute.xlu0 %5616  ;;  %2679 = vmatprep.mubr.f32.mxu1 %v2051_v54  ;;  %v4295_v54 = vld [vmem:[%s7697_s2 + $0x1a0] sm:$0xff]  ;;  %v7240_v9 = vpop.permute.xlu1 %5661  ;;  %v4274_v0 = vld [vmem:[%s7697_s2 + $0x178] sm:$0xff]  ;;  %v5644_v12 = vunpack.i.h.bf16 %v7184_v6 }
 0x303   : > { %5180 = vmatprep.subr.bf16.mxu1 %v7822_v19  ;;  %v5619_v46 = vunpack.i.h.bf16 %v5617_v42  ;;  %v5618_v44 = vunpack.i.l.bf16 %v5617_v42  ;;  %v7249_v41 = vpack.c.bf16 %v5634_v53, %v5633_v8  ;;  %v5643_v42 = vunpack.i.l.bf16 %v7184_v6  ;;  %v4297_v19 = vld [vmem:[%s7697_s2 + $0x1b0] sm:$0xff]  ;;  %v2063_v6 = vld [vmem:[#allocation3 + $0x318] sm:$0xff]  ;;  %v7827_v8 = vld [vmem:[#allocation9_spill] sm:$0xff] }
 0x304   : > { %2971 = vperm.xlu0 %5695, %v4270_v50  }
 0x305   : > { %v7220_v23 = vpack.c.bf16 %v5619_v46, %v5618_v44  ;;  %2680 = vmatmul.mubr.f32.gmra.mrb[106].mxu1 %v2050_v21  ;;  %3485 = vperm.xlu1 %5696, %v4295_v54   ;;  %v7825_v21 = vpack.c.bf16 %v6407_v39, %v6399_v27  ;;  %v7826_v46 = vpack.c.bf16 %v7799_v49, %v7800_v51  ;;  %v5654_v49 = vunpack.i.h.bf16 %v7215_v28  ;;  %v4299_v54 = vld [vmem:[%s7697_s2 + $0x1c0] sm:$0xff] }
 0x306   : > { %5182 = vmatpush3.bf16.msra.mxu1 %v7823_v34  ;;  %v5627_v17 = vpop.permute.xlu0 %5626  ;;  %2684 = vmatprep.mubr.f32.mxu1 %v2055_v22  ;;  %v5223_v27 = vpack.c.bf16 %v5539_v15, %v5538_v56  ;;  %v7269_v53 = vpack.c.bf16 %v5644_v12, %v5643_v42  ;;  %v5653_v51 = vunpack.i.l.bf16 %v7215_v28  ;;  %v7828_v34 = vpack.c.bf16 %v6423_v63, %v7827_v8  ;;  %v4294_v63 = vld [vmem:[%s7697_s2 + $0x198] sm:$0xff]  ;;  %v2066_v42 = vld [vmem:[#allocation3 + $0x330] sm:$0xff] }
 0x307   : > { %5184 = vmatprep.subr.bf16.mxu1 %v7824_v48  ;;  %v5629_v32 = vunpack.i.h.bf16 %v5627_v17  ;;  %v5628_v50 = vunpack.i.l.bf16 %v5627_v17  ;;  %5256 = vmatprep.subr.bf16.mxu0 %v7220_v23  ;;  %v5672_v48 = vpop.permute.xlu1 %5671  ;;  %v5664_v56 = vunpack.i.h.bf16 %v7240_v9 }
 0x308   : > { %5258 = vmatpush3.bf16.msra.mxu0 %v7225_v4  ;;  %2981 = vperm.xlu0 %5695, %v4272_v62   ;;  %v4292_v62 = vld [vmem:[%s7697_s2 + $0x188] sm:$0xff]  ;;  %v7286_v15 = vpack.c.bf16 %v5654_v49, %v5653_v51  ;;  %v2070_v49 = vld [vmem:[#allocation3 + $0x350] sm:$0xff]  ;;  %v4303_v51 = vld [vmem:[%s7697_s2 + $0x1e0] sm:$0xff] }
 0x309   : > { %v7244_v30 = vpack.c.bf16 %v5629_v32, %v5628_v50  ;;  %2685 = vmatmul.mubr.f32.gmra.mrb[108].mxu1 %v2054_v7  ;;  %3495 = vperm.xlu1 %5696, %v4297_v19   ;;  %v2062_v7 = vld [vmem:[#allocation3 + $0x310] sm:$0xff]  ;;  %v2071_v19 = vld [vmem:[#allocation3 + $0x358] sm:$0xff] }
 0x30a   : > { %5186 = vmatpush3.bf16.msra.mxu1 %v7825_v21  ;;  %v5637_v36 = vpop.permute.xlu0 %5636  ;;  %2689 = vmatprep.mubr.f32.mxu1 %v2059_v31  ;;  %v2067_v31 = vld [vmem:[#allocation3 + $0x338] sm:$0xff]  ;;  %v4301_v21 = vld [vmem:[%s7697_s2 + $0x1d0] sm:$0xff] }
 0x30b   : > { %5188 = vmatprep.subr.bf16.mxu1 %v7826_v46  ;;  %v5639_v44 = vunpack.i.h.bf16 %v5637_v36  ;;  %v5638_v22 = vunpack.i.l.bf16 %v5637_v36  ;;  %5260 = vmatprep.subr.bf16.mxu0 %v7244_v30  ;;  %v5682_v46 = vpop.permute.xlu1 %5681 }
 0x30c   : > { %5262 = vmatpush3.bf16.msra.mxu0 %v7249_v41  ;;  %2991 = vperm.xlu0 %5695, %v4274_v0   ;;  %v5663_v0 = vunpack.i.l.bf16 %v7240_v9  ;;  %v4296_v9 = vld [vmem:[%s7697_s2 + $0x1a8] sm:$0xff] }
 0x30d   : > { %v7264_v39 = vpack.c.bf16 %v5639_v44, %v5638_v22  ;;  %2690 = vmatmul.mubr.f32.gmra.mrb[110].mxu1 %v2058_v35  ;;  %3505 = vperm.xlu1 %5696, %v4299_v54   ;;  %v4298_v54 = vld [vmem:[%s7697_s2 + $0x1b8] sm:$0xff] }
 0x30e   : > { %5190 = vmatpush3.bf16.msra.mxu1 %v7828_v34  ;;  %v5647_v17 = vpop.permute.xlu0 %5646  ;;  %2694 = vmatprep.mubr.f32.mxu1 %v2063_v6  ;;  %v7300_v22 = vpack.c.bf16 %v5664_v56, %v5663_v0  ;;  %v5674_v6 = vunpack.i.h.bf16 %v5672_v48  ;;  %v4305_v56 = vld [vmem:[%s7697_s2 + $0x1f0] sm:$0xff] }
 0x30f   : > { %5224 = vmatprep.subr.bf16.mxu1 %v5223_v27  ;;  %v5649_v32 = vunpack.i.h.bf16 %v5647_v17  ;;  %v5648_v50 = vunpack.i.l.bf16 %v5647_v17  ;;  %5264 = vmatprep.subr.bf16.mxu0 %v7264_v39  ;;  %v5673_v27 = vunpack.i.l.bf16 %v5672_v48  ;;  %v2075_v17 = vld [vmem:[#allocation3 + $0x378] sm:$0xff]  ;;  %v5692_v0 = vpop.permute.xlu1 %5691 }
 0x310   : > { %5266 = vmatpush3.bf16.msra.mxu0 %v7269_v53  ;;  %3470 = vperm.xlu0 %5695, %v4292_v62  }
 0x311   : > { %v7281_v28 = vpack.c.bf16 %v5649_v32, %v5648_v50  ;;  %2695 = vmatmul.mubr.f32.gmra.mrb[112].mxu1 %v2062_v7  ;;  %3515 = vperm.xlu1 %5696, %v4301_v21   ;;  %v7312_v48 = vpack.c.bf16 %v5674_v6, %v5673_v27  ;;  %v5684_v32 = vunpack.i.h.bf16 %v5682_v46  ;;  %v5683_v50 = vunpack.i.l.bf16 %v5682_v46  ;;  %v2079_v21 = vld [vmem:[#allocation3 + $0x398] sm:$0xff]  ;;  %v2078_v27 = vld [vmem:[#allocation3 + $0x390] sm:$0xff] }
 0x312   : > { %v5657_v12 = vpop.permute.xlu0 %5656  ;;  %2699 = vmatprep.mubr.f32.mxu1 %v2067_v31  ;;  %v5694_v46 = vunpack.i.h.bf16 %v5692_v0 }
 0x313   : > { %v5659_v36 = vunpack.i.h.bf16 %v5657_v12  ;;  %v5658_v35 = vunpack.i.l.bf16 %v5657_v12  ;;  %5268 = vmatprep.subr.bf16.mxu0 %v7281_v28 }
 0x314   : > { %5270 = vmatpush3.bf16.msra.mxu0 %v7286_v15  ;;  %3480 = vperm.xlu0 %5695, %v4294_v63   ;;  %v2074_v63 = vld [vmem:[#allocation3 + $0x370] sm:$0xff] }
 0x315   : > { %v7295_v44 = vpack.c.bf16 %v5659_v36, %v5658_v35  ;;  %2700 = vmatmul.mubr.f32.gmra.mrb[114].mxu1 %v2066_v42  ;;  %3525 = vperm.xlu1 %5696, %v4303_v51   ;;  %v4300_v35 = vld [vmem:[%s7697_s2 + $0x1c8] sm:$0xff]  ;;  %v2083_v51 = vld [vmem:[#allocation3 + $0x3b8] sm:$0xff] }
 0x316   : > { %v5667_v62 = vpop.permute.xlu0 %5666  ;;  %2704 = vmatprep.mubr.f32.mxu1 %v2071_v19  ;;  %v7324_v19 = vpack.c.bf16 %v5684_v32, %v5683_v50  ;;  %v2087_v32 = vld [vmem:[#allocation3 + $0x3d8] sm:$0xff]  ;;  %v3384_v50 = vld [vmem:[#allocation3 + $0x610] sm:$0xff] }
 0x317   : > { %v5669_v8 = vunpack.i.h.bf16 %v5667_v62  ;;  %v5668_v34 = vunpack.i.l.bf16 %v5667_v62  ;;  %5272 = vmatprep.subr.bf16.mxu0 %v7295_v44 }
 0x318   : > { %5274 = vmatpush3.bf16.msra.mxu0 %v7300_v22  ;;  %3490 = vperm.xlu0 %5695, %v4296_v9   ;;  %v5693_v9 = vunpack.i.l.bf16 %v5692_v0  ;;  %v2091_v0 = vld [vmem:[#allocation3 + $0x3f8] sm:$0xff] }
 0x319   : > { %v7307_v7 = vpack.c.bf16 %v5669_v8, %v5668_v34  ;;  %2705 = vmatmul.mubr.f32.gmra.mrb[116].mxu1 %v2070_v49  ;;  %3535 = vperm.xlu1 %5696, %v4305_v56   ;;  %v4302_v34 = vld [vmem:[%s7697_s2 + $0x1d8] sm:$0xff]  ;;  %v2086_v56 = vld [vmem:[#allocation3 + $0x3d0] sm:$0xff] }
 0x31a   : > { %v5677_v31 = vpop.permute.xlu0 %5676  ;;  %2709 = vmatprep.mubr.f32.mxu1 %v2075_v17  ;;  %v7333_v17 = vpack.c.bf16 %v5694_v46, %v5693_v9  ;;  %v2834_v46 = vld [vmem:[#allocation3 + $0x408] sm:$0xff]  ;;  %v5544_v9 = vunpack.i.h.bf16 %v7024_v2 }
 0x31b   : > { %v5679_v12 = vunpack.i.h.bf16 %v5677_v31  ;;  %v5678_v42 = vunpack.i.l.bf16 %v5677_v31  ;;  %5276 = vmatprep.subr.bf16.mxu0 %v7307_v7  ;;  %v3389_v31 = vld [vmem:[#allocation3 + $0x638] sm:$0xff] }
 0x31c   : > { %5278 = vmatpush3.bf16.msra.mxu0 %v7312_v48  ;;  %3500 = vperm.xlu0 %5695, %v4298_v54   ;;  %v2082_v54 = vld [vmem:[#allocation3 + $0x3b0] sm:$0xff] }
 0x31d   : > { %v7319_v36 = vpack.c.bf16 %v5679_v12, %v5678_v42  ;;  %2710 = vmatmul.mubr.f32.gmra.mrb[118].mxu1 %v2074_v63  ;;  %v4304_v63 = vld [vmem:[%s7697_s2 + $0x1e8] sm:$0xff]  ;;  %v3388_v12 = vld [vmem:[#allocation3 + $0x630] sm:$0xff]  ;;  %v3393_v42 = vld [vmem:[#allocation3 + $0x658] sm:$0xff] }
 0x31e   : > { %v5687_v6 = vpop.permute.xlu0 %5686  ;;  %2714 = vmatprep.mubr.f32.mxu1 %v2079_v21  ;;  %v4306_v21 = vld [vmem:[%s7697_s2 + $0x1f8] sm:$0xff] }
 0x31f   : > { %v5689_v62 = vunpack.i.h.bf16 %v5687_v6  ;;  %v5688_v49 = vunpack.i.l.bf16 %v5687_v6  ;;  %5280 = vmatprep.subr.bf16.mxu0 %v7319_v36  ;;  %v5543_v6 = vunpack.i.l.bf16 %v7024_v2  ;;  %v3396_v2 = vld [vmem:[#allocation3 + $0x670] sm:$0xff] }
 0x320   : > { %5282 = vmatpush3.bf16.msra.mxu0 %v7324_v19  ;;  %3510 = vperm.xlu0 %5695, %v4300_v35   ;;  %v2090_v35 = vld [vmem:[#allocation3 + $0x3f0] sm:$0xff] }
 0x321   : > { %v7328_v8 = vpack.c.bf16 %v5689_v62, %v5688_v49  ;;  %2715 = vmatmul.mubr.f32.gmra.mrb[120].mxu1 %v2078_v27  ;;  %v3392_v27 = vld [vmem:[#allocation3 + $0x650] sm:$0xff]  ;;  %v5549_v62 = vunpack.i.h.bf16 %v7108_v59  ;;  %v5548_v49 = vunpack.i.l.bf16 %v7108_v59  ;;  %v3401_v59 = vld [vmem:[#allocation3 + $0x698] sm:$0xff] }
 0x322   : > { %2719 = vmatprep.mubr.f32.mxu1 %v2083_v51  ;;  %v3397_v51 = vld [vmem:[#allocation3 + $0x678] sm:$0xff] }
 0x323   : > { %5284 = vmatprep.subr.bf16.mxu0 %v7328_v8 }
 0x324   : > { %5286 = vmatpush3.bf16.msra.mxu0 %v7333_v17  ;;  %3520 = vperm.xlu0 %5695, %v4302_v34   ;;  %v2833_v34 = vld [vmem:[#allocation3 + $0x400] sm:$0xff] }
 0x325   : > { %2720 = vmatmul.mubr.f32.gmra.mrb[122].mxu1 %v2082_v54  ;;  %v2838_v54 = vld [vmem:[#allocation3 + $0x428] sm:$0xff] }
 0x326   : > { %2724 = vmatprep.mubr.f32.mxu1 %v2087_v32  ;;  %v5225_v32 = vpack.c.bf16 %v5544_v9, %v5543_v6  ;;  %v5569_v6 = vunpack.i.h.bf16 %v7130_v47 }
 0x327   : > { %4009 = vmatmul.mubr.f32.vlgmr.msra.gmra.mrb[160].mxu0 %v3384_v50  ;;  %v5554_v50 = vunpack.i.h.bf16 %v7036_v33 }
 0x328   : > { %4013 = vmatprep.mubr.f32.mxu0 %v3389_v31  ;;  %3530 = vperm.xlu0 %5695, %v4304_v63   ;;  %v5553_v31 = vunpack.i.l.bf16 %v7036_v33  ;;  %v5227_v63 = vpack.c.bf16 %v5549_v62, %v5548_v49  ;;  %v5563_v33 = vunpack.i.l.bf16 %v7043_v3  ;;  %v2841_v62 = vld [vmem:[#allocation3 + $0x440] sm:$0xff]  ;;  %v2846_v49 = vld [vmem:[#allocation3 + $0x468] sm:$0xff] }
 0x329   : > { %2725 = vmatmul.mubr.f32.gmra.mrb[124].mxu1 %v2086_v56  ;;  %v5559_v56 = vunpack.i.h.bf16 %v7118_v13 }
 0x32a   : > { %2729 = vmatprep.mubr.f32.mxu1 %v2091_v0  ;;  %v5558_v0 = vunpack.i.l.bf16 %v7118_v13  ;;  %v5568_v13 = vunpack.i.l.bf16 %v7130_v47  ;;  %v5578_v47 = vunpack.i.l.bf16 %v7142_v60 }
 0x32b   : > { %4014 = vmatmul.mubr.f32.gmra.mrb[162].mxu0 %v3388_v12  ;;  %v2837_v12 = vld [vmem:[#allocation3 + $0x420] sm:$0xff] }
 0x32c   : > { %4018 = vmatprep.mubr.f32.mxu0 %v3393_v42  ;;  %3540 = vperm.xlu0 %5695, %v4306_v21   ;;  %v2842_v42 = vld [vmem:[#allocation3 + $0x448] sm:$0xff]  ;;  %v5229_v21 = vpack.c.bf16 %v5554_v50, %v5553_v31  ;;  %v5231_v9 = vpack.c.bf16 %v5559_v56, %v5558_v0  ;;  %v5579_v50 = vunpack.i.h.bf16 %v7142_v60  ;;  %v3409_v31 = vld [vmem:[#allocation3 + $0x6d8] sm:$0xff]  ;;  %v5584_v0 = vunpack.i.h.bf16 %v7066_v55 }
 0x32d   : > { %2730 = vmatmul.mubr.f32.gmra.mrb[126].mxu1 %v2090_v35  ;;  %v5564_v35 = vunpack.i.h.bf16 %v7043_v3  ;;  %v5573_v3 = vunpack.i.l.bf16 %v7057_v5  ;;  %v5588_v60 = vunpack.i.l.bf16 %v7158_v40 }
 0x32e   : > { %3058 = vmatprep.mubr.f32.mxu1 %v2834_v46  ;;  %v3400_v46 = vld [vmem:[#allocation3 + $0x690] sm:$0xff] }
 0x32f   : > { %4019 = vmatmul.mubr.f32.gmra.mrb[164].mxu0 %v3392_v27  ;;  %v3405_v27 = vld [vmem:[#allocation3 + $0x6b8] sm:$0xff] }
 0x330   : > { %4023 = vmatprep.mubr.f32.mxu0 %v3397_v51  ;;  %v5233_v51 = vpack.c.bf16 %v5564_v35, %v5563_v33  ;;  %v2849_v35 = vld [vmem:[#allocation3 + $0x480] sm:$0xff]  ;;  %v2854_v33 = vld [vmem:[#allocation3 + $0x4a8] sm:$0xff] }
 0x331   : > { %3059 = vmatmul.mubr.f32.vlgmr.msra.gmra.mrb[128].mxu1 %v2833_v34  ;;  %v5574_v34 = vunpack.i.h.bf16 %v7057_v5  ;;  %v5583_v5 = vunpack.i.l.bf16 %v7066_v55  ;;  %v5594_v55 = vunpack.i.h.bf16 %v7083_v58 }
 0x332   : > { %5226 = vmatpush3.bf16.msra.mxu1 %v5225_v32  ;;  %3063 = vmatprep.mubr.f32.mxu1 %v2838_v54  ;;  %v3404_v54 = vld [vmem:[#allocation3 + $0x6b0] sm:$0xff]  ;;  %v5235_v32 = vpack.c.bf16 %v5569_v6, %v5568_v13 }
 0x333   : > { %5228 = vmatprep.subr.bf16.mxu1 %v5227_v63  ;;  %4024 = vmatmul.mubr.f32.gmra.mrb[166].mxu0 %v3396_v2  ;;  %v2845_v2 = vld [vmem:[#allocation3 + $0x460] sm:$0xff]  ;;  %v2850_v63 = vld [vmem:[#allocation3 + $0x488] sm:$0xff]  ;;  %v5237_v56 = vpack.c.bf16 %v5574_v34, %v5573_v3  ;;  %v3412_v6 = vld [vmem:[#allocation3 + $0x6f0] sm:$0xff]  ;;  %v5604_v3 = vunpack.i.h.bf16 %v7098_v20 }
 0x334   : > { %4028 = vmatprep.mubr.f32.mxu0 %v3401_v59  ;;  %v3408_v59 = vld [vmem:[#allocation3 + $0x6d0] sm:$0xff]  ;;  %v2858_v34 = vld [vmem:[#allocation3 + $0x4c8] sm:$0xff] }
 0x335   : > { %3064 = vmatmul.mubr.f32.gmra.mrb[130].mxu1 %v2837_v12  ;;  %v5239_v12 = vpack.c.bf16 %v5579_v50, %v5578_v47  ;;  %v5609_v47 = vunpack.i.h.bf16 %v7194_v18 }
 0x336   : > { %5230 = vmatpush3.bf16.msra.mxu1 %v5229_v21  ;;  %3068 = vmatprep.mubr.f32.mxu1 %v2842_v42  ;;  %v5589_v42 = vunpack.i.h.bf16 %v7158_v40  ;;  %v3413_v21 = vld [vmem:[#allocation3 + $0x6f8] sm:$0xff]  ;;  %v5599_v40 = vunpack.i.h.bf16 %v7176_v37 }
 0x337   : > { %5232 = vmatprep.subr.bf16.mxu1 %v5231_v9  ;;  %4029 = vmatmul.mubr.f32.gmra.mrb[168].mxu0 %v3400_v46  ;;  %v5241_v46 = vpack.c.bf16 %v5584_v0, %v5583_v5  ;;  %v5593_v9 = vunpack.i.l.bf16 %v7083_v58 }
 0x338   : > { %4033 = vmatprep.mubr.f32.mxu0 %v3405_v27  ;;  %v5243_v13 = vpack.c.bf16 %v5589_v42, %v5588_v60  ;;  %v5598_v27 = vunpack.i.l.bf16 %v7176_v37  ;;  %v3416_v37 = vld [vmem:[#allocation3 + $0x710] sm:$0xff]  ;;  %v5614_v42 = vunpack.i.h.bf16 %v7120_v24  ;;  %v5613_v60 = vunpack.i.l.bf16 %v7120_v24  ;;  %v2861_v24 = vld [vmem:[#allocation3 + $0x4e0] sm:$0xff] }
 0x339   : > { %3069 = vmatmul.mubr.f32.gmra.mrb[132].mxu1 %v2841_v62  ;;  %v3417_v62 = vld [vmem:[#allocation3 + $0x718] sm:$0xff]  ;;  %v5245_v58 = vpack.c.bf16 %v5594_v55, %v5593_v9 }
 0x33a   : > { %5234 = vmatpush3.bf16.msra.mxu1 %v5233_v51  ;;  %3073 = vmatprep.mubr.f32.mxu1 %v2846_v49  ;;  %v2853_v49 = vld [vmem:[#allocation3 + $0x4a0] sm:$0xff]  ;;  %v1563_v51 = vpop.permute.xlu0 %1562  ;;  %v5247_v50 = vpack.c.bf16 %v5599_v40, %v5598_v27  ;;  %v2866_v40 = vld [vmem:[#allocation3 + $0x508] sm:$0xff]  ;;  %v5253_v27 = vpack.c.bf16 %v5614_v42, %v5613_v60 }
 0x33b   : > { %5236 = vmatprep.subr.bf16.mxu1 %v5235_v32  ;;  %4034 = vmatmul.mubr.f32.gmra.mrb[170].mxu0 %v3404_v54  ;;  %v5603_v54 = vunpack.i.l.bf16 %v7098_v20  ;;  %v1707_v0 = vadd.f32 %v7032_v29, %v1563_v51  ;;  %v2862_v20 = vld [vmem:[#allocation3 + $0x4e8] sm:$0xff]  ;;  %v3424_v51 = vld [vmem:[#allocation3 + $0x750] sm:$0xff] }
 0x33c   : > { %4038 = vmatprep.mubr.f32.mxu0 %v3409_v31  ;;  %v5608_v31 = vunpack.i.l.bf16 %v7194_v18 }
 0x33d   : > { %3074 = vmatmul.mubr.f32.gmra.mrb[134].mxu1 %v2845_v2  ;;  %v1568_v2 = vpop.permute.xlu1 %1567 }
 0x33e   : > { %5238 = vmatpush3.bf16.msra.mxu1 %v5237_v56  ;;  %3078 = vmatprep.mubr.f32.mxu1 %v2850_v63  ;;  %v3421_v56 = vld [vmem:[#allocation3 + $0x738] sm:$0xff]  ;;  %v1712_v55 = vadd.f32 %v7041_v57, %v1568_v2  ;;  %v3428_v2 = vld [vmem:[#allocation3 + $0x770] sm:$0xff] }
 0x33f   : > { %5240 = vmatprep.subr.bf16.mxu1 %v5239_v12  ;;  %4039 = vmatmul.mubr.f32.gmra.mrb[172].mxu0 %v3408_v59  ;;  %v2857_v59 = vld [vmem:[#allocation3 + $0x4c0] sm:$0xff]  ;;  %v5249_v12 = vpack.c.bf16 %v5604_v3, %v5603_v54  ;;  %v3429_v57 = vld [vmem:[#allocation3 + $0x778] sm:$0xff] }
 0x340   : > { %4043 = vmatprep.mubr.f32.mxu0 %v3413_v21 }
 0x341   : > { %3079 = vmatmul.mubr.f32.gmra.mrb[136].mxu1 %v2849_v35  ;;  %v3420_v35 = vld [vmem:[#allocation3 + $0x730] sm:$0xff] }
 0x342   : > { %5242 = vmatpush3.bf16.msra.mxu1 %v5241_v46  ;;  %3083 = vmatprep.mubr.f32.mxu1 %v2854_v33  ;;  %v5251_v33 = vpack.c.bf16 %v5609_v47, %v5608_v31  ;;  %v3425_v46 = vld [vmem:[#allocation3 + $0x758] sm:$0xff] }
 0x343   : > { %5244 = vmatprep.subr.bf16.mxu1 %v5243_v13  ;;  %4044 = vmatmul.mubr.f32.gmra.mrb[174].mxu0 %v3412_v6  ;;  %v1573_v13 = vpop.permute.xlu1 %1572 }
 0x344   : > { %v4439_v32 = vpop.f32.mrb[32].mxu1  ;;  %4048 = vmatprep.mubr.f32.mxu0 %v3417_v62 }
 0x345   : > { %v4440_v63 = vpop.f32.mrb[33].mxu1  ;;  %3084 = vmatmul.mubr.f32.gmra.mrb[138].mxu1 %v2853_v49 }
 0x346   : > { %v4441_v5 = vadd.f32 %v4440_v63, %v4439_v32  ;;  %5246 = vmatpush3.bf16.msra.mxu1 %v5245_v58  ;;  %3088 = vmatprep.mubr.f32.mxu1 %v2858_v34  ;;  %v1717_v58 = vadd.f32 %v7048_v25, %v1573_v13  ;;  %v2865_v32 = vld [vmem:[#allocation3 + $0x500] sm:$0xff] }
 0x347   : > { %5248 = vmatprep.subr.bf16.mxu1 %v5247_v50  ;;  %4049 = vmatmul.mubr.f32.gmra.mrb[176].mxu0 %v3416_v37  ;;  %v1578_v37 = vpop.permute.xlu0 %1577  ;;  %v2870_v50 = vld [vmem:[#allocation3 + $0x528] sm:$0xff] }
 0x348   : > { %v1852_v18 = vadd.f32 %v4441_v5, %v1707_v0  ;;  %v4442_v21 = vpop.f32.mrb[34].mxu1  ;;  %4053 = vmatprep.mubr.f32.mxu0 %v3421_v56  ;;  %v1722_v25 = vadd.f32 %v7052_v43, %v1578_v37  ;;  %v2869_v5 = vld [vmem:[#allocation3 + $0x520] sm:$0xff] }
 0x349   : > { %v4443_v29 = vpop.f32.mrb[35].mxu1  ;;  %3089 = vmatmul.mubr.f32.gmra.mrb[140].mxu1 %v2857_v59  ;;  %v1583_v59 = vpop.permute.xlu1 %1582  ;;  %v2873_v43 = vld [vmem:[#allocation3 + $0x540] sm:$0xff] }
 0x34a   : > { %v1930_v9 = vmax.f32 %v1852_v18, 0.0  ;;  %v4444_v6 = vadd.f32 %v4443_v29, %v4442_v21  ;;  %5250 = vmatpush3.bf16.msra.mxu1 %v5249_v12  ;;  %3093 = vmatprep.mubr.f32.mxu1 %v2862_v20  ;;  %v1727_v60 = vadd.f32 %v7059_v10, %v1583_v59  ;;  %v2877_v10 = vld [vmem:[#allocation3 + $0x560] sm:$0xff] }
 0x34b   : > { %5252 = vmatprep.subr.bf16.mxu1 %v5251_v33  ;;  %4054 = vmatmul.mubr.f32.gmra.mrb[178].mxu0 %v3420_v35  ;;  %v1588_v35 = vpop.permute.xlu0 %1587  ;;  %v2878_v33 = vld [vmem:[#allocation3 + $0x568] sm:$0xff] }
 0x34c   : > { %1947 = vst.msk [vmem:[%s7384_s18] sm:$0xff] %vm1946_vm0, %v1930_v9  ;;  %v1857_v62 = vadd.f32 %v4444_v6, %v1712_v55  ;;  %v4445_v49 = vpop.f32.mrb[36].mxu1  ;;  %4058 = vmatprep.mubr.f32.mxu0 %v3425_v46  ;;  %v1732_v9 = vadd.f32 %v7068_v61, %v1588_v35  ;;  %v2881_v61 = vld [vmem:[#allocation3 + $0x580] sm:$0xff] }
 0x34d   : > { %v4446_v34 = vpop.f32.mrb[37].mxu1  ;;  %3094 = vmatmul.mubr.f32.gmra.mrb[142].mxu1 %v2861_v24  ;;  %v1593_v13 = vpop.permute.xlu1 %1592 }
 0x34e   : > { %v1931_v3 = vmax.f32 %v1857_v62, 0.0  ;;  %v4447_v54 = vadd.f32 %v4446_v34, %v4445_v49  ;;  %5254 = vmatpush3.bf16.msra.mxu1 %v5253_v27  ;;  %3098 = vmatprep.mubr.f32.mxu1 %v2866_v40  ;;  %v2882_v40 = vld [vmem:[#allocation3 + $0x588] sm:$0xff] }
 0x34f   : > { %5287 = vmatprep.subr.bf16.mxu1 %v7220_v23  ;;  %4059 = vmatmul.mubr.f32.gmra.mrb[180].mxu0 %v3424_v51  ;;  %v2874_v23 = vld [vmem:[#allocation3 + $0x548] sm:$0xff]  ;;  %v1737_v51 = vadd.f32 %v7076_v11, %v1593_v13  ;;  %v2885_v11 = vld [vmem:[#allocation3 + $0x5a0] sm:$0xff] }
 0x350   : > { %1948 = vst.msk [vmem:[%s7384_s18 + $0x8] sm:$0xff] %vm1946_vm0, %v1931_v3  ;;  %v1862_v47 = vadd.f32 %v4447_v54, %v1717_v58  ;;  %v4448_v31 = vpop.f32.mrb[38].mxu1  ;;  %4063 = vmatprep.mubr.f32.mxu0 %v3429_v57  ;;  %v1598_v58 = vpop.permute.xlu0 %1597  ;;  %v2886_v3 = vld [vmem:[#allocation3 + $0x5a8] sm:$0xff] }
 0x351   : > { %v4449_v63 = vpop.f32.mrb[39].mxu1  ;;  %3099 = vmatmul.mubr.f32.gmra.mrb[144].mxu1 %v2865_v32 }
 0x352   : > { %v1932_v56 = vmax.f32 %v1862_v47, 0.0  ;;  %v4450_v0 = vadd.f32 %v4449_v63, %v4448_v31  ;;  %3103 = vmatprep.mubr.f32.mxu1 %v2870_v50  ;;  %v1742_v50 = vadd.f32 %v7088_v52, %v1598_v58  ;;  %v2890_v63 = vld [vmem:[#allocation3 + $0x5c8] sm:$0xff]  ;;  %v2889_v52 = vld [vmem:[#allocation3 + $0x5c0] sm:$0xff] }
 0x353   : > { %4064 = vmatmul.mubr.f32.gmra.mrb[182].mxu0 %v3428_v2  ;;  %v1603_v2 = vpop.permute.xlu1 %1602 }
 0x354   : > { %1949 = vst.msk [vmem:[%s7384_s18 + $0x10] sm:$0xff] %vm1946_vm0, %v1932_v56  ;;  %v1867_v20 = vadd.f32 %v4450_v0, %v1722_v25  ;;  %v4451_v12 = vpop.f32.mrb[40].mxu1 }
 0x355   : > { %v4452_v42 = vpop.f32.mrb[41].mxu1  ;;  %3104 = vmatmul.mubr.f32.gmra.mrb[146].mxu1 %v2869_v5  ;;  %v1747_v5 = vadd.f32 %v7103_v16, %v1603_v2  ;;  %v2893_v16 = vld [vmem:[#allocation3 + $0x5e0] sm:$0xff] }
 0x356   : > { %v1933_v18 = vmax.f32 %v1867_v20, 0.0  ;;  %v4453_v21 = vadd.f32 %v4452_v42, %v4451_v12  ;;  %3108 = vmatprep.mubr.f32.mxu1 %v2874_v23  ;;  %v1608_v20 = vpop.permute.xlu0 %1607  ;;  %v2894_v12 = vld [vmem:[#allocation3 + $0x5e8] sm:$0xff] }
 0x358   : > { %1950 = vst.msk [vmem:[%s7384_s18 + $0x18] sm:$0xff] %vm1946_vm0, %v1933_v18  ;;  %v1872_v29 = vadd.f32 %v4453_v21, %v1727_v60  ;;  %v4454_v46 = vpop.f32.mrb[42].mxu1  ;;  %v7829_v21 = vld [vmem:[#allocation11_spill] sm:$0xff] }
 0x359   : > { %v4455_v55 = vpop.f32.mrb[43].mxu1  ;;  %3109 = vmatmul.mubr.f32.gmra.mrb[148].mxu1 %v2873_v43  ;;  %v1752_v43 = vadd.f32 %v7829_v21, %v1608_v20 }
 0x35a   : > { %v1934_v6 = vmax.f32 %v1872_v29, 0.0  ;;  %v4456_v24 = vadd.f32 %v4455_v55, %v4454_v46  ;;  %3113 = vmatprep.mubr.f32.mxu1 %v2878_v33  ;;  %v1613_v29 = vpop.permute.xlu1 %1612  ;;  %v3383_v46 = vld [vmem:[#allocation3 + $0x608] sm:$0xff] }
 0x35c   : > { %1951 = vst.msk [vmem:[%s7384_s18 + $0x20] sm:$0xff] %vm1946_vm0, %v1934_v6  ;;  %v1877_v27 = vadd.f32 %v4456_v24, %v1732_v9  ;;  %v4457_v62 = vpop.f32.mrb[44].mxu1  ;;  %v1757_v24 = vadd.f32 %v7125_v45, %v1613_v29  ;;  %v3386_v45 = vld [vmem:[#allocation3 + $0x620] sm:$0xff]  ;;  %v3407_v29 = vld [vmem:[#allocation3 + $0x6c8] sm:$0xff] }
 0x35d   : > { %v4458_v49 = vpop.f32.mrb[45].mxu1  ;;  %3114 = vmatmul.mubr.f32.gmra.mrb[150].mxu1 %v2877_v10 }
 0x35e   : > { %v1935_v34 = vmax.f32 %v1877_v27, 0.0  ;;  %v4459_v57 = vadd.f32 %v4458_v49, %v4457_v62  ;;  %3118 = vmatprep.mubr.f32.mxu1 %v2882_v40  ;;  %v3382_v40 = vld [vmem:[#allocation3 + $0x600] sm:$0xff]  ;;  %v1618_v27 = vpop.permute.xlu0 %1617  ;;  %v3387_v62 = vld [vmem:[#allocation3 + $0x628] sm:$0xff] }
 0x360   : > { %1952 = vst.msk [vmem:[%s7384_s18 + $0x28] sm:$0xff] %vm1946_vm0, %v1935_v34  ;;  %v1882_v54 = vadd.f32 %v4459_v57, %v1737_v51  ;;  %v4460_v32 = vpop.f32.mrb[46].mxu1  ;;  %v7830_v57 = vld [vmem:[#allocation10_spill] sm:$0xff] }
 0x361   : > { %v4461_v37 = vpop.f32.mrb[47].mxu1  ;;  %3119 = vmatmul.mubr.f32.gmra.mrb[152].mxu1 %v2881_v61  ;;  %v1762_v61 = vadd.f32 %v7830_v57, %v1618_v27 }
 0x362   : > { %v1936_v47 = vmax.f32 %v1882_v54, 0.0  ;;  %v4462_v31 = vadd.f32 %v4461_v37, %v4460_v32  ;;  %3123 = vmatprep.mubr.f32.mxu1 %v2886_v3  ;;  %v1623_v54 = vpop.permute.xlu1 %1622  ;;  %v3391_v32 = vld [vmem:[#allocation3 + $0x648] sm:$0xff] }
 0x364   : > { %1953 = vst.msk [vmem:[%s7384_s18 + $0x30] sm:$0xff] %vm1946_vm0, %v1936_v47  ;;  %v1887_v25 = vadd.f32 %v4462_v31, %v1742_v50  ;;  %v4463_v56 = vpop.f32.mrb[48].mxu1  ;;  %v1767_v31 = vadd.f32 %v7150_v14, %v1623_v54 }
 0x365   : > { %v4464_v0 = vpop.f32.mrb[49].mxu1  ;;  %3124 = vmatmul.mubr.f32.gmra.mrb[154].mxu1 %v2885_v11 }
 0x366   : > { %v1937_v59 = vmax.f32 %v1887_v25, 0.0  ;;  %v4465_v23 = vadd.f32 %v4464_v0, %v4463_v56  ;;  %3128 = vmatprep.mubr.f32.mxu1 %v2890_v63  ;;  %v1628_v63 = vpop.permute.xlu0 %1627 }
 0x368   : > { %1954 = vst.msk [vmem:[%s7384_s18 + $0x38] sm:$0xff] %vm1946_vm0, %v1937_v59  ;;  %v1892_v42 = vadd.f32 %v4465_v23, %v1747_v5  ;;  %v4466_v60 = vpop.f32.mrb[50].mxu1  ;;  %v1772_v5 = vadd.f32 %v7168_v26, %v1628_v63  ;;  %v1633_v23 = vpop.permute.xlu1 %1632 }
 0x369   : > { %v4467_v18 = vpop.f32.mrb[51].mxu1  ;;  %3129 = vmatmul.mubr.f32.gmra.mrb[156].mxu1 %v2889_v52 }
 0x36a   : > { %v1938_v35 = vmax.f32 %v1892_v42, 0.0  ;;  %v4468_v33 = vadd.f32 %v4467_v18, %v4466_v60  ;;  %3133 = vmatprep.mubr.f32.mxu1 %v2894_v12  ;;  %v1777_v42 = vadd.f32 %v7186_v38, %v1633_v23  ;;  %v1638_v18 = vpop.permute.xlu0 %1637  ;;  %v3431_v23 = vld [vmem:[#allocation3 + $0x788] sm:$0xff] }
 0x36c   : > { %1955 = vst.msk [vmem:[%s7384_s18 + $0x40] sm:$0xff] %vm1946_vm0, %v1938_v35  ;;  %v1897_v55 = vadd.f32 %v4468_v33, %v1752_v43  ;;  %v4469_v9 = vpop.f32.mrb[52].mxu1  ;;  %v1782_v33 = vadd.f32 %v7202_v1, %v1638_v18 }
 0x36d   : > { %v4470_v6 = vpop.f32.mrb[53].mxu1  ;;  %3134 = vmatmul.mubr.f32.gmra.mrb[158].mxu1 %v2893_v16 }
 0x36e   : > { %v1939_v10 = vmax.f32 %v1897_v55, 0.0  ;;  %v4471_v13 = vadd.f32 %v4470_v6, %v4469_v9  ;;  %3863 = vmatprep.mubr.f32.mxu1 %v3383_v46  ;;  %v3406_v6 = vld [vmem:[#allocation3 + $0x6c0] sm:$0xff] }
 0x370   : > { %1956 = vst.msk [vmem:[%s7384_s18 + $0x48] sm:$0xff] %vm1946_vm0, %v1939_v10  ;;  %v1902_v49 = vadd.f32 %v4471_v13, %v1757_v24  ;;  %v4472_v51 = vpop.f32.mrb[54].mxu1  ;;  %v4759_v24 = vpop.f32.mrb[128].mxu0 }
 0x371   : > { %v4473_v34 = vpop.f32.mrb[55].mxu1  ;;  %3864 = vmatmul.mubr.f32.vlgmr.msra.gmra.mrb[160].mxu1 %v3382_v40  ;;  %v4760_v13 = vpop.f32.mrb[129].mxu0 }
 0x372   : > { %v1940_v58 = vmax.f32 %v1902_v49, 0.0  ;;  %v4474_v3 = vadd.f32 %v4473_v34, %v4472_v51  ;;  %5295 = vmatpush3.bf16.msra.mxu1 %v7225_v4  ;;  %3868 = vmatprep.mubr.f32.mxu1 %v3387_v62  ;;  %v3390_v4 = vld [vmem:[#allocation3 + $0x640] sm:$0xff]  ;;  %v7451_v27 = vadd.f32 %v4760_v13, %v4759_v24  ;;  %v3415_v62 = vld [vmem:[#allocation3 + $0x708] sm:$0xff] }
 0x373   : > { %5288 = vmatprep.subr.bf16.mxu1 %v7244_v30  ;;  %v3395_v30 = vld [vmem:[#allocation3 + $0x668] sm:$0xff] }
 0x374   : > { %1957 = vst.msk [vmem:[%s7384_s18 + $0x50] sm:$0xff] %vm1946_vm0, %v1940_v58  ;;  %v1907_v37 = vadd.f32 %v4474_v3, %v1762_v61  ;;  %v4475_v50 = vpop.f32.mrb[56].mxu1  ;;  %v3419_v58 = vld [vmem:[#allocation3 + $0x728] sm:$0xff] }
 0x375   : > { %v4476_v47 = vpop.f32.mrb[57].mxu1  ;;  %3869 = vmatmul.mubr.f32.gmra.mrb[162].mxu1 %v3386_v45  ;;  %v3443_v24 = vld [vmem:[#allocation3 + $0x7e8] sm:$0xff] }
 0x376   : > { %v1941_v11 = vmax.f32 %v1907_v37, 0.0  ;;  %v4477_v2 = vadd.f32 %v4476_v47, %v4475_v50  ;;  %5296 = vmatpush3.bf16.msra.mxu1 %v7249_v41  ;;  %3873 = vmatprep.mubr.f32.mxu1 %v3391_v32  ;;  %v3394_v41 = vld [vmem:[#allocation3 + $0x660] sm:$0xff]  ;;  %v3423_v50 = vld [vmem:[#allocation3 + $0x748] sm:$0xff] }
 0x377   : > { %5289 = vmatprep.subr.bf16.mxu1 %v7264_v39  ;;  %v3399_v39 = vld [vmem:[#allocation3 + $0x688] sm:$0xff]  ;;  %v3418_v32 = vld [vmem:[#allocation3 + $0x720] sm:$0xff] }
 0x378   : > { %1958 = vst.msk [vmem:[%s7384_s18 + $0x58] sm:$0xff] %vm1946_vm0, %v1941_v11  ;;  %v1912_v25 = vadd.f32 %v4477_v2, %v1767_v31  ;;  %v4478_v56 = vpop.f32.mrb[58].mxu1 }
 0x379   : > { %v4479_v0 = vpop.f32.mrb[59].mxu1  ;;  %3874 = vmatmul.mubr.f32.gmra.mrb[164].mxu1 %v3390_v4  ;;  %v3422_v4 = vld [vmem:[#allocation3 + $0x740] sm:$0xff] }
 0x37a   : > { %v1942_v14 = vmax.f32 %v1912_v25, 0.0  ;;  %v4480_v59 = vadd.f32 %v4479_v0, %v4478_v56  ;;  %5297 = vmatpush3.bf16.msra.mxu1 %v7269_v53  ;;  %3878 = vmatprep.mubr.f32.mxu1 %v3395_v30  ;;  %v3398_v53 = vld [vmem:[#allocation3 + $0x680] sm:$0xff]  ;;  %v3427_v30 = vld [vmem:[#allocation3 + $0x768] sm:$0xff] }
 0x37b   : > { %5290 = vmatprep.subr.bf16.mxu1 %v7281_v28  ;;  %v3403_v28 = vld [vmem:[#allocation3 + $0x6a8] sm:$0xff] }
 0x37c   : > { %1959 = vst.msk [vmem:[%s7384_s18 + $0x60] sm:$0xff] %vm1946_vm0, %v1942_v14  ;;  %v1917_v52 = vadd.f32 %v4480_v59, %v1772_v5  ;;  %v4481_v20 = vpop.f32.mrb[60].mxu1  ;;  %v3426_v59 = vld [vmem:[#allocation3 + $0x760] sm:$0xff] }
 0x37d   : > { %v4482_v12 = vpop.f32.mrb[61].mxu1  ;;  %3879 = vmatmul.mubr.f32.gmra.mrb[166].mxu1 %v3394_v41 }
 0x37e   : > { %v1943_v26 = vmax.f32 %v1917_v52, 0.0  ;;  %v4483_v60 = vadd.f32 %v4482_v12, %v4481_v20  ;;  %5298 = vmatpush3.bf16.msra.mxu1 %v7286_v15  ;;  %3883 = vmatprep.mubr.f32.mxu1 %v3399_v39  ;;  %v3402_v15 = vld [vmem:[#allocation3 + $0x6a0] sm:$0xff] }
 0x37f   : > { %5291 = vmatprep.subr.bf16.mxu1 %v7295_v44 }
 0x380   : > { %1960 = vst.msk [vmem:[%s7384_s18 + $0x68] sm:$0xff] %vm1946_vm0, %v1943_v26  ;;  %v1922_v21 = vadd.f32 %v4483_v60, %v1777_v42  ;;  %v4484_v43 = vpop.f32.mrb[62].mxu1  ;;  %v3430_v26 = vld [vmem:[#allocation3 + $0x780] sm:$0xff] }
 0x381   : > { %v4485_v35 = vpop.f32.mrb[63].mxu1  ;;  %3884 = vmatmul.mubr.f32.gmra.mrb[168].mxu1 %v3398_v53  ;;  %v3435_v53 = vld [vmem:[#allocation3 + $0x7a8] sm:$0xff] }
 0x382   : > { %v1944_v38 = vmax.f32 %v1922_v21, 0.0  ;;  %v4486_v16 = vadd.f32 %v4485_v35, %v4484_v43  ;;  %5299 = vmatpush3.bf16.msra.mxu1 %v7300_v22  ;;  %3888 = vmatprep.mubr.f32.mxu1 %v3403_v28  ;;  %v3411_v22 = vld [vmem:[#allocation3 + $0x6e8] sm:$0xff] }
 0x383   : > { %5292 = vmatprep.subr.bf16.mxu1 %v7307_v7 }
 0x384   : > { %1961 = vst.msk [vmem:[%s7384_s18 + $0x70] sm:$0xff] %vm1946_vm0, %v1944_v38  ;;  %v1927_v44 = vadd.f32 %v4486_v16, %v1782_v33  ;;  %v4519_v46 = vpop.f32.mrb[64].mxu1  ;;  %v3434_v38 = vld [vmem:[#allocation3 + $0x7a0] sm:$0xff] }
 0x385   : > { %3889 = vmatmul.mubr.f32.gmra.mrb[170].mxu1 %v3402_v15  ;;  %v4520_v55 = vpop.f32.mrb[65].mxu1  ;;  %v3439_v15 = vld [vmem:[#allocation3 + $0x7c8] sm:$0xff] }
 0x386   : > { %v1945_v9 = vmax.f32 %v1927_v44, 0.0  ;;  %5300 = vmatpush3.bf16.msra.mxu1 %v7312_v48  ;;  %3893 = vmatprep.mubr.f32.mxu1 %v3407_v29  ;;  %v7443_v1 = vadd.f32 %v4520_v55, %v4519_v46  ;;  %v3410_v48 = vld [vmem:[#allocation3 + $0x6e0] sm:$0xff] }
 0x387   : > { %5293 = vmatprep.subr.bf16.mxu1 %v7319_v36  ;;  %v4762_v36 = vpop.f32.mrb[130].mxu0 }
 0x388   : > { %1962 = vst.msk [vmem:[%s7384_s18 + $0x78] sm:$0xff] %vm1946_vm0, %v1945_v9  ;;  %v4522_v7 = vpop.f32.mrb[66].mxu1  ;;  %v4763_v34 = vpop.f32.mrb[131].mxu0 }
 0x389   : > { %3894 = vmatmul.mubr.f32.gmra.mrb[172].mxu1 %v3406_v6  ;;  %v4523_v10 = vpop.f32.mrb[67].mxu1  ;;  %v7457_v61 = vadd.f32 %v4763_v34, %v4762_v36  ;;  %v4765_v54 = vpop.f32.mrb[132].mxu0  ;;  %v3438_v6 = vld [vmem:[#allocation3 + $0x7c0] sm:$0xff] }
 0x38a   : > { %5301 = vmatpush3.bf16.msra.mxu1 %v7324_v19  ;;  %3898 = vmatprep.mubr.f32.mxu1 %v3411_v22  ;;  %v7449_v40 = vadd.f32 %v4523_v10, %v4522_v7  ;;  %v3414_v19 = vld [vmem:[#allocation3 + $0x700] sm:$0xff]  ;;  %v4766_v37 = vpop.f32.mrb[133].mxu0 }
 0x38b   : > { %5294 = vmatprep.subr.bf16.mxu1 %v7328_v8  ;;  %v7461_v47 = vadd.f32 %v4766_v37, %v4765_v54  ;;  %v4768_v11 = vpop.f32.mrb[134].mxu0  ;;  %v3442_v36 = vld [vmem:[#allocation3 + $0x7e0] sm:$0xff]  ;;  %v3432_v54 = vld [vmem:[#allocation3 + $0x790] sm:$0xff]  ;;  %v3437_v37 = vld [vmem:[#allocation3 + $0x7b8] sm:$0xff] }
 0x38c   : > { %v4525_v49 = vpop.f32.mrb[68].mxu1  ;;  %v4769_v63 = vpop.f32.mrb[135].mxu0 }
 0x38d   : > { %3899 = vmatmul.mubr.f32.gmra.mrb[174].mxu1 %v3410_v48  ;;  %v4526_v51 = vpop.f32.mrb[69].mxu1  ;;  %v7465_v25 = vadd.f32 %v4769_v63, %v4768_v11  ;;  %v3436_v63 = vld [vmem:[#allocation3 + $0x7b0] sm:$0xff] }
 0x38e   : > { %5302 = vmatpush3.bf16.msra.mxu1 %v7333_v17  ;;  %3903 = vmatprep.mubr.f32.mxu1 %v3415_v62  ;;  %v7455_v57 = vadd.f32 %v4526_v51, %v4525_v49  ;;  %v4771_v5 = vpop.f32.mrb[136].mxu0  ;;  %v3433_v51 = vld [vmem:[#allocation3 + $0x798] sm:$0xff] }
 0x38f   : > { %v4772_v41 = vpop.f32.mrb[137].mxu0 }
 0x390   : > { %v4528_v3 = vpop.f32.mrb[70].mxu1  ;;  %v7469_v39 = vadd.f32 %v4772_v41, %v4771_v5 }
 0x391   : > { %3904 = vmatmul.mubr.f32.gmra.mrb[176].mxu1 %v3414_v19  ;;  %v4529_v45 = vpop.f32.mrb[71].mxu1 }
 0x392   : > { %3908 = vmatprep.mubr.f32.mxu1 %v3419_v58  ;;  %v7459_v8 = vadd.f32 %v4529_v45, %v4528_v3 }
 0x394   : > { %v4531_v17 = vpop.f32.mrb[72].mxu1 }
 0x395   : > { %3909 = vmatmul.mubr.f32.gmra.mrb[178].mxu1 %v3418_v32  ;;  %v4532_v31 = vpop.f32.mrb[73].mxu1  ;;  %v4774_v12 = vpop.f32.mrb[138].mxu0 }
 0x396   : > { %3913 = vmatprep.mubr.f32.mxu1 %v3423_v50  ;;  %v7463_v2 = vadd.f32 %v4532_v31, %v4531_v17  ;;  %v4775_v60 = vpop.f32.mrb[139].mxu0 }
 0x397   : > { %v7473_v18 = vadd.f32 %v4775_v60, %v4774_v12  ;;  %v3445_v12 = vld [vmem:[#allocation3 + $0x7f8] sm:$0xff] }
 0x398   : > { %v4534_v56 = vpop.f32.mrb[74].mxu1 }
 0x399   : > { %3914 = vmatmul.mubr.f32.gmra.mrb[180].mxu1 %v3422_v4  ;;  %v4535_v0 = vpop.f32.mrb[75].mxu1  ;;  %v4777_v21 = vpop.f32.mrb[140].mxu0 }
 0x39a   : > { %3918 = vmatprep.mubr.f32.mxu1 %v3427_v30  ;;  %v7467_v14 = vadd.f32 %v4535_v0, %v4534_v56  ;;  %v4778_v35 = vpop.f32.mrb[141].mxu0  ;;  %v3441_v56 = vld [vmem:[#allocation3 + $0x7d8] sm:$0xff] }
 0x39b   : > { %v7477_v16 = vadd.f32 %v4778_v35, %v4777_v21  ;;  %v3444_v21 = vld [vmem:[#allocation3 + $0x7f0] sm:$0xff] }
 0x39c   : > { %v4537_v52 = vpop.f32.mrb[76].mxu1 }
 0x39d   : > { %3919 = vmatmul.mubr.f32.gmra.mrb[182].mxu1 %v3426_v59  ;;  %v4538_v20 = vpop.f32.mrb[77].mxu1  ;;  %v4780_v44 = vpop.f32.mrb[142].mxu0 }
 0x39e   : > { %3923 = vmatprep.mubr.f32.mxu1 %v3431_v23  ;;  %v7471_v42 = vadd.f32 %v4538_v20, %v4537_v52  ;;  %v4781_v55 = vpop.f32.mrb[143].mxu0  ;;  %v3440_v52 = vld [vmem:[#allocation3 + $0x7d0] sm:$0xff] }
 0x39f   : > { %v7481_v22 = vadd.f32 %v4781_v55, %v4780_v44 }
 0x3a0   : > { %v4540_v28 = vpop.f32.mrb[78].mxu1 }
 0x3a1   : > { %3924 = vmatmul.mubr.f32.gmra.mrb[184].mxu1 %v3430_v26  ;;  %v4541_v43 = vpop.f32.mrb[79].mxu1 }
 0x3a2   : > { %3928 = vmatprep.mubr.f32.mxu1 %v3435_v53  ;;  %v7475_v33 = vadd.f32 %v4541_v43, %v4540_v28  ;;  %v4783_v10 = vpop.f32.mrb[144].mxu0 }
 0x3a3   : > { %v4784_v48 = vpop.f32.mrb[145].mxu0 }
 0x3a4   : > { %v4543_v29 = vpop.f32.mrb[80].mxu1  ;;  %v7485_v49 = vadd.f32 %v4784_v48, %v4783_v10  ;;  %v2112_v48 = vpop.permute.xlu1 %2111 }
 0x3a5   : > { %3929 = vmatmul.mubr.f32.gmra.mrb[186].mxu1 %v3434_v38  ;;  %v4544_v46 = vpop.f32.mrb[81].mxu1 }
 0x3a6   : > { %3933 = vmatprep.mubr.f32.mxu1 %v3439_v15  ;;  %v7479_v9 = vadd.f32 %v4544_v46, %v4543_v29  ;;  %v4786_v19 = vpop.f32.mrb[146].mxu0 }
 0x3a7   : > { %v4787_v3 = vpop.f32.mrb[147].mxu0 }
 0x3a8   : > { %v4546_v7 = vpop.f32.mrb[82].mxu1  ;;  %v7489_v32 = vadd.f32 %v4787_v3, %v4786_v19  ;;  %v2512_v19 = vadd.f32 %v7443_v1, %v2112_v48 }
 0x3a9   : > { %3934 = vmatmul.mubr.f32.gmra.mrb[188].mxu1 %v3438_v6  ;;  %v4547_v13 = vpop.f32.mrb[83].mxu1 }
 0x3aa   : > { %3938 = vmatprep.mubr.f32.mxu1 %v3443_v24  ;;  %v7483_v62 = vadd.f32 %v4547_v13, %v4546_v7  ;;  %v4789_v17 = vpop.f32.mrb[148].mxu0 }
 0x3ab   : > { %v4790_v11 = vpop.f32.mrb[149].mxu0 }
 0x3ac   : > { %v4549_v34 = vpop.f32.mrb[84].mxu1  ;;  %v7493_v30 = vadd.f32 %v4790_v11, %v4789_v17 }
 0x3ad   : > { %3939 = vmatmul.mubr.f32.gmra.mrb[190].mxu1 %v3442_v36  ;;  %v4550_v58 = vpop.f32.mrb[85].mxu1 }
 0x3ae   : > { %4068 = vmatprep.mubr.f32.mxu1 %v3433_v51  ;;  %v7487_v45 = vadd.f32 %v4550_v58, %v4549_v34 }
 0x3b0   : > { %v4552_v50 = vpop.f32.mrb[86].mxu1  ;;  %v4792_v5 = vpop.f32.mrb[150].mxu0 }
 0x3b1   : > { %4069 = vmatmul.mubr.f32.vlgmr.msra.gmra.mrb[192].mxu1 %v3432_v54  ;;  %v4553_v31 = vpop.f32.mrb[87].mxu1  ;;  %v4793_v41 = vpop.f32.mrb[151].mxu0 }
 0x3b2   : > { %4073 = vmatprep.mubr.f32.mxu1 %v3437_v37  ;;  %v7491_v4 = vadd.f32 %v4553_v31, %v4552_v50  ;;  %v7497_v20 = vadd.f32 %v4793_v41, %v4792_v5  ;;  %v2117_v54 = vpop.permute.xlu0 %2116  ;;  %v2122_v5 = vpop.permute.xlu1 %2121 }
 0x3b4   : > { %v4555_v0 = vpop.f32.mrb[88].mxu1  ;;  %v4795_v53 = vpop.f32.mrb[152].mxu0 }
 0x3b5   : > { %4074 = vmatmul.mubr.f32.gmra.mrb[194].mxu1 %v3436_v63  ;;  %v4556_v59 = vpop.f32.mrb[89].mxu1  ;;  %v4796_v43 = vpop.f32.mrb[153].mxu0  ;;  %v2517_v63 = vadd.f32 %v7449_v40, %v2117_v54 }
 0x3b6   : > { %4078 = vmatprep.mubr.f32.mxu1 %v3441_v56  ;;  %v7495_v23 = vadd.f32 %v4556_v59, %v4555_v0  ;;  %v7501_v35 = vadd.f32 %v4796_v43, %v4795_v53 }
 0x3b8   : > { %v4558_v26 = vpop.f32.mrb[90].mxu1 }
 0x3b9   : > { %4079 = vmatmul.mubr.f32.gmra.mrb[196].mxu1 %v3440_v52  ;;  %v4559_v60 = vpop.f32.mrb[91].mxu1  ;;  %v4798_v29 = vpop.f32.mrb[154].mxu0  ;;  %v2522_v52 = vadd.f32 %v7455_v57, %v2122_v5 }
 0x3ba   : > { %4083 = vmatprep.mubr.f32.mxu1 %v3445_v12  ;;  %v7499_v28 = vadd.f32 %v4559_v60, %v4558_v26  ;;  %v4799_v46 = vpop.f32.mrb[155].mxu0  ;;  %v2127_v60 = vpop.permute.xlu0 %2126 }
 0x3bb   : > { %v7505_v55 = vadd.f32 %v4799_v46, %v4798_v29  ;;  %v2527_v43 = vadd.f32 %v7459_v8, %v2127_v60  ;;  %v2132_v29 = vpop.permute.xlu1 %2131 }
 0x3bc   : > { %v4561_v38 = vpop.f32.mrb[92].mxu1 }
 0x3bd   : > { %4084 = vmatmul.mubr.f32.gmra.mrb[198].mxu1 %v3444_v21  ;;  %v4562_v15 = vpop.f32.mrb[93].mxu1  ;;  %v4801_v7 = vpop.f32.mrb[156].mxu0 }
 0x3be   : > { %v7503_v44 = vadd.f32 %v4562_v15, %v4561_v38  ;;  %v4802_v13 = vpop.f32.mrb[157].mxu0  ;;  %v2137_v48 = vpop.permute.xlu0 %2136 }
 0x3bf   : > { %v7509_v36 = vadd.f32 %v4802_v13, %v4801_v7  ;;  %v2142_v54 = vpop.permute.xlu1 %2141 }
 0x3c0   : > { %v4564_v6 = vpop.f32.mrb[94].mxu1 }
 0x3c1   : > { %v4565_v24 = vpop.f32.mrb[95].mxu1  ;;  %v4804_v3 = vpop.f32.mrb[158].mxu0 }
 0x3c2   : > { %v7507_v10 = vadd.f32 %v4565_v24, %v4564_v6  ;;  %v4805_v37 = vpop.f32.mrb[159].mxu0  ;;  %v2532_v24 = vadd.f32 %v7463_v2, %v2132_v29 }
 0x3c3   : > { %v7512_v31 = vadd.f32 %v4805_v37, %v4804_v3 }
 0x3c4   : > { %v4599_v51 = vpop.f32.mrb[96].mxu1 }
 0x3c5   : > { %v4600_v34 = vpop.f32.mrb[97].mxu1 }
 0x3c6   : > { %v4601_v58 = vadd.f32 %v4600_v34, %v4599_v51 }
 0x3c8   : > { %v2657_v50 = vadd.f32 %v4601_v58, %v2512_v19  ;;  %v4602_v17 = vpop.f32.mrb[98].mxu1  ;;  %v2537_v19 = vadd.f32 %v7467_v14, %v2137_v48 }
 0x3c9   : > { %v4603_v11 = vpop.f32.mrb[99].mxu1 }
 0x3ca   : > { %v2735_v56 = vmax.f32 %v2657_v50, 0.0  ;;  %v4604_v0 = vadd.f32 %v4603_v11, %v4602_v17  ;;  %v2542_v17 = vadd.f32 %v7471_v42, %v2142_v54 }
 0x3cc   : > { %4243 = vst.msk [vmem:[%s7384_s18 + $0x80] sm:$0xff] %vm1946_vm0, %v2735_v56  ;;  %v2662_v59 = vadd.f32 %v4604_v0, %v2517_v63  ;;  %v4605_v1 = vpop.f32.mrb[100].mxu1  ;;  %v2147_v56 = vpop.permute.xlu0 %2146 }
 0x3cd   : > { %v4606_v41 = vpop.f32.mrb[101].mxu1 }
 0x3ce   : > { %v2736_v12 = vmax.f32 %v2662_v59, 0.0  ;;  %v4607_v26 = vadd.f32 %v4606_v41, %v4605_v1  ;;  %v2547_v59 = vadd.f32 %v7475_v33, %v2147_v56 }
 0x3d0   : > { %4244 = vst.msk [vmem:[%s7384_s18 + $0x88] sm:$0xff] %vm1946_vm0, %v2736_v12  ;;  %v2667_v53 = vadd.f32 %v4607_v26, %v2522_v52  ;;  %v4608_v21 = vpop.f32.mrb[102].mxu1  ;;  %v2152_v52 = vpop.permute.xlu1 %2151 }
 0x3d1   : > { %v4609_v40 = vpop.f32.mrb[103].mxu1  ;;  %v2552_v60 = vadd.f32 %v7479_v9, %v2152_v52 }
 0x3d2   : > { %v2737_v38 = vmax.f32 %v2667_v53, 0.0  ;;  %v4610_v15 = vadd.f32 %v4609_v40, %v4608_v21  ;;  %v2157_v40 = vpop.permute.xlu0 %2156 }
 0x3d4   : > { %4245 = vst.msk [vmem:[%s7384_s18 + $0x90] sm:$0xff] %vm1946_vm0, %v2737_v38  ;;  %v2672_v46 = vadd.f32 %v4610_v15, %v2527_v43  ;;  %v4611_v6 = vpop.f32.mrb[104].mxu1  ;;  %v2557_v15 = vadd.f32 %v7483_v62, %v2157_v40 }
 0x3d5   : > { %v4612_v57 = vpop.f32.mrb[105].mxu1 }
 0x3d6   : > { %v2738_v7 = vmax.f32 %v2672_v46, 0.0  ;;  %v4613_v13 = vadd.f32 %v4612_v57, %v4611_v6  ;;  %v2162_v6 = vpop.permute.xlu1 %2161 }
 0x3d8   : > { %4246 = vst.msk [vmem:[%s7384_s18 + $0x98] sm:$0xff] %vm1946_vm0, %v2738_v7  ;;  %v2677_v51 = vadd.f32 %v4613_v13, %v2532_v24  ;;  %v4614_v34 = vpop.f32.mrb[106].mxu1  ;;  %v2562_v7 = vadd.f32 %v7487_v45, %v2162_v6 }
 0x3d9   : > { %v4615_v8 = vpop.f32.mrb[107].mxu1 }
 0x3da   : > { %v2739_v58 = vmax.f32 %v2677_v51, 0.0  ;;  %v4616_v3 = vadd.f32 %v4615_v8, %v4614_v34  ;;  %v2167_v51 = vpop.permute.xlu0 %2166  ;;  %v2172_v54 = vpop.permute.xlu1 %2171 }
 0x3dc   : > { %4247 = vst.msk [vmem:[%s7384_s18 + $0xa0] sm:$0xff] %vm1946_vm0, %v2739_v58  ;;  %v2682_v37 = vadd.f32 %v4616_v3, %v2537_v19  ;;  %v4617_v50 = vpop.f32.mrb[108].mxu1  ;;  %v2567_v19 = vadd.f32 %v7491_v4, %v2167_v51 }
 0x3dd   : > { %v4618_v2 = vpop.f32.mrb[109].mxu1 }
 0x3de   : > { %v2740_v11 = vmax.f32 %v2682_v37, 0.0  ;;  %v4619_v63 = vadd.f32 %v4618_v2, %v4617_v50  ;;  %v2572_v2 = vadd.f32 %v7495_v23, %v2172_v54 }
 0x3e0   : > { %4248 = vst.msk [vmem:[%s7384_s18 + $0xa8] sm:$0xff] %vm1946_vm0, %v2740_v11  ;;  %v2687_v0 = vadd.f32 %v4619_v63, %v2542_v17  ;;  %v4620_v5 = vpop.f32.mrb[110].mxu1  ;;  %v2177_v63 = vpop.permute.xlu0 %2176 }
 0x3e1   : > { %v4621_v14 = vpop.f32.mrb[111].mxu1  ;;  %v2577_v4 = vadd.f32 %v7499_v28, %v2177_v63 }
 0x3e2   : > { %v2741_v1 = vmax.f32 %v2687_v0, 0.0  ;;  %v4622_v41 = vadd.f32 %v4621_v14, %v4620_v5 }
 0x3e4   : > { %4249 = vst.msk [vmem:[%s7384_s18 + $0xb0] sm:$0xff] %vm1946_vm0, %v2741_v1  ;;  %v2692_v12 = vadd.f32 %v4622_v41, %v2547_v59  ;;  %v4623_v26 = vpop.f32.mrb[112].mxu1  ;;  %v2182_v41 = vpop.permute.xlu1 %2181 }
 0x3e5   : > { %v4624_v42 = vpop.f32.mrb[113].mxu1  ;;  %v2187_v28 = vpop.permute.xlu0 %2186 }
 0x3e6   : > { %v2742_v53 = vmax.f32 %v2692_v12, 0.0  ;;  %v4625_v21 = vadd.f32 %v4624_v42, %v4623_v26 }
 0x3e8   : > { %4250 = vst.msk [vmem:[%s7384_s18 + $0xb8] sm:$0xff] %vm1946_vm0, %v2742_v53  ;;  %v2697_v43 = vadd.f32 %v4625_v21, %v2552_v60  ;;  %v4626_v38 = vpop.f32.mrb[114].mxu1  ;;  %v2582_v60 = vadd.f32 %v7503_v44, %v2182_v41 }
 0x3e9   : > { %v4627_v33 = vpop.f32.mrb[115].mxu1 }
 0x3ea   : > { %v2743_v29 = vmax.f32 %v2697_v43, 0.0  ;;  %v4628_v46 = vadd.f32 %v4627_v33, %v4626_v38 }
 0x3ec   : > { %4251 = vst.msk [vmem:[%s7384_s18 + $0xc0] sm:$0xff] %vm1946_vm0, %v2743_v29  ;;  %v2702_v57 = vadd.f32 %v4628_v46, %v2557_v15  ;;  %v4629_v24 = vpop.f32.mrb[116].mxu1  ;;  %v2587_v46 = vadd.f32 %v7507_v10, %v2187_v28 }
 0x3ed   : > { %v4630_v9 = vpop.f32.mrb[117].mxu1 }
 0x3ee   : > { %v2744_v13 = vmax.f32 %v2702_v57, 0.0  ;;  %v4631_v48 = vadd.f32 %v4630_v9, %v4629_v24 }
 0x3f0   : > { %4252 = vst.msk [vmem:[%s7384_s18 + $0xc8] sm:$0xff] %vm1946_vm0, %v2744_v13  ;;  %v2707_v34 = vadd.f32 %v4631_v48, %v2562_v7  ;;  %v4632_v8 = vpop.f32.mrb[118].mxu1 }
 0x3f1   : > { %v4633_v62 = vpop.f32.mrb[119].mxu1 }
 0x3f2   : > { %v2745_v58 = vmax.f32 %v2707_v34, 0.0  ;;  %v4634_v3 = vadd.f32 %v4633_v62, %v4632_v8  ;;  %v2917_v62 = vpop.permute.xlu1 %2916 }
 0x3f4   : > { %4253 = vst.msk [vmem:[%s7384_s18 + $0xd0] sm:$0xff] %vm1946_vm0, %v2745_v58  ;;  %v2712_v37 = vadd.f32 %v4634_v3, %v2567_v19  ;;  %v4635_v50 = vpop.f32.mrb[120].mxu1 }
 0x3f5   : > { %v4636_v45 = vpop.f32.mrb[121].mxu1 }
 0x3f6   : > { %v2746_v17 = vmax.f32 %v2712_v37, 0.0  ;;  %v4637_v11 = vadd.f32 %v4636_v45, %v4635_v50 }
 0x3f8   : > { %4254 = vst.msk [vmem:[%s7384_s18 + $0xd8] sm:$0xff] %vm1946_vm0, %v2746_v17  ;;  %v2717_v56 = vadd.f32 %v4637_v11, %v2572_v2  ;;  %v4638_v0 = vpop.f32.mrb[122].mxu1  ;;  %v2922_v2 = vpop.permute.xlu0 %2921 }
 0x3f9   : > { %v4639_v5 = vpop.f32.mrb[123].mxu1 }
 0x3fa   : > { %v2747_v14 = vmax.f32 %v2717_v56, 0.0  ;;  %v4640_v59 = vadd.f32 %v4639_v5, %v4638_v0  ;;  %v4919_v1 = vpop.f32.mrb[160].mxu0 }
 0x3fb   : > { %v4920_v52 = vpop.f32.mrb[161].mxu0 }
 0x3fc   : > { %4255 = vst.msk [vmem:[%s7384_s18 + $0xe0] sm:$0xff] %vm1946_vm0, %v2747_v14  ;;  %v2722_v12 = vadd.f32 %v4640_v59, %v2577_v4  ;;  %v4641_v23 = vpop.f32.mrb[124].mxu1  ;;  %v7553_v26 = vadd.f32 %v4920_v52, %v4919_v1  ;;  %v2927_v1 = vpop.permute.xlu1 %2926 }
 0x3fd   : > { %v4642_v42 = vpop.f32.mrb[125].mxu1 }
 0x3fe   : > { %v2748_v53 = vmax.f32 %v2722_v12, 0.0  ;;  %v4643_v21 = vadd.f32 %v4642_v42, %v4641_v23  ;;  %v4922_v40 = vpop.f32.mrb[162].mxu0 }
 0x3ff   : > { %v4923_v43 = vpop.f32.mrb[163].mxu0 }
 0x400   : > { %4256 = vst.msk [vmem:[%s7384_s18 + $0xe8] sm:$0xff] %vm1946_vm0, %v2748_v53  ;;  %v2727_v38 = vadd.f32 %v4643_v21, %v2582_v60  ;;  %v4644_v33 = vpop.f32.mrb[126].mxu1  ;;  %v7558_v15 = vadd.f32 %v4923_v43, %v4922_v40  ;;  %v2932_v40 = vpop.permute.xlu0 %2931 }
 0x401   : > { %v4645_v29 = vpop.f32.mrb[127].mxu1 }
 0x402   : > { %v2749_v6 = vmax.f32 %v2727_v38, 0.0  ;;  %v4646_v57 = vadd.f32 %v4645_v29, %v4644_v33  ;;  %v4925_v24 = vpop.f32.mrb[164].mxu0 }
 0x403   : > { %v4926_v44 = vpop.f32.mrb[165].mxu0 }
 0x404   : > { %4257 = vst.msk [vmem:[%s7384_s18 + $0xf0] sm:$0xff] %vm1946_vm0, %v2749_v6  ;;  %v2732_v9 = vadd.f32 %v4646_v57, %v2587_v46  ;;  %v4679_v7 = vpop.f32.mrb[128].mxu1  ;;  %v7563_v13 = vadd.f32 %v4926_v44, %v4925_v24  ;;  %v2937_v24 = vpop.permute.xlu1 %2936 }
 0x405   : > { %v4680_v48 = vpop.f32.mrb[129].mxu1 }
 0x406   : > { %v2750_v51 = vmax.f32 %v2732_v9, 0.0  ;;  %v4681_v34 = vadd.f32 %v4680_v48, %v4679_v7  ;;  %v4928_v8 = vpop.f32.mrb[166].mxu0 }
 0x407   : > { %v4929_v19 = vpop.f32.mrb[167].mxu0 }
 0x408   : > { %4258 = vst.msk [vmem:[%s7384_s18 + $0xf8] sm:$0xff] %vm1946_vm0, %v2750_v51  ;;  %v3061_v10 = vadd.f32 %v4681_v34, %v2917_v62  ;;  %v4682_v58 = vpop.f32.mrb[130].mxu1  ;;  %v7567_v3 = vadd.f32 %v4929_v19, %v4928_v8  ;;  %v2942_v19 = vpop.permute.xlu0 %2941 }
 0x409   : > { %v4683_v54 = vpop.f32.mrb[131].mxu1 }
 0x40a   : > { %v3206_v37 = vadd.f32 %v7451_v27, %v3061_v10  ;;  %v4684_v50 = vadd.f32 %v4683_v54, %v4682_v58  ;;  %v4931_v45 = vpop.f32.mrb[168].mxu0 }
 0x40b   : > { %v4932_v17 = vpop.f32.mrb[169].mxu0 }
 0x40c   : > { %v3284_v11 = vmax.f32 %v3206_v37, 0.0  ;;  %v3066_v63 = vadd.f32 %v4684_v50, %v2922_v2  ;;  %v4685_v56 = vpop.f32.mrb[132].mxu1  ;;  %v7570_v0 = vadd.f32 %v4932_v17, %v4931_v45 }
 0x40d   : > { %v4686_v5 = vpop.f32.mrb[133].mxu1 }
 0x40e   : > { %4275 = vst.msk [vmem:[%s7384_s18 + $0x100] sm:$0xff] %vm1946_vm0, %v3284_v11  ;;  %v3211_v4 = vadd.f32 %v7457_v61, %v3066_v63  ;;  %v4687_v14 = vadd.f32 %v4686_v5, %v4685_v56  ;;  %v4934_v59 = vpop.f32.mrb[170].mxu0  ;;  %v2947_v11 = vpop.permute.xlu1 %2946 }
 0x40f   : > { %v4935_v41 = vpop.f32.mrb[171].mxu0 }
 0x410   : > { %v3285_v27 = vmax.f32 %v3211_v4, 0.0  ;;  %v3071_v52 = vadd.f32 %v4687_v14, %v2927_v1  ;;  %v4688_v12 = vpop.f32.mrb[134].mxu1  ;;  %v7575_v23 = vadd.f32 %v4935_v41, %v4934_v59 }
 0x411   : > { %v4689_v42 = vpop.f32.mrb[135].mxu1 }
 0x412   : > { %4276 = vst.msk [vmem:[%s7384_s18 + $0x108] sm:$0xff] %vm1946_vm0, %v3285_v27  ;;  %v3216_v60 = vadd.f32 %v7461_v47, %v3071_v52  ;;  %v4690_v53 = vadd.f32 %v4689_v42, %v4688_v12  ;;  %v4937_v21 = vpop.f32.mrb[172].mxu0  ;;  %v2952_v27 = vpop.permute.xlu0 %2951 }
 0x413   : > { %v4938_v28 = vpop.f32.mrb[173].mxu0 }
 0x414   : > { %v3286_v61 = vmax.f32 %v3216_v60, 0.0  ;;  %v3076_v43 = vadd.f32 %v4690_v53, %v2932_v40  ;;  %v4691_v38 = vpop.f32.mrb[136].mxu1  ;;  %v7580_v33 = vadd.f32 %v4938_v28, %v4937_v21 }
 0x415   : > { %v4692_v29 = vpop.f32.mrb[137].mxu1 }
 0x416   : > { %4277 = vst.msk [vmem:[%s7384_s18 + $0x110] sm:$0xff] %vm1946_vm0, %v3286_v61  ;;  %v4693_v46 = vadd.f32 %v4692_v29, %v4691_v38  ;;  %v3221_v6 = vadd.f32 %v7465_v25, %v3076_v43  ;;  %v4940_v57 = vpop.f32.mrb[174].mxu0  ;;  %v2957_v61 = vpop.permute.xlu1 %2956 }
 0x417   : > { %v4941_v44 = vpop.f32.mrb[175].mxu0 }
 0x418   : > { %v3081_v47 = vadd.f32 %v4693_v46, %v2937_v24  ;;  %v3287_v9 = vmax.f32 %v3221_v6, 0.0  ;;  %v4694_v7 = vpop.f32.mrb[138].mxu1  ;;  %v7585_v48 = vadd.f32 %v4941_v44, %v4940_v57  ;;  %v2962_v44 = vpop.permute.xlu0 %2961 }
 0x419   : > { %v4695_v51 = vpop.f32.mrb[139].mxu1 }
 0x41a   : > { %4278 = vst.msk [vmem:[%s7384_s18 + $0x118] sm:$0xff] %vm1946_vm0, %v3287_v9  ;;  %v4696_v34 = vadd.f32 %v4695_v51, %v4694_v7  ;;  %v3226_v8 = vadd.f32 %v7469_v39, %v3081_v47  ;;  %v4943_v62 = vpop.f32.mrb[176].mxu0 }
 0x41b   : > { %v4944_v10 = vpop.f32.mrb[177].mxu0 }
 0x41c   : > { %v3086_v58 = vadd.f32 %v4696_v34, %v2942_v19  ;;  %v3288_v25 = vmax.f32 %v3226_v8, 0.0  ;;  %v4697_v54 = vpop.f32.mrb[140].mxu1  ;;  %v7590_v37 = vadd.f32 %v4944_v10, %v4943_v62  ;;  %v2967_v8 = vpop.permute.xlu1 %2966 }
 0x41d   : > { %v4698_v50 = vpop.f32.mrb[141].mxu1 }
 0x41e   : > { %4279 = vst.msk [vmem:[%s7384_s18 + $0x120] sm:$0xff] %vm1946_vm0, %v3288_v25  ;;  %v3231_v45 = vadd.f32 %v7473_v18, %v3086_v58  ;;  %v4699_v2 = vadd.f32 %v4698_v50, %v4697_v54  ;;  %v4946_v17 = vpop.f32.mrb[178].mxu0  ;;  %v2972_v54 = vpop.permute.xlu0 %2971 }
 0x41f   : > { %v4947_v63 = vpop.f32.mrb[179].mxu0 }
 0x420   : > { %v3289_v56 = vmax.f32 %v3231_v45, 0.0  ;;  %v3091_v39 = vadd.f32 %v4699_v2, %v2947_v11  ;;  %v4700_v5 = vpop.f32.mrb[142].mxu1  ;;  %v7595_v4 = vadd.f32 %v4947_v63, %v4946_v17  ;;  %v2977_v63 = vpop.permute.xlu1 %2976 }
 0x421   : > { %v4701_v14 = vpop.f32.mrb[143].mxu1 }
 0x422   : > { %4280 = vst.msk [vmem:[%s7384_s18 + $0x128] sm:$0xff] %vm1946_vm0, %v3289_v56  ;;  %v3236_v59 = vadd.f32 %v7477_v16, %v3091_v39  ;;  %v4702_v1 = vadd.f32 %v4701_v14, %v4700_v5  ;;  %v4949_v41 = vpop.f32.mrb[180].mxu0 }
 0x423   : > { %v4950_v52 = vpop.f32.mrb[181].mxu0 }
 0x424   : > { %v3290_v18 = vmax.f32 %v3236_v59, 0.0  ;;  %v3096_v12 = vadd.f32 %v4702_v1, %v2952_v27  ;;  %v4703_v42 = vpop.f32.mrb[144].mxu1  ;;  %v7600_v60 = vadd.f32 %v4950_v52, %v4949_v41  ;;  %v2982_v1 = vpop.permute.xlu0 %2981 }
 0x425   : > { %v4704_v53 = vpop.f32.mrb[145].mxu1 }
 0x426   : > { %4281 = vst.msk [vmem:[%s7384_s18 + $0x130] sm:$0xff] %vm1946_vm0, %v3290_v18  ;;  %v3241_v21 = vadd.f32 %v7481_v22, %v3096_v12  ;;  %v4705_v40 = vadd.f32 %v4704_v53, %v4703_v42  ;;  %v4952_v28 = vpop.f32.mrb[182].mxu0  ;;  %v2987_v42 = vpop.permute.xlu1 %2986 }
 0x427   : > { %v4953_v16 = vpop.f32.mrb[183].mxu0 }
 0x428   : > { %v3291_v43 = vmax.f32 %v3241_v21, 0.0  ;;  %v3101_v38 = vadd.f32 %v4705_v40, %v2957_v61  ;;  %v4706_v29 = vpop.f32.mrb[146].mxu1  ;;  %v7605_v46 = vadd.f32 %v4953_v16, %v4952_v28  ;;  %v2992_v16 = vpop.permute.xlu0 %2991 }
 0x429   : > { %v4707_v6 = vpop.f32.mrb[147].mxu1 }
 0x42a   : > { %4282 = vst.msk [vmem:[%s7384_s18 + $0x138] sm:$0xff] %vm1946_vm0, %v3291_v43  ;;  %v3246_v57 = vadd.f32 %v7485_v49, %v3101_v38  ;;  %v4708_v24 = vadd.f32 %v4707_v6, %v4706_v29 }
 0x42c   : > { %v3292_v47 = vmax.f32 %v3246_v57, 0.0  ;;  %v3106_v22 = vadd.f32 %v4708_v24, %v2962_v44  ;;  %v4709_v9 = vpop.f32.mrb[148].mxu1  ;;  %v3466_v24 = vpop.permute.xlu1 %3465 }
 0x42d   : > { %v4710_v7 = vpop.f32.mrb[149].mxu1 }
 0x42e   : > { %4283 = vst.msk [vmem:[%s7384_s18 + $0x140] sm:$0xff] %vm1946_vm0, %v3292_v47  ;;  %v3251_v51 = vadd.f32 %v7489_v32, %v3106_v22  ;;  %v4711_v34 = vadd.f32 %v4710_v7, %v4709_v9 }
 0x430   : > { %v3293_v62 = vmax.f32 %v3251_v51, 0.0  ;;  %v3111_v19 = vadd.f32 %v4711_v34, %v2967_v8  ;;  %v4712_v10 = vpop.f32.mrb[150].mxu1  ;;  %v3471_v51 = vpop.permute.xlu0 %3470 }
 0x431   : > { %v4713_v58 = vpop.f32.mrb[151].mxu1 }
 0x432   : > { %4284 = vst.msk [vmem:[%s7384_s18 + $0x148] sm:$0xff] %vm1946_vm0, %v3293_v62  ;;  %v3256_v49 = vadd.f32 %v7493_v30, %v3111_v19  ;;  %v4714_v25 = vadd.f32 %v4713_v58, %v4712_v10  ;;  %v3476_v58 = vpop.permute.xlu1 %3475 }
 0x434   : > { %v3294_v50 = vmax.f32 %v3256_v49, 0.0  ;;  %v3116_v45 = vadd.f32 %v4714_v25, %v2972_v54  ;;  %v4715_v2 = vpop.f32.mrb[152].mxu1 }
 0x435   : > { %v4716_v17 = vpop.f32.mrb[153].mxu1 }
 0x436   : > { %4285 = vst.msk [vmem:[%s7384_s18 + $0x150] sm:$0xff] %vm1946_vm0, %v3294_v50  ;;  %v3261_v32 = vadd.f32 %v7497_v20, %v3116_v45  ;;  %v4717_v11 = vadd.f32 %v4716_v17, %v4715_v2  ;;  %v3481_v2 = vpop.permute.xlu0 %3480 }
 0x438   : > { %v3295_v56 = vmax.f32 %v3261_v32, 0.0  ;;  %v3121_v39 = vadd.f32 %v4717_v11, %v2977_v63  ;;  %v4718_v5 = vpop.f32.mrb[154].mxu1 }
 0x439   : > { %v4719_v14 = vpop.f32.mrb[155].mxu1 }
 0x43a   : > { %4286 = vst.msk [vmem:[%s7384_s18 + $0x158] sm:$0xff] %vm1946_vm0, %v3295_v56  ;;  %v3266_v30 = vadd.f32 %v7501_v35, %v3121_v39  ;;  %v4720_v59 = vadd.f32 %v4719_v14, %v4718_v5  ;;  %v3486_v39 = vpop.permute.xlu1 %3485 }
 0x43c   : > { %v3296_v41 = vmax.f32 %v3266_v30, 0.0  ;;  %v3126_v27 = vadd.f32 %v4720_v59, %v2982_v1  ;;  %v4721_v52 = vpop.f32.mrb[156].mxu1 }
 0x43d   : > { %v4722_v18 = vpop.f32.mrb[157].mxu1 }
 0x43e   : > { %4287 = vst.msk [vmem:[%s7384_s18 + $0x160] sm:$0xff] %vm1946_vm0, %v3296_v41  ;;  %v3271_v20 = vadd.f32 %v7505_v55, %v3126_v27  ;;  %v4723_v12 = vadd.f32 %v4722_v18, %v4721_v52  ;;  %v3491_v41 = vpop.permute.xlu0 %3490 }
 0x440   : > { %v3297_v53 = vmax.f32 %v3271_v20, 0.0  ;;  %v3131_v21 = vadd.f32 %v4723_v12, %v2987_v42  ;;  %v4724_v40 = vpop.f32.mrb[158].mxu1  ;;  %v3496_v42 = vpop.permute.xlu1 %3495 }
 0x441   : > { %v4725_v28 = vpop.f32.mrb[159].mxu1 }
 0x442   : > { %4288 = vst.msk [vmem:[%s7384_s18 + $0x168] sm:$0xff] %vm1946_vm0, %v3297_v53  ;;  %v3276_v35 = vadd.f32 %v7509_v36, %v3131_v21  ;;  %v4726_v61 = vadd.f32 %v4725_v28, %v4724_v40 }
 0x444   : > { %v3298_v43 = vmax.f32 %v3276_v35, 0.0  ;;  %v3136_v38 = vadd.f32 %v4726_v61, %v2992_v16  ;;  %v4839_v29 = vpop.f32.mrb[160].mxu1  ;;  %v3501_v61 = vpop.permute.xlu0 %3500 }
 0x445   : > { %v4840_v6 = vpop.f32.mrb[161].mxu1 }
 0x446   : > { %4289 = vst.msk [vmem:[%s7384_s18 + $0x170] sm:$0xff] %vm1946_vm0, %v3298_v43  ;;  %v3281_v55 = vadd.f32 %v7512_v31, %v3136_v38  ;;  %v4841_v57 = vadd.f32 %v4840_v6, %v4839_v29 }
 0x448   : > { %v3299_v44 = vmax.f32 %v3281_v55, 0.0  ;;  %v3866_v47 = vadd.f32 %v4841_v57, %v3466_v24  ;;  %v4842_v22 = vpop.f32.mrb[162].mxu1  ;;  %v3506_v55 = vpop.permute.xlu1 %3505 }
 0x449   : > { %v4843_v9 = vpop.f32.mrb[163].mxu1 }
 0x44a   : > { %4290 = vst.msk [vmem:[%s7384_s18 + $0x178] sm:$0xff] %vm1946_vm0, %v3299_v44  ;;  %v4011_v36 = vadd.f32 %v7553_v26, %v3866_v47  ;;  %v4844_v7 = vadd.f32 %v4843_v9, %v4842_v22  ;;  %v3511_v9 = vpop.permute.xlu0 %3510 }
 0x44c   : > { %v4089_v34 = vmax.f32 %v4011_v36, 0.0  ;;  %v3871_v8 = vadd.f32 %v4844_v7, %v3471_v51  ;;  %v4845_v62 = vpop.f32.mrb[164].mxu1 }
 0x44d   : > { %v4846_v19 = vpop.f32.mrb[165].mxu1 }
 0x44e   : > { %4307 = vst.msk [vmem:[%s7384_s18 + $0x180] sm:$0xff] %vm1946_vm0, %v4089_v34  ;;  %v4016_v31 = vadd.f32 %v7558_v15, %v3871_v8  ;;  %v4847_v10 = vadd.f32 %v4846_v19, %v4845_v62  ;;  %v3516_v62 = vpop.permute.xlu1 %3515 }
 0x450   : > { %v4090_v49 = vmax.f32 %v4016_v31, 0.0  ;;  %v3876_v25 = vadd.f32 %v4847_v10, %v3476_v58  ;;  %v4848_v54 = vpop.f32.mrb[166].mxu1 }
 0x451   : > { %v4849_v50 = vpop.f32.mrb[167].mxu1 }
 0x452   : > { %4308 = vst.msk [vmem:[%s7384_s18 + $0x188] sm:$0xff] %vm1946_vm0, %v4090_v49  ;;  %v4021_v26 = vadd.f32 %v7563_v13, %v3876_v25  ;;  %v4850_v45 = vadd.f32 %v4849_v50, %v4848_v54  ;;  %v3521_v25 = vpop.permute.xlu0 %3520 }
 0x454   : > { %v4091_v17 = vmax.f32 %v4021_v26, 0.0  ;;  %v3881_v32 = vadd.f32 %v4850_v45, %v3481_v2  ;;  %v4851_v11 = vpop.f32.mrb[168].mxu1 }
 0x455   : > { %v4852_v63 = vpop.f32.mrb[169].mxu1 }
 0x456   : > { %4309 = vst.msk [vmem:[%s7384_s18 + $0x190] sm:$0xff] %vm1946_vm0, %v4091_v17  ;;  %v4026_v15 = vadd.f32 %v7567_v3, %v3881_v32  ;;  %v4853_v56 = vadd.f32 %v4852_v63, %v4851_v11 }
 0x458   : > { %v4092_v5 = vmax.f32 %v4026_v15, 0.0  ;;  %v3886_v14 = vadd.f32 %v4853_v56, %v3486_v39  ;;  %v4854_v30 = vpop.f32.mrb[170].mxu1 }
 0x459   : > { %v4855_v59 = vpop.f32.mrb[171].mxu1 }
 0x45a   : > { %4310 = vst.msk [vmem:[%s7384_s18 + $0x198] sm:$0xff] %vm1946_vm0, %v4092_v5  ;;  %v4031_v13 = vadd.f32 %v7570_v0, %v3886_v14  ;;  %v4856_v1 = vadd.f32 %v4855_v59, %v4854_v30  ;;  %v3526_v59 = vpop.permute.xlu1 %3525 }
 0x45c   : > { %v4093_v27 = vmax.f32 %v4031_v13, 0.0  ;;  %v3891_v52 = vadd.f32 %v4856_v1, %v3491_v41  ;;  %v4857_v18 = vpop.f32.mrb[172].mxu1 }
 0x45d   : > { %v4858_v20 = vpop.f32.mrb[173].mxu1 }
 0x45e   : > { %4311 = vst.msk [vmem:[%s7384_s18 + $0x1a0] sm:$0xff] %vm1946_vm0, %v4093_v27  ;;  %v4036_v3 = vadd.f32 %v7575_v23, %v3891_v52  ;;  %v4859_v12 = vadd.f32 %v4858_v20, %v4857_v18  ;;  %v3531_v52 = vpop.permute.xlu0 %3530 }
 0x460   : > { %v4094_v53 = vmax.f32 %v4036_v3, 0.0  ;;  %v3896_v21 = vadd.f32 %v4859_v12, %v3496_v42  ;;  %v4860_v40 = vpop.f32.mrb[174].mxu1 }
 0x461   : > { %v4861_v28 = vpop.f32.mrb[175].mxu1 }
 0x462   : > { %4312 = vst.msk [vmem:[%s7384_s18 + $0x1a8] sm:$0xff] %vm1946_vm0, %v4094_v53  ;;  %v4041_v0 = vadd.f32 %v7580_v33, %v3896_v21  ;;  %v4862_v35 = vadd.f32 %v4861_v28, %v4860_v40  ;;  %v3536_v21 = vpop.permute.xlu1 %3535 }
 0x464   : > { %v4095_v16 = vmax.f32 %v4041_v0, 0.0  ;;  %v3901_v43 = vadd.f32 %v4862_v35, %v3501_v61  ;;  %v4863_v38 = vpop.f32.mrb[176].mxu1 }
 0x465   : > { %v4864_v29 = vpop.f32.mrb[177].mxu1 }
 0x466   : > { %4313 = vst.msk [vmem:[%s7384_s18 + $0x1b0] sm:$0xff] %vm1946_vm0, %v4095_v16  ;;  %v4046_v23 = vadd.f32 %v7585_v48, %v3901_v43  ;;  %v4865_v6 = vadd.f32 %v4864_v29, %v4863_v38  ;;  %v3541_v43 = vpop.permute.xlu0 %3540 }
 0x468   : > { %v4096_v57 = vmax.f32 %v4046_v23, 0.0  ;;  %v3906_v24 = vadd.f32 %v4865_v6, %v3506_v55  ;;  %v4866_v44 = vpop.f32.mrb[178].mxu1 }
 0x469   : > { %v4867_v47 = vpop.f32.mrb[179].mxu1 }
 0x46a   : > { %4314 = vst.msk [vmem:[%s7384_s18 + $0x1b8] sm:$0xff] %vm1946_vm0, %v4096_v57  ;;  %v4051_v33 = vadd.f32 %v7590_v37, %v3906_v24  ;;  %v4868_v22 = vadd.f32 %v4867_v47, %v4866_v44 }
 0x46c   : > { %v4097_v36 = vmax.f32 %v4051_v33, 0.0  ;;  %v3911_v7 = vadd.f32 %v4868_v22, %v3511_v9  ;;  %v4869_v51 = vpop.f32.mrb[180].mxu1 }
 0x46d   : > { %v4870_v34 = vpop.f32.mrb[181].mxu1 }
 0x46e   : > { %4315 = vst.msk [vmem:[%s7384_s18 + $0x1c0] sm:$0xff] %vm1946_vm0, %v4097_v36  ;;  %v4056_v48 = vadd.f32 %v7595_v4, %v3911_v7  ;;  %v4871_v8 = vadd.f32 %v4870_v34, %v4869_v51 }
 0x470   : > { %v4098_v19 = vmax.f32 %v4056_v48, 0.0  ;;  %v3916_v31 = vadd.f32 %v4871_v8, %v3516_v62  ;;  %v4872_v10 = vpop.f32.mrb[182].mxu1 }
 0x471   : > { %v4873_v58 = vpop.f32.mrb[183].mxu1 }
 0x472   : > { %4316 = vst.msk [vmem:[%s7384_s18 + $0x1c8] sm:$0xff] %vm1946_vm0, %v4098_v19  ;;  %v4061_v37 = vadd.f32 %v7600_v60, %v3916_v31  ;;  %v4874_v49 = vadd.f32 %v4873_v58, %v4872_v10 }
 0x474   : > { %v4099_v54 = vmax.f32 %v4061_v37, 0.0  ;;  %v3921_v50 = vadd.f32 %v4874_v49, %v3521_v25  ;;  %v4875_v26 = vpop.f32.mrb[184].mxu1 }
 0x475   : > { %v4876_v45 = vpop.f32.mrb[185].mxu1 }
 0x476   : > { %4317 = vst.msk [vmem:[%s7384_s18 + $0x1d0] sm:$0xff] %vm1946_vm0, %v4099_v54  ;;  %v4066_v4 = vadd.f32 %v7605_v46, %v3921_v50  ;;  %v4877_v2 = vadd.f32 %v4876_v45, %v4875_v26 }
 0x478   : > { %v4100_v17 = vmax.f32 %v4066_v4, 0.0  ;;  %v4878_v32 = vpop.f32.mrb[186].mxu1  ;;  %v3926_v1 = vadd.f32 %v4877_v2, %v3526_v59 }
 0x479   : > { %v4879_v11 = vpop.f32.mrb[187].mxu1 }
 0x47a   : > { %4318 = vst.msk [vmem:[%s7384_s18 + $0x1d8] sm:$0xff] %vm1946_vm0, %v4100_v17  ;;  %v4880_v63 = vadd.f32 %v4879_v11, %v4878_v32 }
 0x47c   : > { %v4881_v15 = vpop.f32.mrb[188].mxu1  ;;  %v3931_v20 = vadd.f32 %v4880_v63, %v3531_v52 }
 0x47d   : > { %v4882_v56 = vpop.f32.mrb[189].mxu1 }
 0x47e   : > { %v4883_v60 = vadd.f32 %v4882_v56, %v4881_v15 }
 0x480   : > { %v4884_v39 = vpop.f32.mrb[190].mxu1  ;;  %v3936_v28 = vadd.f32 %v4883_v60, %v3536_v21 }
 0x481   : > { %v4885_v5 = vpop.f32.mrb[191].mxu1 }
 0x482   : > { %v4886_v14 = vadd.f32 %v4885_v5, %v4884_v39 }
 0x484   : > { %v4955_v30 = vpop.f32.mrb[192].mxu1  ;;  %v3941_v29 = vadd.f32 %v4886_v14, %v3541_v43 }
 0x485   : > { %v4956_v13 = vpop.f32.mrb[193].mxu1 }
 0x486   : > { %v4957_v41 = vadd.f32 %v4956_v13, %v4955_v30 }
 0x488   : > { %v4071_v46 = vadd.f32 %v4957_v41, %v3926_v1  ;;  %v4958_v27 = vpop.f32.mrb[194].mxu1 }
 0x489   : > { %v4959_v18 = vpop.f32.mrb[195].mxu1 }
 0x48a   : > { %v4101_v3 = vmax.f32 %v4071_v46, 0.0  ;;  %v4960_v12 = vadd.f32 %v4959_v18, %v4958_v27 }
 0x48c   : > { %4319 = vst.msk [vmem:[%s7384_s18 + $0x1e0] sm:$0xff] %vm1946_vm0, %v4101_v3  ;;  %v4076_v42 = vadd.f32 %v4960_v12, %v3931_v20  ;;  %v4961_v53 = vpop.f32.mrb[196].mxu1 }
 0x48d   : > { %v4962_v40 = vpop.f32.mrb[197].mxu1 }
 0x48e   : > { %v4102_v0 = vmax.f32 %v4076_v42, 0.0  ;;  %v4963_v35 = vadd.f32 %v4962_v40, %v4961_v53 }
 0x490   : > { %4320 = vst.msk [vmem:[%s7384_s18 + $0x1e8] sm:$0xff] %vm1946_vm0, %v4102_v0  ;;  %v4081_v61 = vadd.f32 %v4963_v35, %v3936_v28  ;;  %v4964_v16 = vpop.f32.mrb[198].mxu1 }
 0x491   : > { %v4965_v38 = vpop.f32.mrb[199].mxu1 }
 0x492   : > { %v4103_v23 = vmax.f32 %v4081_v61, 0.0  ;;  %v4966_v6 = vadd.f32 %v4965_v38, %v4964_v16 }
 0x494   : > { %4321 = vst.msk [vmem:[%s7384_s18 + $0x1f0] sm:$0xff] %vm1946_vm0, %v4103_v23  ;;  %v4086_v55 = vadd.f32 %v4966_v6, %v3941_v29 }
 0x496   : > { %v4104_v57 = vmax.f32 %v4086_v55, 0.0 }
 0x498   : > { %4322 = vst.msk [vmem:[%s7384_s18 + $0x1f8] sm:$0xff] %vm1946_vm0, %v4104_v57 }
 0x499 PF: > { %s18_s20 = sadd.s32 1, %s5809_s20   ;;  %s7831_s15 = smov %s5793_s16 }
 0x49a   : > { %p15_p4 = scmp.ge.s32.totalorder %s18_s20, 4   ;;  %s7832_s16 = smov %s5797_s17 }
 0x49b   : > { %s7833_s17 = smov %s5927_s5  ;;  %s7834_s18 = smov %s5805_s19 }
 0x49c   : > { %s7835_s19 = smov %s7837_s28  ;;  %17 = sbr.rel (!%p15_p4) target bundleno = 5 (0x5), region = 99 }
 0x4a3   :  { %4143 = vsyncpa [#allocation4], 1 }
 0x4a4   :  { %4145 = vsyncpa [#allocation4 + $0x1], 1 }
 0x4a5   :  { %4146 = vsyncpa [#allocation6], 1 }
 0x4a6   :  { %4148 = vsyncpa [#allocation6 + $0x1], 1 }

</bundles_post_ra>
